<compile_context>
chip_gen: v7x
topology: tpu7x:2x2x1
jax: 0.10.0
libtpu: 0.0.40
codegen_flags: <defaults>
</compile_context>

<pallas_src>
import math

import jax
import jax.numpy as jnp
from jax.experimental import pallas as pl
from jax.experimental.pallas import tpu as pltpu

# ----------------- config (mirrors the TDO config fields used in forward) ----
NUM_LAYERS = 2
HIDDEN = 32
NUM_HEADS = 4
HEAD_DIM = HIDDEN // NUM_HEADS
INTERMEDIATE = 64
LORA_R = 4
LORA_ALPHA = 8
LORA_SCALING = LORA_ALPHA / LORA_R
LN_EPS = 1e-12
LORA_TYPE = "cross_attention"
# config.encoder_layout[str(idx)]['crossattention'] -> is_decoder per layer
ENCODER_LAYOUT = {"0": {"crossattention": False}, "1": {"crossattention": True}}

BATCH = 2
SEQ = 8        # decoder sequence length
ENC_SEQ = 8    # encoder (neighbor) sequence length

BIAS_PAD = 128  # lane-dense width for the packed bias/gain slab


def _gelu(x):
    # TODO(synk): HF Bert uses exact (erf) GELU; tanh approximation used for Mosaic compatibility.
    return jax.nn.gelu(x, approximate=True)


# ----------------------- static slab layouts (per layer) ---------------------
def _w1_offsets(has_cross):
    """Static column offsets of each weight block inside the per-layer W1 slab."""
    o, c = {}, 0
    o["qkv"] = c; c += 3 * HIDDEN            # fused query|key|value
    o["sow"] = c; c += HIDDEN                # self-attention output dense
    if has_cross:
        o["cqw"] = c; c += HIDDEN            # cross query
        o["ckv"] = c; c += 2 * HIDDEN        # cross key | LoRA-folded value
        o["cow"] = c; c += HIDDEN            # cross-attention output dense
    o["iw"] = c; c += INTERMEDIATE           # FFN intermediate
    return o, c


def _bias_rows(has_cross):
    rows = ["qkvb", "sob", "sog", "sobt"]
    if has_cross:
        rows += ["cqb", "ckb", "cob", "cog", "cobt"]
    rows += ["ib", "ob", "og", "obt"]
    return rows


def pack_layer_params(p, has_cross):
    """Pack one layer's weights into (W1 slab, FFN-out weight, bias slab)."""
    wblocks = [p["qw"], p["kw"], p["vw"], p["sow"]]
    if has_cross:
        # LoRA value path pre-folded: W_v = (lora_A @ lora_B) * lora_scaling
        wv_eff = (p["law"] @ p["lbw"]) * LORA_SCALING          # (H, H)
        wblocks += [p["cqw"], p["ckw"], wv_eff, p["cow"]]
    wblocks.append(p["iw"])
    w1 = jnp.concatenate(wblocks, axis=1)                      # (H, C1)

    vecs = {
        "qkvb": jnp.concatenate([p["qb"], p["kb"], p["vb"]], axis=1),
        "sob": p["sob"], "sog": p["sog"], "sobt": p["sobt"],
        "ib": p["ib"], "ob": p["ob"], "og": p["og"], "obt": p["obt"],
    }
    if has_cross:
        vecs.update(cqb=p["cqb"], ckb=p["ckb"], cob=p["cob"],
                    cog=p["cog"], cobt=p["cobt"])
    rows = _bias_rows(has_cross)
    bsl = jnp.zeros((len(rows), BIAS_PAD), jnp.float32)
    for r, name in enumerate(rows):
        v = vecs[name]
        bsl = bsl.at[r, :v.shape[1]].set(v[0])
    return w1, p["ow"], bsl


# ------------------------------- fused kernel --------------------------------
def _make_decoder_kernel(cross_flags, B, S, Se):
    H, I = HIDDEN, INTERMEDIATE
    inv_sqrt_d = 1.0 / math.sqrt(HEAD_DIM)

    def batch_block_mask(sq, sk):
        # 0 inside the same batch element's block, -1e9 across batch elements.
        r = jax.lax.broadcasted_iota(jnp.int32, (B * sq, B * sk), 0)
        c = jax.lax.broadcasted_iota(jnp.int32, (B * sq, B * sk), 1)
        same = None
        for b in range(B):
            blk = (r >= b * sq) & (r < (b + 1) * sq) & (c >= b * sk) & (c < (b + 1) * sk)
            same = blk if same is None else (same | blk)
        return jnp.where(same, 0.0, -1e9).astype(jnp.float32)

    def layer_norm(x, g, b):
        mu = jnp.mean(x, axis=-1, keepdims=True)
        xc = x - mu
        var = jnp.mean(xc * xc, axis=-1, keepdims=True)
        return xc * jax.lax.rsqrt(var + LN_EPS) * g + b

    def attention_dense(q, k, v, out_w, mask_bias):
        # q: (Mq, H); k, v: (Mk, H).  Per-head softmax(Q K^T / sqrt(d)) V, folded
        # directly into the output dense projection (no lane-axis concat of heads).
        acc = None
        for h in range(NUM_HEADS):
            sl = slice(h * HEAD_DIM, (h + 1) * HEAD_DIM)
            qh, kh, vh = q[:, sl], k[:, sl], v[:, sl]
            s = jax.lax.dot_general(qh, kh, (((1,), (1,)), ((), ())),
                                    preferred_element_type=jnp.float32)
            s = s * inv_sqrt_d + mask_bias
            s = s - jnp.max(s, axis=-1, keepdims=True)
            p = jnp.exp(s)
            p = p * pl.reciprocal(jnp.sum(p, axis=-1, keepdims=True), approx=True)
            ctx_h = jnp.dot(p, vh, preferred_element_type=jnp.float32)          # (Mq, hd)
            contrib = jnp.dot(ctx_h, out_w[sl, :], preferred_element_type=jnp.float32)
            acc = contrib if acc is None else acc + contrib
        return acc                                                              # (Mq, H)

    def kernel(hs_ref, enc_ref, *rest):
        out_ref = rest[-1]
        layer_refs = rest[:-1]              # (w1, ow, bias) per layer

        x = hs_ref[...]                     # (B*S, H)
        enc = enc_ref[...]                  # (B*Se, H)
        self_mask = batch_block_mask(S, S)
        cross_mask = batch_block_mask(S, Se)

        for li, has_cross in enumerate(cross_flags):
            w1 = layer_refs[3 * li]                 # weight slab ref (H, C1)
            ow = layer_refs[3 * li + 1][...]        # (I, H)
            bsl = layer_refs[3 * li + 2][...]       # (R, 128) bias/gain slab
            offs, _ = _w1_offsets(has_cross)
            rmap = {n: r for r, n in enumerate(_bias_rows(has_cross))}

            def bias(name, width):
                r = rmap[name]
                return bsl[r:r + 1, :width]

            # ---- BertAttention (self): fused QKV projection ----
            qkv = jnp.dot(x, w1[:, offs["qkv"]:offs["qkv"] + 3 * H],
                          preferred_element_type=jnp.float32) + bias("qkvb", 3 * H)
            q, k, v = qkv[:, :H], qkv[:, H:2 * H], qkv[:, 2 * H:3 * H]
            attn = attention_dense(q, k, v,
                                   w1[:, offs["sow"]:offs["sow"] + H], self_mask)
            x = layer_norm(attn + bias("sob", H) + x, bias("sog", H), bias("sobt", H))

            if has_cross:
                # ---- LORAAttention cross attention (lora_type == 'cross_attention') ----
                cq = jnp.dot(x, w1[:, offs["cqw"]:offs["cqw"] + H],
                             preferred_element_type=jnp.float32) + bias("cqb", H)
                ckv = jnp.dot(enc, w1[:, offs["ckv"]:offs["ckv"] + 2 * H],
                              preferred_element_type=jnp.float32)
                ck = ckv[:, :H] + bias("ckb", H)
                cv = ckv[:, H:2 * H]        # LoRA value; scaling pre-folded in slab
                cattn = attention_dense(cq, ck, cv,
                                        w1[:, offs["cow"]:offs["cow"] + H], cross_mask)
                x = layer_norm(cattn + bias("cob", H) + x,
                               bias("cog", H), bias("cobt", H))

            # ---- BertIntermediate + BertOutput (FFN) ----
            inter = _gelu(jnp.dot(x, w1[:, offs["iw"]:offs["iw"] + I],
                                  preferred_element_type=jnp.float32) + bias("ib", I))
            x = layer_norm(jnp.dot(inter, ow, preferred_element_type=jnp.float32)
                           + bias("ob", H) + x, bias("og", H), bias("obt", H))

        out_ref[...] = x.astype(out_ref.dtype)

    return kernel


def tdo_decoder_forward(hidden_states, encoder_hidden_states, all_params):
    """TDODecoder.forward (last_hidden_state only) as one fused pallas_call."""
    B, S, H = hidden_states.shape
    Se = encoder_hidden_states.shape[1]
    cross_flags = tuple(ENCODER_LAYOUT[str(i)]["crossattention"]
                        for i in range(NUM_LAYERS))

    hs2d = hidden_states.reshape(B * S, H)
    enc2d = encoder_hidden_states.reshape(B * Se, H)

    slabs = []
    for i, has_cross in enumerate(cross_flags):
        slabs.extend(pack_layer_params(all_params[i], has_cross))

    kernel = _make_decoder_kernel(cross_flags, B, S, Se)
    n_in = 2 + len(slabs)

    out2d = pl.pallas_call(
        kernel,
        out_shape=jax.ShapeDtypeStruct((B * S, H), jnp.float32),
        in_specs=[pl.BlockSpec(memory_space=pltpu.MemorySpace.VMEM)
                  for _ in range(n_in)],
        out_specs=pl.BlockSpec(memory_space=pltpu.MemorySpace.VMEM),
    )(hs2d, enc2d, *slabs)
    # NOTE: output last dim stays at H=32 (masked store of ~2 KB); repacking to a
    # 128-lane layout in-kernel would cost more XLU work than the store saves.
    return out2d.reshape(B, S, H)


# ----------------------------- pure-JAX reference ----------------------------
def _ref_layer(hs, enc, p, has_cross):
    def ln(x, g, b):
        mu = x.mean(-1, keepdims=True)
        xc = x - mu
        var = (xc * xc).mean(-1, keepdims=True)
        return xc * jax.lax.rsqrt(var + LN_EPS) * g + b

    def mha(q, k, v):
        Bq, Sq, H = q.shape
        Sk = k.shape[1]
        qh = q.reshape(Bq, Sq, NUM_HEADS, HEAD_DIM).transpose(0, 2, 1, 3)
        kh = k.reshape(Bq, Sk, NUM_HEADS, HEAD_DIM).transpose(0, 2, 1, 3)
        vh = v.reshape(Bq, Sk, NUM_HEADS, HEAD_DIM).transpose(0, 2, 1, 3)
        s = jnp.einsum("bhqd,bhkd->bhqk", qh, kh) / math.sqrt(HEAD_DIM)
        pr = jax.nn.softmax(s, axis=-1)
        ctx = jnp.einsum("bhqk,bhkd->bhqd", pr, vh)
        return ctx.transpose(0, 2, 1, 3).reshape(Bq, Sq, H)

    q = hs @ p["qw"] + p["qb"]
    k = hs @ p["kw"] + p["kb"]
    v = hs @ p["vw"] + p["vb"]
    x = ln(mha(q, k, v) @ p["sow"] + p["sob"] + hs, p["sog"], p["sobt"])
    if has_cross:
        cq = x @ p["cqw"] + p["cqb"]
        ck = enc @ p["ckw"] + p["ckb"]
        cv = (enc @ p["law"]) @ p["lbw"] * LORA_SCALING
        x = ln(mha(cq, ck, cv) @ p["cow"] + p["cob"] + x, p["cog"], p["cobt"])
    inter = _gelu(x @ p["iw"] + p["ib"])
    return ln(inter @ p["ow"] + p["ob"] + x, p["og"], p["obt"])


def tdo_decoder_reference(hidden_states, encoder_hidden_states, all_params):
    for idx in range(NUM_LAYERS):
        has_cross = ENCODER_LAYOUT[str(idx)]["crossattention"]
        hidden_states = _ref_layer(hidden_states, encoder_hidden_states,
                                   all_params[idx], has_cross)
    return hidden_states


# ------------------------------ parameter init -------------------------------
def init_layer_params(key):
    ks = jax.random.split(key, 12)

    def w(k, shape):
        return (0.02 * jax.random.normal(k, shape)).astype(jnp.float32)

    zeros_h = jnp.zeros((1, HIDDEN), jnp.float32)
    ones_h = jnp.ones((1, HIDDEN), jnp.float32)
    return {
        # BertAttention (self)
        "qw": w(ks[0], (HIDDEN, HIDDEN)), "qb": zeros_h,
        "kw": w(ks[1], (HIDDEN, HIDDEN)), "kb": zeros_h,
        "vw": w(ks[2], (HIDDEN, HIDDEN)), "vb": zeros_h,
        "sow": w(ks[3], (HIDDEN, HIDDEN)), "sob": zeros_h,
        "sog": ones_h, "sobt": zeros_h,
        # LORAAttention (cross)
        "cqw": w(ks[4], (HIDDEN, HIDDEN)), "cqb": zeros_h,
        "ckw": w(ks[5], (HIDDEN, HIDDEN)), "ckb": zeros_h,
        "law": w(ks[6], (HIDDEN, LORA_R)),          # lora_A: Linear(H, r), no bias
        "lbw": w(ks[7], (LORA_R, HIDDEN)),          # lora_B: Linear(r, H), no bias
        "cow": w(ks[8], (HIDDEN, HIDDEN)), "cob": zeros_h,
        "cog": ones_h, "cobt": zeros_h,
        # BertIntermediate / BertOutput
        "iw": w(ks[9], (HIDDEN, INTERMEDIATE)),
        "ib": jnp.zeros((1, INTERMEDIATE), jnp.float32),
        "ow": w(ks[10], (INTERMEDIATE, HIDDEN)), "ob": zeros_h,
        "og": ones_h, "obt": zeros_h,
    }


if __name__ == "__main__":
    key = jax.random.PRNGKey(0)
    k_hs, k_enc, k_params = jax.random.split(key, 3)

    hidden_states = jax.random.normal(k_hs, (BATCH, SEQ, HIDDEN), jnp.float32)
    encoder_hidden_states = jax.random.normal(k_enc, (BATCH, ENC_SEQ, HIDDEN), jnp.float32)

    layer_keys = jax.random.split(k_params, NUM_LAYERS)
    all_params = [init_layer_params(layer_keys[i]) for i in range(NUM_LAYERS)]

    fwd = jax.jit(tdo_decoder_forward)
    out = fwd(hidden_states, encoder_hidden_states, all_params)
    out = jax.block_until_ready(out)

    ref = tdo_decoder_reference(hidden_states, encoder_hidden_states, all_params)
    assert out.shape == (BATCH, SEQ, HIDDEN)
    # Tolerance 2e-3 accounts for the approx (EUP) reciprocal in the softmax denom.
    assert jnp.allclose(out, ref, atol=2e-3, rtol=2e-3), "Pallas kernel mismatch vs JAX reference"

    print("KERNEL_OK")
</pallas_src>

<mosaic_0001>
module attributes {stable_mosaic.version = 11 : i64} {
  func.func @kernel(%arg0: memref<16x32xf32, #tpu.memory_space<vmem>>, %arg1: memref<16x32xf32, #tpu.memory_space<vmem>>, %arg2: memref<32x192xf32, #tpu.memory_space<vmem>>, %arg3: memref<64x32xf32, #tpu.memory_space<vmem>>, %arg4: memref<8x128xf32, #tpu.memory_space<vmem>>, %arg5: memref<32x320xf32, #tpu.memory_space<vmem>>, %arg6: memref<64x32xf32, #tpu.memory_space<vmem>>, %arg7: memref<13x128xf32, #tpu.memory_space<vmem>>, %arg8: memref<16x32xf32, #tpu.memory_space<vmem>>) attributes {dimension_semantics = [], scalar_prefetch = 0 : i64, scratch_operands = 0 : i64, tpu.core_type = #tpu.core_type<tc>} {
    %c0 = arith.constant 0 : index
    %c0_0 = arith.constant 0 : index
    %0 = vector.load %arg0[%c0, %c0_0] : memref<16x32xf32, #tpu.memory_space<vmem>>, vector<16x32xf32>
    %c0_1 = arith.constant 0 : index
    %c0_2 = arith.constant 0 : index
    %1 = vector.load %arg1[%c0_1, %c0_2] : memref<16x32xf32, #tpu.memory_space<vmem>>, vector<16x32xf32>
    %2 = tpu.iota {dimensions = array<i32: 0>} : vector<16x16xi32>
    %3 = tpu.iota {dimensions = array<i32: 1>} : vector<16x16xi32>
    %c0_i32 = arith.constant 0 : i32
    %4 = vector.broadcast %c0_i32 : i32 to vector<16x16xi32>
    %5 = arith.cmpi sge, %2, %4 : vector<16x16xi32>
    %c8_i32 = arith.constant 8 : i32
    %6 = vector.broadcast %c8_i32 : i32 to vector<16x16xi32>
    %7 = arith.cmpi slt, %2, %6 : vector<16x16xi32>
    %8 = arith.andi %5, %7 : vector<16x16xi1>
    %c0_i32_3 = arith.constant 0 : i32
    %9 = vector.broadcast %c0_i32_3 : i32 to vector<16x16xi32>
    %10 = arith.cmpi sge, %3, %9 : vector<16x16xi32>
    %11 = arith.andi %8, %10 : vector<16x16xi1>
    %c8_i32_4 = arith.constant 8 : i32
    %12 = vector.broadcast %c8_i32_4 : i32 to vector<16x16xi32>
    %13 = arith.cmpi slt, %3, %12 : vector<16x16xi32>
    %14 = arith.andi %11, %13 : vector<16x16xi1>
    %c8_i32_5 = arith.constant 8 : i32
    %15 = vector.broadcast %c8_i32_5 : i32 to vector<16x16xi32>
    %16 = arith.cmpi sge, %2, %15 : vector<16x16xi32>
    %c16_i32 = arith.constant 16 : i32
    %17 = vector.broadcast %c16_i32 : i32 to vector<16x16xi32>
    %18 = arith.cmpi slt, %2, %17 : vector<16x16xi32>
    %19 = arith.andi %16, %18 : vector<16x16xi1>
    %c8_i32_6 = arith.constant 8 : i32
    %20 = vector.broadcast %c8_i32_6 : i32 to vector<16x16xi32>
    %21 = arith.cmpi sge, %3, %20 : vector<16x16xi32>
    %22 = arith.andi %19, %21 : vector<16x16xi1>
    %c16_i32_7 = arith.constant 16 : i32
    %23 = vector.broadcast %c16_i32_7 : i32 to vector<16x16xi32>
    %24 = arith.cmpi slt, %3, %23 : vector<16x16xi32>
    %25 = arith.andi %22, %24 : vector<16x16xi1>
    %26 = arith.ori %14, %25 : vector<16x16xi1>
    %cst = arith.constant 0.000000e+00 : f32
    %cst_8 = arith.constant -1.000000e+09 : f32
    %27 = vector.broadcast %cst : f32 to vector<16x16xf32>
    %28 = vector.broadcast %cst_8 : f32 to vector<16x16xf32>
    %29 = arith.select %26, %27, %28 : vector<16x16xi1>, vector<16x16xf32>
    %30 = tpu.iota {dimensions = array<i32: 0>} : vector<16x16xi32>
    %31 = tpu.iota {dimensions = array<i32: 1>} : vector<16x16xi32>
    %c0_i32_9 = arith.constant 0 : i32
    %32 = vector.broadcast %c0_i32_9 : i32 to vector<16x16xi32>
    %33 = arith.cmpi sge, %30, %32 : vector<16x16xi32>
    %c8_i32_10 = arith.constant 8 : i32
    %34 = vector.broadcast %c8_i32_10 : i32 to vector<16x16xi32>
    %35 = arith.cmpi slt, %30, %34 : vector<16x16xi32>
    %36 = arith.andi %33, %35 : vector<16x16xi1>
    %c0_i32_11 = arith.constant 0 : i32
    %37 = vector.broadcast %c0_i32_11 : i32 to vector<16x16xi32>
    %38 = arith.cmpi sge, %31, %37 : vector<16x16xi32>
    %39 = arith.andi %36, %38 : vector<16x16xi1>
    %c8_i32_12 = arith.constant 8 : i32
    %40 = vector.broadcast %c8_i32_12 : i32 to vector<16x16xi32>
    %41 = arith.cmpi slt, %31, %40 : vector<16x16xi32>
    %42 = arith.andi %39, %41 : vector<16x16xi1>
    %c8_i32_13 = arith.constant 8 : i32
    %43 = vector.broadcast %c8_i32_13 : i32 to vector<16x16xi32>
    %44 = arith.cmpi sge, %30, %43 : vector<16x16xi32>
    %c16_i32_14 = arith.constant 16 : i32
    %45 = vector.broadcast %c16_i32_14 : i32 to vector<16x16xi32>
    %46 = arith.cmpi slt, %30, %45 : vector<16x16xi32>
    %47 = arith.andi %44, %46 : vector<16x16xi1>
    %c8_i32_15 = arith.constant 8 : i32
    %48 = vector.broadcast %c8_i32_15 : i32 to vector<16x16xi32>
    %49 = arith.cmpi sge, %31, %48 : vector<16x16xi32>
    %50 = arith.andi %47, %49 : vector<16x16xi1>
    %c16_i32_16 = arith.constant 16 : i32
    %51 = vector.broadcast %c16_i32_16 : i32 to vector<16x16xi32>
    %52 = arith.cmpi slt, %31, %51 : vector<16x16xi32>
    %53 = arith.andi %50, %52 : vector<16x16xi1>
    %54 = arith.ori %42, %53 : vector<16x16xi1>
    %cst_17 = arith.constant 0.000000e+00 : f32
    %cst_18 = arith.constant -1.000000e+09 : f32
    %55 = vector.broadcast %cst_17 : f32 to vector<16x16xf32>
    %56 = vector.broadcast %cst_18 : f32 to vector<16x16xf32>
    %57 = arith.select %54, %55, %56 : vector<16x16xi1>, vector<16x16xf32>
    %c0_19 = arith.constant 0 : index
    %c0_20 = arith.constant 0 : index
    %58 = vector.load %arg3[%c0_19, %c0_20] : memref<64x32xf32, #tpu.memory_space<vmem>>, vector<64x32xf32>
    %c0_21 = arith.constant 0 : index
    %c0_22 = arith.constant 0 : index
    %59 = vector.load %arg4[%c0_21, %c0_22] : memref<8x128xf32, #tpu.memory_space<vmem>>, vector<8x128xf32>
    %c0_23 = arith.constant 0 : index
    %c0_24 = arith.constant 0 : index
    %60 = vector.load %arg2[%c0_23, %c0_24] : memref<32x192xf32, #tpu.memory_space<vmem>>, vector<32x96xf32>
    %cst_25 = arith.constant dense<0.000000e+00> : vector<16x96xf32>
    %61 = tpu.matmul %0, %60, %cst_25 {dimension_numbers = #tpu.dot_dimension_numbers<[1], [0], [0], [1], [0, 0, 1, 1], [], []>} : vector<16x32xf32>, vector<32x96xf32>, vector<16x96xf32> -> vector<16x96xf32>
    %62 = vector.extract_strided_slice %59 {offsets = [0, 0], sizes = [1, 96], strides = [1, 1]} : vector<8x128xf32> to vector<1x96xf32>
    %63 = vector.broadcast %62 : vector<1x96xf32> to vector<16x96xf32>
    %64 = arith.addf %61, %63 : vector<16x96xf32>
    %65 = vector.extract_strided_slice %64 {offsets = [0, 0], sizes = [16, 32], strides = [1, 1]} : vector<16x96xf32> to vector<16x32xf32>
    %66 = vector.extract_strided_slice %64 {offsets = [0, 32], sizes = [16, 32], strides = [1, 1]} : vector<16x96xf32> to vector<16x32xf32>
    %67 = vector.extract_strided_slice %64 {offsets = [0, 64], sizes = [16, 32], strides = [1, 1]} : vector<16x96xf32> to vector<16x32xf32>
    %c0_26 = arith.constant 0 : index
    %c96 = arith.constant 96 : index
    %68 = vector.load %arg2[%c0_26, %c96] : memref<32x192xf32, #tpu.memory_space<vmem>>, vector<32x32xf32>
    %69 = vector.extract_strided_slice %65 {offsets = [0, 0], sizes = [16, 8], strides = [1, 1]} : vector<16x32xf32> to vector<16x8xf32>
    %70 = vector.extract_strided_slice %66 {offsets = [0, 0], sizes = [16, 8], strides = [1, 1]} : vector<16x32xf32> to vector<16x8xf32>
    %71 = vector.extract_strided_slice %67 {offsets = [0, 0], sizes = [16, 8], strides = [1, 1]} : vector<16x32xf32> to vector<16x8xf32>
    %cst_27 = arith.constant dense<0.000000e+00> : vector<16x16xf32>
    %72 = tpu.matmul %69, %70, %cst_27 {dimension_numbers = #tpu.dot_dimension_numbers<[1], [1], [0], [0], [0, 0, 1, 0], [], []>} : vector<16x8xf32>, vector<16x8xf32>, vector<16x16xf32> -> vector<16x16xf32>
    %cst_28 = arith.constant 0.353553385 : f32
    %73 = vector.broadcast %cst_28 : f32 to vector<16x16xf32>
    %74 = arith.mulf %72, %73 : vector<16x16xf32>
    %75 = arith.addf %74, %29 : vector<16x16xf32>
    %cst_29 = arith.constant dense<0xFF800000> : vector<16xf32>
    %76 = vector.multi_reduction <maximumf>, %75, %cst_29 [1] : vector<16x16xf32> to vector<16xf32>
    %77 = vector.shape_cast %76 : vector<16xf32> to vector<16x1xf32>
    %78 = vector.broadcast %77 : vector<16x1xf32> to vector<16x16xf32>
    %79 = arith.subf %75, %78 : vector<16x16xf32>
    %80 = math.exp %79 : vector<16x16xf32>
    %cst_30 = arith.constant dense<0.000000e+00> : vector<16xf32>
    %81 = vector.multi_reduction <add>, %80, %cst_30 [1] : vector<16x16xf32> to vector<16xf32>
    %82 = vector.shape_cast %81 : vector<16xf32> to vector<16x1xf32>
    %83 = tpu.reciprocal %82 {approx = true} : vector<16x1xf32> -> vector<16x1xf32>
    %84 = vector.broadcast %83 : vector<16x1xf32> to vector<16x16xf32>
    %85 = arith.mulf %80, %84 : vector<16x16xf32>
    %cst_31 = arith.constant dense<0.000000e+00> : vector<16x8xf32>
    %86 = tpu.matmul %85, %71, %cst_31 {dimension_numbers = #tpu.dot_dimension_numbers<[1], [0], [0], [1], [0, 0, 1, 1], [], []>} : vector<16x16xf32>, vector<16x8xf32>, vector<16x8xf32> -> vector<16x8xf32>
    %87 = vector.extract_strided_slice %68 {offsets = [0, 0], sizes = [8, 32], strides = [1, 1]} : vector<32x32xf32> to vector<8x32xf32>
    %cst_32 = arith.constant dense<0.000000e+00> : vector<16x32xf32>
    %88 = tpu.matmul %86, %87, %cst_32 {dimension_numbers = #tpu.dot_dimension_numbers<[1], [0], [0], [1], [0, 0, 1, 1], [], []>} : vector<16x8xf32>, vector<8x32xf32>, vector<16x32xf32> -> vector<16x32xf32>
    %89 = vector.extract_strided_slice %65 {offsets = [0, 8], sizes = [16, 8], strides = [1, 1]} : vector<16x32xf32> to vector<16x8xf32>
    %90 = vector.extract_strided_slice %66 {offsets = [0, 8], sizes = [16, 8], strides = [1, 1]} : vector<16x32xf32> to vector<16x8xf32>
    %91 = vector.extract_strided_slice %67 {offsets = [0, 8], sizes = [16, 8], strides = [1, 1]} : vector<16x32xf32> to vector<16x8xf32>
    %cst_33 = arith.constant dense<0.000000e+00> : vector<16x16xf32>
    %92 = tpu.matmul %89, %90, %cst_33 {dimension_numbers = #tpu.dot_dimension_numbers<[1], [1], [0], [0], [0, 0, 1, 0], [], []>} : vector<16x8xf32>, vector<16x8xf32>, vector<16x16xf32> -> vector<16x16xf32>
    %cst_34 = arith.constant 0.353553385 : f32
    %93 = vector.broadcast %cst_34 : f32 to vector<16x16xf32>
    %94 = arith.mulf %92, %93 : vector<16x16xf32>
    %95 = arith.addf %94, %29 : vector<16x16xf32>
    %cst_35 = arith.constant dense<0xFF800000> : vector<16xf32>
    %96 = vector.multi_reduction <maximumf>, %95, %cst_35 [1] : vector<16x16xf32> to vector<16xf32>
    %97 = vector.shape_cast %96 : vector<16xf32> to vector<16x1xf32>
    %98 = vector.broadcast %97 : vector<16x1xf32> to vector<16x16xf32>
    %99 = arith.subf %95, %98 : vector<16x16xf32>
    %100 = math.exp %99 : vector<16x16xf32>
    %cst_36 = arith.constant dense<0.000000e+00> : vector<16xf32>
    %101 = vector.multi_reduction <add>, %100, %cst_36 [1] : vector<16x16xf32> to vector<16xf32>
    %102 = vector.shape_cast %101 : vector<16xf32> to vector<16x1xf32>
    %103 = tpu.reciprocal %102 {approx = true} : vector<16x1xf32> -> vector<16x1xf32>
    %104 = vector.broadcast %103 : vector<16x1xf32> to vector<16x16xf32>
    %105 = arith.mulf %100, %104 : vector<16x16xf32>
    %cst_37 = arith.constant dense<0.000000e+00> : vector<16x8xf32>
    %106 = tpu.matmul %105, %91, %cst_37 {dimension_numbers = #tpu.dot_dimension_numbers<[1], [0], [0], [1], [0, 0, 1, 1], [], []>} : vector<16x16xf32>, vector<16x8xf32>, vector<16x8xf32> -> vector<16x8xf32>
    %107 = vector.extract_strided_slice %68 {offsets = [8, 0], sizes = [8, 32], strides = [1, 1]} : vector<32x32xf32> to vector<8x32xf32>
    %cst_38 = arith.constant dense<0.000000e+00> : vector<16x32xf32>
    %108 = tpu.matmul %106, %107, %cst_38 {dimension_numbers = #tpu.dot_dimension_numbers<[1], [0], [0], [1], [0, 0, 1, 1], [], []>} : vector<16x8xf32>, vector<8x32xf32>, vector<16x32xf32> -> vector<16x32xf32>
    %109 = arith.addf %88, %108 : vector<16x32xf32>
    %110 = vector.extract_strided_slice %65 {offsets = [0, 16], sizes = [16, 8], strides = [1, 1]} : vector<16x32xf32> to vector<16x8xf32>
    %111 = vector.extract_strided_slice %66 {offsets = [0, 16], sizes = [16, 8], strides = [1, 1]} : vector<16x32xf32> to vector<16x8xf32>
    %112 = vector.extract_strided_slice %67 {offsets = [0, 16], sizes = [16, 8], strides = [1, 1]} : vector<16x32xf32> to vector<16x8xf32>
    %cst_39 = arith.constant dense<0.000000e+00> : vector<16x16xf32>
    %113 = tpu.matmul %110, %111, %cst_39 {dimension_numbers = #tpu.dot_dimension_numbers<[1], [1], [0], [0], [0, 0, 1, 0], [], []>} : vector<16x8xf32>, vector<16x8xf32>, vector<16x16xf32> -> vector<16x16xf32>
    %cst_40 = arith.constant 0.353553385 : f32
    %114 = vector.broadcast %cst_40 : f32 to vector<16x16xf32>
    %115 = arith.mulf %113, %114 : vector<16x16xf32>
    %116 = arith.addf %115, %29 : vector<16x16xf32>
    %cst_41 = arith.constant dense<0xFF800000> : vector<16xf32>
    %117 = vector.multi_reduction <maximumf>, %116, %cst_41 [1] : vector<16x16xf32> to vector<16xf32>
    %118 = vector.shape_cast %117 : vector<16xf32> to vector<16x1xf32>
    %119 = vector.broadcast %118 : vector<16x1xf32> to vector<16x16xf32>
    %120 = arith.subf %116, %119 : vector<16x16xf32>
    %121 = math.exp %120 : vector<16x16xf32>
    %cst_42 = arith.constant dense<0.000000e+00> : vector<16xf32>
    %122 = vector.multi_reduction <add>, %121, %cst_42 [1] : vector<16x16xf32> to vector<16xf32>
    %123 = vector.shape_cast %122 : vector<16xf32> to vector<16x1xf32>
    %124 = tpu.reciprocal %123 {approx = true} : vector<16x1xf32> -> vector<16x1xf32>
    %125 = vector.broadcast %124 : vector<16x1xf32> to vector<16x16xf32>
    %126 = arith.mulf %121, %125 : vector<16x16xf32>
    %cst_43 = arith.constant dense<0.000000e+00> : vector<16x8xf32>
    %127 = tpu.matmul %126, %112, %cst_43 {dimension_numbers = #tpu.dot_dimension_numbers<[1], [0], [0], [1], [0, 0, 1, 1], [], []>} : vector<16x16xf32>, vector<16x8xf32>, vector<16x8xf32> -> vector<16x8xf32>
    %128 = vector.extract_strided_slice %68 {offsets = [16, 0], sizes = [8, 32], strides = [1, 1]} : vector<32x32xf32> to vector<8x32xf32>
    %cst_44 = arith.constant dense<0.000000e+00> : vector<16x32xf32>
    %129 = tpu.matmul %127, %128, %cst_44 {dimension_numbers = #tpu.dot_dimension_numbers<[1], [0], [0], [1], [0, 0, 1, 1], [], []>} : vector<16x8xf32>, vector<8x32xf32>, vector<16x32xf32> -> vector<16x32xf32>
    %130 = arith.addf %109, %129 : vector<16x32xf32>
    %131 = vector.extract_strided_slice %65 {offsets = [0, 24], sizes = [16, 8], strides = [1, 1]} : vector<16x32xf32> to vector<16x8xf32>
    %132 = vector.extract_strided_slice %66 {offsets = [0, 24], sizes = [16, 8], strides = [1, 1]} : vector<16x32xf32> to vector<16x8xf32>
    %133 = vector.extract_strided_slice %67 {offsets = [0, 24], sizes = [16, 8], strides = [1, 1]} : vector<16x32xf32> to vector<16x8xf32>
    %cst_45 = arith.constant dense<0.000000e+00> : vector<16x16xf32>
    %134 = tpu.matmul %131, %132, %cst_45 {dimension_numbers = #tpu.dot_dimension_numbers<[1], [1], [0], [0], [0, 0, 1, 0], [], []>} : vector<16x8xf32>, vector<16x8xf32>, vector<16x16xf32> -> vector<16x16xf32>
    %cst_46 = arith.constant 0.353553385 : f32
    %135 = vector.broadcast %cst_46 : f32 to vector<16x16xf32>
    %136 = arith.mulf %134, %135 : vector<16x16xf32>
    %137 = arith.addf %136, %29 : vector<16x16xf32>
    %cst_47 = arith.constant dense<0xFF800000> : vector<16xf32>
    %138 = vector.multi_reduction <maximumf>, %137, %cst_47 [1] : vector<16x16xf32> to vector<16xf32>
    %139 = vector.shape_cast %138 : vector<16xf32> to vector<16x1xf32>
    %140 = vector.broadcast %139 : vector<16x1xf32> to vector<16x16xf32>
    %141 = arith.subf %137, %140 : vector<16x16xf32>
    %142 = math.exp %141 : vector<16x16xf32>
    %cst_48 = arith.constant dense<0.000000e+00> : vector<16xf32>
    %143 = vector.multi_reduction <add>, %142, %cst_48 [1] : vector<16x16xf32> to vector<16xf32>
    %144 = vector.shape_cast %143 : vector<16xf32> to vector<16x1xf32>
    %145 = tpu.reciprocal %144 {approx = true} : vector<16x1xf32> -> vector<16x1xf32>
    %146 = vector.broadcast %145 : vector<16x1xf32> to vector<16x16xf32>
    %147 = arith.mulf %142, %146 : vector<16x16xf32>
    %cst_49 = arith.constant dense<0.000000e+00> : vector<16x8xf32>
    %148 = tpu.matmul %147, %133, %cst_49 {dimension_numbers = #tpu.dot_dimension_numbers<[1], [0], [0], [1], [0, 0, 1, 1], [], []>} : vector<16x16xf32>, vector<16x8xf32>, vector<16x8xf32> -> vector<16x8xf32>
    %149 = vector.extract_strided_slice %68 {offsets = [24, 0], sizes = [8, 32], strides = [1, 1]} : vector<32x32xf32> to vector<8x32xf32>
    %cst_50 = arith.constant dense<0.000000e+00> : vector<16x32xf32>
    %150 = tpu.matmul %148, %149, %cst_50 {dimension_numbers = #tpu.dot_dimension_numbers<[1], [0], [0], [1], [0, 0, 1, 1], [], []>} : vector<16x8xf32>, vector<8x32xf32>, vector<16x32xf32> -> vector<16x32xf32>
    %151 = arith.addf %130, %150 : vector<16x32xf32>
    %152 = vector.extract_strided_slice %59 {offsets = [1, 0], sizes = [1, 32], strides = [1, 1]} : vector<8x128xf32> to vector<1x32xf32>
    %153 = vector.broadcast %152 : vector<1x32xf32> to vector<16x32xf32>
    %154 = arith.addf %151, %153 : vector<16x32xf32>
    %155 = arith.addf %154, %0 : vector<16x32xf32>
    %156 = vector.extract_strided_slice %59 {offsets = [2, 0], sizes = [1, 32], strides = [1, 1]} : vector<8x128xf32> to vector<1x32xf32>
    %157 = vector.extract_strided_slice %59 {offsets = [3, 0], sizes = [1, 32], strides = [1, 1]} : vector<8x128xf32> to vector<1x32xf32>
    %cst_51 = arith.constant dense<0.000000e+00> : vector<16xf32>
    %158 = vector.multi_reduction <add>, %155, %cst_51 [1] : vector<16x32xf32> to vector<16xf32>
    %159 = vector.shape_cast %158 : vector<16xf32> to vector<16x1xf32>
    %cst_52 = arith.constant 3.200000e+01 : f32
    %160 = vector.broadcast %cst_52 : f32 to vector<16x1xf32>
    %161 = arith.divf %159, %160 : vector<16x1xf32>
    %162 = vector.broadcast %161 : vector<16x1xf32> to vector<16x32xf32>
    %163 = arith.subf %155, %162 : vector<16x32xf32>
    %164 = arith.mulf %163, %163 : vector<16x32xf32>
    %cst_53 = arith.constant dense<0.000000e+00> : vector<16xf32>
    %165 = vector.multi_reduction <add>, %164, %cst_53 [1] : vector<16x32xf32> to vector<16xf32>
    %166 = vector.shape_cast %165 : vector<16xf32> to vector<16x1xf32>
    %cst_54 = arith.constant 3.200000e+01 : f32
    %167 = vector.broadcast %cst_54 : f32 to vector<16x1xf32>
    %168 = arith.divf %166, %167 : vector<16x1xf32>
    %cst_55 = arith.constant 9.99999996E-13 : f32
    %169 = vector.broadcast %cst_55 : f32 to vector<16x1xf32>
    %170 = arith.addf %168, %169 : vector<16x1xf32>
    %171 = math.rsqrt %170 : vector<16x1xf32>
    %172 = vector.broadcast %171 : vector<16x1xf32> to vector<16x32xf32>
    %173 = arith.mulf %163, %172 : vector<16x32xf32>
    %174 = vector.broadcast %156 : vector<1x32xf32> to vector<16x32xf32>
    %175 = arith.mulf %173, %174 : vector<16x32xf32>
    %176 = vector.broadcast %157 : vector<1x32xf32> to vector<16x32xf32>
    %177 = arith.addf %175, %176 : vector<16x32xf32>
    %c0_56 = arith.constant 0 : index
    %c128 = arith.constant 128 : index
    %178 = vector.load %arg2[%c0_56, %c128] : memref<32x192xf32, #tpu.memory_space<vmem>>, vector<32x64xf32>
    %cst_57 = arith.constant dense<0.000000e+00> : vector<16x64xf32>
    %179 = tpu.matmul %177, %178, %cst_57 {dimension_numbers = #tpu.dot_dimension_numbers<[1], [0], [0], [1], [0, 0, 1, 1], [], []>} : vector<16x32xf32>, vector<32x64xf32>, vector<16x64xf32> -> vector<16x64xf32>
    %180 = vector.extract_strided_slice %59 {offsets = [4, 0], sizes = [1, 64], strides = [1, 1]} : vector<8x128xf32> to vector<1x64xf32>
    %181 = vector.broadcast %180 : vector<1x64xf32> to vector<16x64xf32>
    %182 = arith.addf %179, %181 : vector<16x64xf32>
    %183 = arith.mulf %182, %182 : vector<16x64xf32>
    %184 = arith.mulf %182, %183 : vector<16x64xf32>
    %cst_58 = arith.constant 4.471500e-02 : f32
    %185 = vector.broadcast %cst_58 : f32 to vector<16x64xf32>
    %186 = arith.mulf %185, %184 : vector<16x64xf32>
    %187 = arith.addf %182, %186 : vector<16x64xf32>
    %cst_59 = arith.constant 0.797884583 : f32
    %188 = vector.broadcast %cst_59 : f32 to vector<16x64xf32>
    %189 = arith.mulf %188, %187 : vector<16x64xf32>
    %190 = math.tanh %189 : vector<16x64xf32>
    %cst_60 = arith.constant 1.000000e+00 : f32
    %191 = vector.broadcast %cst_60 : f32 to vector<16x64xf32>
    %192 = arith.addf %191, %190 : vector<16x64xf32>
    %cst_61 = arith.constant 5.000000e-01 : f32
    %193 = vector.broadcast %cst_61 : f32 to vector<16x64xf32>
    %194 = arith.mulf %193, %192 : vector<16x64xf32>
    %195 = arith.mulf %182, %194 : vector<16x64xf32>
    %cst_62 = arith.constant dense<0.000000e+00> : vector<16x32xf32>
    %196 = tpu.matmul %195, %58, %cst_62 {dimension_numbers = #tpu.dot_dimension_numbers<[1], [0], [0], [1], [0, 0, 1, 1], [], []>} : vector<16x64xf32>, vector<64x32xf32>, vector<16x32xf32> -> vector<16x32xf32>
    %197 = vector.extract_strided_slice %59 {offsets = [5, 0], sizes = [1, 32], strides = [1, 1]} : vector<8x128xf32> to vector<1x32xf32>
    %198 = vector.broadcast %197 : vector<1x32xf32> to vector<16x32xf32>
    %199 = arith.addf %196, %198 : vector<16x32xf32>
    %200 = arith.addf %199, %177 : vector<16x32xf32>
    %201 = vector.extract_strided_slice %59 {offsets = [6, 0], sizes = [1, 32], strides = [1, 1]} : vector<8x128xf32> to vector<1x32xf32>
    %202 = vector.extract_strided_slice %59 {offsets = [7, 0], sizes = [1, 32], strides = [1, 1]} : vector<8x128xf32> to vector<1x32xf32>
    %cst_63 = arith.constant dense<0.000000e+00> : vector<16xf32>
    %203 = vector.multi_reduction <add>, %200, %cst_63 [1] : vector<16x32xf32> to vector<16xf32>
    %204 = vector.shape_cast %203 : vector<16xf32> to vector<16x1xf32>
    %cst_64 = arith.constant 3.200000e+01 : f32
    %205 = vector.broadcast %cst_64 : f32 to vector<16x1xf32>
    %206 = arith.divf %204, %205 : vector<16x1xf32>
    %207 = vector.broadcast %206 : vector<16x1xf32> to vector<16x32xf32>
    %208 = arith.subf %200, %207 : vector<16x32xf32>
    %209 = arith.mulf %208, %208 : vector<16x32xf32>
    %cst_65 = arith.constant dense<0.000000e+00> : vector<16xf32>
    %210 = vector.multi_reduction <add>, %209, %cst_65 [1] : vector<16x32xf32> to vector<16xf32>
    %211 = vector.shape_cast %210 : vector<16xf32> to vector<16x1xf32>
    %cst_66 = arith.constant 3.200000e+01 : f32
    %212 = vector.broadcast %cst_66 : f32 to vector<16x1xf32>
    %213 = arith.divf %211, %212 : vector<16x1xf32>
    %cst_67 = arith.constant 9.99999996E-13 : f32
    %214 = vector.broadcast %cst_67 : f32 to vector<16x1xf32>
    %215 = arith.addf %213, %214 : vector<16x1xf32>
    %216 = math.rsqrt %215 : vector<16x1xf32>
    %217 = vector.broadcast %216 : vector<16x1xf32> to vector<16x32xf32>
    %218 = arith.mulf %208, %217 : vector<16x32xf32>
    %219 = vector.broadcast %201 : vector<1x32xf32> to vector<16x32xf32>
    %220 = arith.mulf %218, %219 : vector<16x32xf32>
    %221 = vector.broadcast %202 : vector<1x32xf32> to vector<16x32xf32>
    %222 = arith.addf %220, %221 : vector<16x32xf32>
    %c0_68 = arith.constant 0 : index
    %c0_69 = arith.constant 0 : index
    %223 = vector.load %arg6[%c0_68, %c0_69] : memref<64x32xf32, #tpu.memory_space<vmem>>, vector<64x32xf32>
    %c0_70 = arith.constant 0 : index
    %c0_71 = arith.constant 0 : index
    %224 = vector.load %arg7[%c0_70, %c0_71] : memref<13x128xf32, #tpu.memory_space<vmem>>, vector<13x128xf32>
    %c0_72 = arith.constant 0 : index
    %c0_73 = arith.constant 0 : index
    %225 = vector.load %arg5[%c0_72, %c0_73] : memref<32x320xf32, #tpu.memory_space<vmem>>, vector<32x96xf32>
    %cst_74 = arith.constant dense<0.000000e+00> : vector<16x96xf32>
    %226 = tpu.matmul %222, %225, %cst_74 {dimension_numbers = #tpu.dot_dimension_numbers<[1], [0], [0], [1], [0, 0, 1, 1], [], []>} : vector<16x32xf32>, vector<32x96xf32>, vector<16x96xf32> -> vector<16x96xf32>
    %227 = vector.extract_strided_slice %224 {offsets = [0, 0], sizes = [1, 96], strides = [1, 1]} : vector<13x128xf32> to vector<1x96xf32>
    %228 = vector.broadcast %227 : vector<1x96xf32> to vector<16x96xf32>
    %229 = arith.addf %226, %228 : vector<16x96xf32>
    %230 = vector.extract_strided_slice %229 {offsets = [0, 0], sizes = [16, 32], strides = [1, 1]} : vector<16x96xf32> to vector<16x32xf32>
    %231 = vector.extract_strided_slice %229 {offsets = [0, 32], sizes = [16, 32], strides = [1, 1]} : vector<16x96xf32> to vector<16x32xf32>
    %232 = vector.extract_strided_slice %229 {offsets = [0, 64], sizes = [16, 32], strides = [1, 1]} : vector<16x96xf32> to vector<16x32xf32>
    %c0_75 = arith.constant 0 : index
    %c96_76 = arith.constant 96 : index
    %233 = vector.load %arg5[%c0_75, %c96_76] : memref<32x320xf32, #tpu.memory_space<vmem>>, vector<32x32xf32>
    %234 = vector.extract_strided_slice %230 {offsets = [0, 0], sizes = [16, 8], strides = [1, 1]} : vector<16x32xf32> to vector<16x8xf32>
    %235 = vector.extract_strided_slice %231 {offsets = [0, 0], sizes = [16, 8], strides = [1, 1]} : vector<16x32xf32> to vector<16x8xf32>
    %236 = vector.extract_strided_slice %232 {offsets = [0, 0], sizes = [16, 8], strides = [1, 1]} : vector<16x32xf32> to vector<16x8xf32>
    %cst_77 = arith.constant dense<0.000000e+00> : vector<16x16xf32>
    %237 = tpu.matmul %234, %235, %cst_77 {dimension_numbers = #tpu.dot_dimension_numbers<[1], [1], [0], [0], [0, 0, 1, 0], [], []>} : vector<16x8xf32>, vector<16x8xf32>, vector<16x16xf32> -> vector<16x16xf32>
    %cst_78 = arith.constant 0.353553385 : f32
    %238 = vector.broadcast %cst_78 : f32 to vector<16x16xf32>
    %239 = arith.mulf %237, %238 : vector<16x16xf32>
    %240 = arith.addf %239, %29 : vector<16x16xf32>
    %cst_79 = arith.constant dense<0xFF800000> : vector<16xf32>
    %241 = vector.multi_reduction <maximumf>, %240, %cst_79 [1] : vector<16x16xf32> to vector<16xf32>
    %242 = vector.shape_cast %241 : vector<16xf32> to vector<16x1xf32>
    %243 = vector.broadcast %242 : vector<16x1xf32> to vector<16x16xf32>
    %244 = arith.subf %240, %243 : vector<16x16xf32>
    %245 = math.exp %244 : vector<16x16xf32>
    %cst_80 = arith.constant dense<0.000000e+00> : vector<16xf32>
    %246 = vector.multi_reduction <add>, %245, %cst_80 [1] : vector<16x16xf32> to vector<16xf32>
    %247 = vector.shape_cast %246 : vector<16xf32> to vector<16x1xf32>
    %248 = tpu.reciprocal %247 {approx = true} : vector<16x1xf32> -> vector<16x1xf32>
    %249 = vector.broadcast %248 : vector<16x1xf32> to vector<16x16xf32>
    %250 = arith.mulf %245, %249 : vector<16x16xf32>
    %cst_81 = arith.constant dense<0.000000e+00> : vector<16x8xf32>
    %251 = tpu.matmul %250, %236, %cst_81 {dimension_numbers = #tpu.dot_dimension_numbers<[1], [0], [0], [1], [0, 0, 1, 1], [], []>} : vector<16x16xf32>, vector<16x8xf32>, vector<16x8xf32> -> vector<16x8xf32>
    %252 = vector.extract_strided_slice %233 {offsets = [0, 0], sizes = [8, 32], strides = [1, 1]} : vector<32x32xf32> to vector<8x32xf32>
    %cst_82 = arith.constant dense<0.000000e+00> : vector<16x32xf32>
    %253 = tpu.matmul %251, %252, %cst_82 {dimension_numbers = #tpu.dot_dimension_numbers<[1], [0], [0], [1], [0, 0, 1, 1], [], []>} : vector<16x8xf32>, vector<8x32xf32>, vector<16x32xf32> -> vector<16x32xf32>
    %254 = vector.extract_strided_slice %230 {offsets = [0, 8], sizes = [16, 8], strides = [1, 1]} : vector<16x32xf32> to vector<16x8xf32>
    %255 = vector.extract_strided_slice %231 {offsets = [0, 8], sizes = [16, 8], strides = [1, 1]} : vector<16x32xf32> to vector<16x8xf32>
    %256 = vector.extract_strided_slice %232 {offsets = [0, 8], sizes = [16, 8], strides = [1, 1]} : vector<16x32xf32> to vector<16x8xf32>
    %cst_83 = arith.constant dense<0.000000e+00> : vector<16x16xf32>
    %257 = tpu.matmul %254, %255, %cst_83 {dimension_numbers = #tpu.dot_dimension_numbers<[1], [1], [0], [0], [0, 0, 1, 0], [], []>} : vector<16x8xf32>, vector<16x8xf32>, vector<16x16xf32> -> vector<16x16xf32>
    %cst_84 = arith.constant 0.353553385 : f32
    %258 = vector.broadcast %cst_84 : f32 to vector<16x16xf32>
    %259 = arith.mulf %257, %258 : vector<16x16xf32>
    %260 = arith.addf %259, %29 : vector<16x16xf32>
    %cst_85 = arith.constant dense<0xFF800000> : vector<16xf32>
    %261 = vector.multi_reduction <maximumf>, %260, %cst_85 [1] : vector<16x16xf32> to vector<16xf32>
    %262 = vector.shape_cast %261 : vector<16xf32> to vector<16x1xf32>
    %263 = vector.broadcast %262 : vector<16x1xf32> to vector<16x16xf32>
    %264 = arith.subf %260, %263 : vector<16x16xf32>
    %265 = math.exp %264 : vector<16x16xf32>
    %cst_86 = arith.constant dense<0.000000e+00> : vector<16xf32>
    %266 = vector.multi_reduction <add>, %265, %cst_86 [1] : vector<16x16xf32> to vector<16xf32>
    %267 = vector.shape_cast %266 : vector<16xf32> to vector<16x1xf32>
    %268 = tpu.reciprocal %267 {approx = true} : vector<16x1xf32> -> vector<16x1xf32>
    %269 = vector.broadcast %268 : vector<16x1xf32> to vector<16x16xf32>
    %270 = arith.mulf %265, %269 : vector<16x16xf32>
    %cst_87 = arith.constant dense<0.000000e+00> : vector<16x8xf32>
    %271 = tpu.matmul %270, %256, %cst_87 {dimension_numbers = #tpu.dot_dimension_numbers<[1], [0], [0], [1], [0, 0, 1, 1], [], []>} : vector<16x16xf32>, vector<16x8xf32>, vector<16x8xf32> -> vector<16x8xf32>
    %272 = vector.extract_strided_slice %233 {offsets = [8, 0], sizes = [8, 32], strides = [1, 1]} : vector<32x32xf32> to vector<8x32xf32>
    %cst_88 = arith.constant dense<0.000000e+00> : vector<16x32xf32>
    %273 = tpu.matmul %271, %272, %cst_88 {dimension_numbers = #tpu.dot_dimension_numbers<[1], [0], [0], [1], [0, 0, 1, 1], [], []>} : vector<16x8xf32>, vector<8x32xf32>, vector<16x32xf32> -> vector<16x32xf32>
    %274 = arith.addf %253, %273 : vector<16x32xf32>
    %275 = vector.extract_strided_slice %230 {offsets = [0, 16], sizes = [16, 8], strides = [1, 1]} : vector<16x32xf32> to vector<16x8xf32>
    %276 = vector.extract_strided_slice %231 {offsets = [0, 16], sizes = [16, 8], strides = [1, 1]} : vector<16x32xf32> to vector<16x8xf32>
    %277 = vector.extract_strided_slice %232 {offsets = [0, 16], sizes = [16, 8], strides = [1, 1]} : vector<16x32xf32> to vector<16x8xf32>
    %cst_89 = arith.constant dense<0.000000e+00> : vector<16x16xf32>
    %278 = tpu.matmul %275, %276, %cst_89 {dimension_numbers = #tpu.dot_dimension_numbers<[1], [1], [0], [0], [0, 0, 1, 0], [], []>} : vector<16x8xf32>, vector<16x8xf32>, vector<16x16xf32> -> vector<16x16xf32>
    %cst_90 = arith.constant 0.353553385 : f32
    %279 = vector.broadcast %cst_90 : f32 to vector<16x16xf32>
    %280 = arith.mulf %278, %279 : vector<16x16xf32>
    %281 = arith.addf %280, %29 : vector<16x16xf32>
    %cst_91 = arith.constant dense<0xFF800000> : vector<16xf32>
    %282 = vector.multi_reduction <maximumf>, %281, %cst_91 [1] : vector<16x16xf32> to vector<16xf32>
    %283 = vector.shape_cast %282 : vector<16xf32> to vector<16x1xf32>
    %284 = vector.broadcast %283 : vector<16x1xf32> to vector<16x16xf32>
    %285 = arith.subf %281, %284 : vector<16x16xf32>
    %286 = math.exp %285 : vector<16x16xf32>
    %cst_92 = arith.constant dense<0.000000e+00> : vector<16xf32>
    %287 = vector.multi_reduction <add>, %286, %cst_92 [1] : vector<16x16xf32> to vector<16xf32>
    %288 = vector.shape_cast %287 : vector<16xf32> to vector<16x1xf32>
    %289 = tpu.reciprocal %288 {approx = true} : vector<16x1xf32> -> vector<16x1xf32>
    %290 = vector.broadcast %289 : vector<16x1xf32> to vector<16x16xf32>
    %291 = arith.mulf %286, %290 : vector<16x16xf32>
    %cst_93 = arith.constant dense<0.000000e+00> : vector<16x8xf32>
    %292 = tpu.matmul %291, %277, %cst_93 {dimension_numbers = #tpu.dot_dimension_numbers<[1], [0], [0], [1], [0, 0, 1, 1], [], []>} : vector<16x16xf32>, vector<16x8xf32>, vector<16x8xf32> -> vector<16x8xf32>
    %293 = vector.extract_strided_slice %233 {offsets = [16, 0], sizes = [8, 32], strides = [1, 1]} : vector<32x32xf32> to vector<8x32xf32>
    %cst_94 = arith.constant dense<0.000000e+00> : vector<16x32xf32>
    %294 = tpu.matmul %292, %293, %cst_94 {dimension_numbers = #tpu.dot_dimension_numbers<[1], [0], [0], [1], [0, 0, 1, 1], [], []>} : vector<16x8xf32>, vector<8x32xf32>, vector<16x32xf32> -> vector<16x32xf32>
    %295 = arith.addf %274, %294 : vector<16x32xf32>
    %296 = vector.extract_strided_slice %230 {offsets = [0, 24], sizes = [16, 8], strides = [1, 1]} : vector<16x32xf32> to vector<16x8xf32>
    %297 = vector.extract_strided_slice %231 {offsets = [0, 24], sizes = [16, 8], strides = [1, 1]} : vector<16x32xf32> to vector<16x8xf32>
    %298 = vector.extract_strided_slice %232 {offsets = [0, 24], sizes = [16, 8], strides = [1, 1]} : vector<16x32xf32> to vector<16x8xf32>
    %cst_95 = arith.constant dense<0.000000e+00> : vector<16x16xf32>
    %299 = tpu.matmul %296, %297, %cst_95 {dimension_numbers = #tpu.dot_dimension_numbers<[1], [1], [0], [0], [0, 0, 1, 0], [], []>} : vector<16x8xf32>, vector<16x8xf32>, vector<16x16xf32> -> vector<16x16xf32>
    %cst_96 = arith.constant 0.353553385 : f32
    %300 = vector.broadcast %cst_96 : f32 to vector<16x16xf32>
    %301 = arith.mulf %299, %300 : vector<16x16xf32>
    %302 = arith.addf %301, %29 : vector<16x16xf32>
    %cst_97 = arith.constant dense<0xFF800000> : vector<16xf32>
    %303 = vector.multi_reduction <maximumf>, %302, %cst_97 [1] : vector<16x16xf32> to vector<16xf32>
    %304 = vector.shape_cast %303 : vector<16xf32> to vector<16x1xf32>
    %305 = vector.broadcast %304 : vector<16x1xf32> to vector<16x16xf32>
    %306 = arith.subf %302, %305 : vector<16x16xf32>
    %307 = math.exp %306 : vector<16x16xf32>
    %cst_98 = arith.constant dense<0.000000e+00> : vector<16xf32>
    %308 = vector.multi_reduction <add>, %307, %cst_98 [1] : vector<16x16xf32> to vector<16xf32>
    %309 = vector.shape_cast %308 : vector<16xf32> to vector<16x1xf32>
    %310 = tpu.reciprocal %309 {approx = true} : vector<16x1xf32> -> vector<16x1xf32>
    %311 = vector.broadcast %310 : vector<16x1xf32> to vector<16x16xf32>
    %312 = arith.mulf %307, %311 : vector<16x16xf32>
    %cst_99 = arith.constant dense<0.000000e+00> : vector<16x8xf32>
    %313 = tpu.matmul %312, %298, %cst_99 {dimension_numbers = #tpu.dot_dimension_numbers<[1], [0], [0], [1], [0, 0, 1, 1], [], []>} : vector<16x16xf32>, vector<16x8xf32>, vector<16x8xf32> -> vector<16x8xf32>
    %314 = vector.extract_strided_slice %233 {offsets = [24, 0], sizes = [8, 32], strides = [1, 1]} : vector<32x32xf32> to vector<8x32xf32>
    %cst_100 = arith.constant dense<0.000000e+00> : vector<16x32xf32>
    %315 = tpu.matmul %313, %314, %cst_100 {dimension_numbers = #tpu.dot_dimension_numbers<[1], [0], [0], [1], [0, 0, 1, 1], [], []>} : vector<16x8xf32>, vector<8x32xf32>, vector<16x32xf32> -> vector<16x32xf32>
    %316 = arith.addf %295, %315 : vector<16x32xf32>
    %317 = vector.extract_strided_slice %224 {offsets = [1, 0], sizes = [1, 32], strides = [1, 1]} : vector<13x128xf32> to vector<1x32xf32>
    %318 = vector.broadcast %317 : vector<1x32xf32> to vector<16x32xf32>
    %319 = arith.addf %316, %318 : vector<16x32xf32>
    %320 = arith.addf %319, %222 : vector<16x32xf32>
    %321 = vector.extract_strided_slice %224 {offsets = [2, 0], sizes = [1, 32], strides = [1, 1]} : vector<13x128xf32> to vector<1x32xf32>
    %322 = vector.extract_strided_slice %224 {offsets = [3, 0], sizes = [1, 32], strides = [1, 1]} : vector<13x128xf32> to vector<1x32xf32>
    %cst_101 = arith.constant dense<0.000000e+00> : vector<16xf32>
    %323 = vector.multi_reduction <add>, %320, %cst_101 [1] : vector<16x32xf32> to vector<16xf32>
    %324 = vector.shape_cast %323 : vector<16xf32> to vector<16x1xf32>
    %cst_102 = arith.constant 3.200000e+01 : f32
    %325 = vector.broadcast %cst_102 : f32 to vector<16x1xf32>
    %326 = arith.divf %324, %325 : vector<16x1xf32>
    %327 = vector.broadcast %326 : vector<16x1xf32> to vector<16x32xf32>
    %328 = arith.subf %320, %327 : vector<16x32xf32>
    %329 = arith.mulf %328, %328 : vector<16x32xf32>
    %cst_103 = arith.constant dense<0.000000e+00> : vector<16xf32>
    %330 = vector.multi_reduction <add>, %329, %cst_103 [1] : vector<16x32xf32> to vector<16xf32>
    %331 = vector.shape_cast %330 : vector<16xf32> to vector<16x1xf32>
    %cst_104 = arith.constant 3.200000e+01 : f32
    %332 = vector.broadcast %cst_104 : f32 to vector<16x1xf32>
    %333 = arith.divf %331, %332 : vector<16x1xf32>
    %cst_105 = arith.constant 9.99999996E-13 : f32
    %334 = vector.broadcast %cst_105 : f32 to vector<16x1xf32>
    %335 = arith.addf %333, %334 : vector<16x1xf32>
    %336 = math.rsqrt %335 : vector<16x1xf32>
    %337 = vector.broadcast %336 : vector<16x1xf32> to vector<16x32xf32>
    %338 = arith.mulf %328, %337 : vector<16x32xf32>
    %339 = vector.broadcast %321 : vector<1x32xf32> to vector<16x32xf32>
    %340 = arith.mulf %338, %339 : vector<16x32xf32>
    %341 = vector.broadcast %322 : vector<1x32xf32> to vector<16x32xf32>
    %342 = arith.addf %340, %341 : vector<16x32xf32>
    %c0_106 = arith.constant 0 : index
    %c128_107 = arith.constant 128 : index
    %343 = vector.load %arg5[%c0_106, %c128_107] : memref<32x320xf32, #tpu.memory_space<vmem>>, vector<32x32xf32>
    %cst_108 = arith.constant dense<0.000000e+00> : vector<16x32xf32>
    %344 = tpu.matmul %342, %343, %cst_108 {dimension_numbers = #tpu.dot_dimension_numbers<[1], [0], [0], [1], [0, 0, 1, 1], [], []>} : vector<16x32xf32>, vector<32x32xf32>, vector<16x32xf32> -> vector<16x32xf32>
    %345 = vector.extract_strided_slice %224 {offsets = [4, 0], sizes = [1, 32], strides = [1, 1]} : vector<13x128xf32> to vector<1x32xf32>
    %346 = vector.broadcast %345 : vector<1x32xf32> to vector<16x32xf32>
    %347 = arith.addf %344, %346 : vector<16x32xf32>
    %c0_109 = arith.constant 0 : index
    %c160 = arith.constant 160 : index
    %348 = vector.load %arg5[%c0_109, %c160] : memref<32x320xf32, #tpu.memory_space<vmem>>, vector<32x64xf32>
    %cst_110 = arith.constant dense<0.000000e+00> : vector<16x64xf32>
    %349 = tpu.matmul %1, %348, %cst_110 {dimension_numbers = #tpu.dot_dimension_numbers<[1], [0], [0], [1], [0, 0, 1, 1], [], []>} : vector<16x32xf32>, vector<32x64xf32>, vector<16x64xf32> -> vector<16x64xf32>
    %350 = vector.extract_strided_slice %349 {offsets = [0, 0], sizes = [16, 32], strides = [1, 1]} : vector<16x64xf32> to vector<16x32xf32>
    %351 = vector.extract_strided_slice %224 {offsets = [5, 0], sizes = [1, 32], strides = [1, 1]} : vector<13x128xf32> to vector<1x32xf32>
    %352 = vector.broadcast %351 : vector<1x32xf32> to vector<16x32xf32>
    %353 = arith.addf %350, %352 : vector<16x32xf32>
    %354 = vector.extract_strided_slice %349 {offsets = [0, 32], sizes = [16, 32], strides = [1, 1]} : vector<16x64xf32> to vector<16x32xf32>
    %c0_111 = arith.constant 0 : index
    %c224 = arith.constant 224 : index
    %355 = vector.load %arg5[%c0_111, %c224] : memref<32x320xf32, #tpu.memory_space<vmem>>, vector<32x32xf32>
    %356 = vector.extract_strided_slice %347 {offsets = [0, 0], sizes = [16, 8], strides = [1, 1]} : vector<16x32xf32> to vector<16x8xf32>
    %357 = vector.extract_strided_slice %353 {offsets = [0, 0], sizes = [16, 8], strides = [1, 1]} : vector<16x32xf32> to vector<16x8xf32>
    %358 = vector.extract_strided_slice %354 {offsets = [0, 0], sizes = [16, 8], strides = [1, 1]} : vector<16x32xf32> to vector<16x8xf32>
    %cst_112 = arith.constant dense<0.000000e+00> : vector<16x16xf32>
    %359 = tpu.matmul %356, %357, %cst_112 {dimension_numbers = #tpu.dot_dimension_numbers<[1], [1], [0], [0], [0, 0, 1, 0], [], []>} : vector<16x8xf32>, vector<16x8xf32>, vector<16x16xf32> -> vector<16x16xf32>
    %cst_113 = arith.constant 0.353553385 : f32
    %360 = vector.broadcast %cst_113 : f32 to vector<16x16xf32>
    %361 = arith.mulf %359, %360 : vector<16x16xf32>
    %362 = arith.addf %361, %57 : vector<16x16xf32>
    %cst_114 = arith.constant dense<0xFF800000> : vector<16xf32>
    %363 = vector.multi_reduction <maximumf>, %362, %cst_114 [1] : vector<16x16xf32> to vector<16xf32>
    %364 = vector.shape_cast %363 : vector<16xf32> to vector<16x1xf32>
    %365 = vector.broadcast %364 : vector<16x1xf32> to vector<16x16xf32>
    %366 = arith.subf %362, %365 : vector<16x16xf32>
    %367 = math.exp %366 : vector<16x16xf32>
    %cst_115 = arith.constant dense<0.000000e+00> : vector<16xf32>
    %368 = vector.multi_reduction <add>, %367, %cst_115 [1] : vector<16x16xf32> to vector<16xf32>
    %369 = vector.shape_cast %368 : vector<16xf32> to vector<16x1xf32>
    %370 = tpu.reciprocal %369 {approx = true} : vector<16x1xf32> -> vector<16x1xf32>
    %371 = vector.broadcast %370 : vector<16x1xf32> to vector<16x16xf32>
    %372 = arith.mulf %367, %371 : vector<16x16xf32>
    %cst_116 = arith.constant dense<0.000000e+00> : vector<16x8xf32>
    %373 = tpu.matmul %372, %358, %cst_116 {dimension_numbers = #tpu.dot_dimension_numbers<[1], [0], [0], [1], [0, 0, 1, 1], [], []>} : vector<16x16xf32>, vector<16x8xf32>, vector<16x8xf32> -> vector<16x8xf32>
    %374 = vector.extract_strided_slice %355 {offsets = [0, 0], sizes = [8, 32], strides = [1, 1]} : vector<32x32xf32> to vector<8x32xf32>
    %cst_117 = arith.constant dense<0.000000e+00> : vector<16x32xf32>
    %375 = tpu.matmul %373, %374, %cst_117 {dimension_numbers = #tpu.dot_dimension_numbers<[1], [0], [0], [1], [0, 0, 1, 1], [], []>} : vector<16x8xf32>, vector<8x32xf32>, vector<16x32xf32> -> vector<16x32xf32>
    %376 = vector.extract_strided_slice %347 {offsets = [0, 8], sizes = [16, 8], strides = [1, 1]} : vector<16x32xf32> to vector<16x8xf32>
    %377 = vector.extract_strided_slice %353 {offsets = [0, 8], sizes = [16, 8], strides = [1, 1]} : vector<16x32xf32> to vector<16x8xf32>
    %378 = vector.extract_strided_slice %354 {offsets = [0, 8], sizes = [16, 8], strides = [1, 1]} : vector<16x32xf32> to vector<16x8xf32>
    %cst_118 = arith.constant dense<0.000000e+00> : vector<16x16xf32>
    %379 = tpu.matmul %376, %377, %cst_118 {dimension_numbers = #tpu.dot_dimension_numbers<[1], [1], [0], [0], [0, 0, 1, 0], [], []>} : vector<16x8xf32>, vector<16x8xf32>, vector<16x16xf32> -> vector<16x16xf32>
    %cst_119 = arith.constant 0.353553385 : f32
    %380 = vector.broadcast %cst_119 : f32 to vector<16x16xf32>
    %381 = arith.mulf %379, %380 : vector<16x16xf32>
    %382 = arith.addf %381, %57 : vector<16x16xf32>
    %cst_120 = arith.constant dense<0xFF800000> : vector<16xf32>
    %383 = vector.multi_reduction <maximumf>, %382, %cst_120 [1] : vector<16x16xf32> to vector<16xf32>
    %384 = vector.shape_cast %383 : vector<16xf32> to vector<16x1xf32>
    %385 = vector.broadcast %384 : vector<16x1xf32> to vector<16x16xf32>
    %386 = arith.subf %382, %385 : vector<16x16xf32>
    %387 = math.exp %386 : vector<16x16xf32>
    %cst_121 = arith.constant dense<0.000000e+00> : vector<16xf32>
    %388 = vector.multi_reduction <add>, %387, %cst_121 [1] : vector<16x16xf32> to vector<16xf32>
    %389 = vector.shape_cast %388 : vector<16xf32> to vector<16x1xf32>
    %390 = tpu.reciprocal %389 {approx = true} : vector<16x1xf32> -> vector<16x1xf32>
    %391 = vector.broadcast %390 : vector<16x1xf32> to vector<16x16xf32>
    %392 = arith.mulf %387, %391 : vector<16x16xf32>
    %cst_122 = arith.constant dense<0.000000e+00> : vector<16x8xf32>
    %393 = tpu.matmul %392, %378, %cst_122 {dimension_numbers = #tpu.dot_dimension_numbers<[1], [0], [0], [1], [0, 0, 1, 1], [], []>} : vector<16x16xf32>, vector<16x8xf32>, vector<16x8xf32> -> vector<16x8xf32>
    %394 = vector.extract_strided_slice %355 {offsets = [8, 0], sizes = [8, 32], strides = [1, 1]} : vector<32x32xf32> to vector<8x32xf32>
    %cst_123 = arith.constant dense<0.000000e+00> : vector<16x32xf32>
    %395 = tpu.matmul %393, %394, %cst_123 {dimension_numbers = #tpu.dot_dimension_numbers<[1], [0], [0], [1], [0, 0, 1, 1], [], []>} : vector<16x8xf32>, vector<8x32xf32>, vector<16x32xf32> -> vector<16x32xf32>
    %396 = arith.addf %375, %395 : vector<16x32xf32>
    %397 = vector.extract_strided_slice %347 {offsets = [0, 16], sizes = [16, 8], strides = [1, 1]} : vector<16x32xf32> to vector<16x8xf32>
    %398 = vector.extract_strided_slice %353 {offsets = [0, 16], sizes = [16, 8], strides = [1, 1]} : vector<16x32xf32> to vector<16x8xf32>
    %399 = vector.extract_strided_slice %354 {offsets = [0, 16], sizes = [16, 8], strides = [1, 1]} : vector<16x32xf32> to vector<16x8xf32>
    %cst_124 = arith.constant dense<0.000000e+00> : vector<16x16xf32>
    %400 = tpu.matmul %397, %398, %cst_124 {dimension_numbers = #tpu.dot_dimension_numbers<[1], [1], [0], [0], [0, 0, 1, 0], [], []>} : vector<16x8xf32>, vector<16x8xf32>, vector<16x16xf32> -> vector<16x16xf32>
    %cst_125 = arith.constant 0.353553385 : f32
    %401 = vector.broadcast %cst_125 : f32 to vector<16x16xf32>
    %402 = arith.mulf %400, %401 : vector<16x16xf32>
    %403 = arith.addf %402, %57 : vector<16x16xf32>
    %cst_126 = arith.constant dense<0xFF800000> : vector<16xf32>
    %404 = vector.multi_reduction <maximumf>, %403, %cst_126 [1] : vector<16x16xf32> to vector<16xf32>
    %405 = vector.shape_cast %404 : vector<16xf32> to vector<16x1xf32>
    %406 = vector.broadcast %405 : vector<16x1xf32> to vector<16x16xf32>
    %407 = arith.subf %403, %406 : vector<16x16xf32>
    %408 = math.exp %407 : vector<16x16xf32>
    %cst_127 = arith.constant dense<0.000000e+00> : vector<16xf32>
    %409 = vector.multi_reduction <add>, %408, %cst_127 [1] : vector<16x16xf32> to vector<16xf32>
    %410 = vector.shape_cast %409 : vector<16xf32> to vector<16x1xf32>
    %411 = tpu.reciprocal %410 {approx = true} : vector<16x1xf32> -> vector<16x1xf32>
    %412 = vector.broadcast %411 : vector<16x1xf32> to vector<16x16xf32>
    %413 = arith.mulf %408, %412 : vector<16x16xf32>
    %cst_128 = arith.constant dense<0.000000e+00> : vector<16x8xf32>
    %414 = tpu.matmul %413, %399, %cst_128 {dimension_numbers = #tpu.dot_dimension_numbers<[1], [0], [0], [1], [0, 0, 1, 1], [], []>} : vector<16x16xf32>, vector<16x8xf32>, vector<16x8xf32> -> vector<16x8xf32>
    %415 = vector.extract_strided_slice %355 {offsets = [16, 0], sizes = [8, 32], strides = [1, 1]} : vector<32x32xf32> to vector<8x32xf32>
    %cst_129 = arith.constant dense<0.000000e+00> : vector<16x32xf32>
    %416 = tpu.matmul %414, %415, %cst_129 {dimension_numbers = #tpu.dot_dimension_numbers<[1], [0], [0], [1], [0, 0, 1, 1], [], []>} : vector<16x8xf32>, vector<8x32xf32>, vector<16x32xf32> -> vector<16x32xf32>
    %417 = arith.addf %396, %416 : vector<16x32xf32>
    %418 = vector.extract_strided_slice %347 {offsets = [0, 24], sizes = [16, 8], strides = [1, 1]} : vector<16x32xf32> to vector<16x8xf32>
    %419 = vector.extract_strided_slice %353 {offsets = [0, 24], sizes = [16, 8], strides = [1, 1]} : vector<16x32xf32> to vector<16x8xf32>
    %420 = vector.extract_strided_slice %354 {offsets = [0, 24], sizes = [16, 8], strides = [1, 1]} : vector<16x32xf32> to vector<16x8xf32>
    %cst_130 = arith.constant dense<0.000000e+00> : vector<16x16xf32>
    %421 = tpu.matmul %418, %419, %cst_130 {dimension_numbers = #tpu.dot_dimension_numbers<[1], [1], [0], [0], [0, 0, 1, 0], [], []>} : vector<16x8xf32>, vector<16x8xf32>, vector<16x16xf32> -> vector<16x16xf32>
    %cst_131 = arith.constant 0.353553385 : f32
    %422 = vector.broadcast %cst_131 : f32 to vector<16x16xf32>
    %423 = arith.mulf %421, %422 : vector<16x16xf32>
    %424 = arith.addf %423, %57 : vector<16x16xf32>
    %cst_132 = arith.constant dense<0xFF800000> : vector<16xf32>
    %425 = vector.multi_reduction <maximumf>, %424, %cst_132 [1] : vector<16x16xf32> to vector<16xf32>
    %426 = vector.shape_cast %425 : vector<16xf32> to vector<16x1xf32>
    %427 = vector.broadcast %426 : vector<16x1xf32> to vector<16x16xf32>
    %428 = arith.subf %424, %427 : vector<16x16xf32>
    %429 = math.exp %428 : vector<16x16xf32>
    %cst_133 = arith.constant dense<0.000000e+00> : vector<16xf32>
    %430 = vector.multi_reduction <add>, %429, %cst_133 [1] : vector<16x16xf32> to vector<16xf32>
    %431 = vector.shape_cast %430 : vector<16xf32> to vector<16x1xf32>
    %432 = tpu.reciprocal %431 {approx = true} : vector<16x1xf32> -> vector<16x1xf32>
    %433 = vector.broadcast %432 : vector<16x1xf32> to vector<16x16xf32>
    %434 = arith.mulf %429, %433 : vector<16x16xf32>
    %cst_134 = arith.constant dense<0.000000e+00> : vector<16x8xf32>
    %435 = tpu.matmul %434, %420, %cst_134 {dimension_numbers = #tpu.dot_dimension_numbers<[1], [0], [0], [1], [0, 0, 1, 1], [], []>} : vector<16x16xf32>, vector<16x8xf32>, vector<16x8xf32> -> vector<16x8xf32>
    %436 = vector.extract_strided_slice %355 {offsets = [24, 0], sizes = [8, 32], strides = [1, 1]} : vector<32x32xf32> to vector<8x32xf32>
    %cst_135 = arith.constant dense<0.000000e+00> : vector<16x32xf32>
    %437 = tpu.matmul %435, %436, %cst_135 {dimension_numbers = #tpu.dot_dimension_numbers<[1], [0], [0], [1], [0, 0, 1, 1], [], []>} : vector<16x8xf32>, vector<8x32xf32>, vector<16x32xf32> -> vector<16x32xf32>
    %438 = arith.addf %417, %437 : vector<16x32xf32>
    %439 = vector.extract_strided_slice %224 {offsets = [6, 0], sizes = [1, 32], strides = [1, 1]} : vector<13x128xf32> to vector<1x32xf32>
    %440 = vector.broadcast %439 : vector<1x32xf32> to vector<16x32xf32>
    %441 = arith.addf %438, %440 : vector<16x32xf32>
    %442 = arith.addf %441, %342 : vector<16x32xf32>
    %443 = vector.extract_strided_slice %224 {offsets = [7, 0], sizes = [1, 32], strides = [1, 1]} : vector<13x128xf32> to vector<1x32xf32>
    %444 = vector.extract_strided_slice %224 {offsets = [8, 0], sizes = [1, 32], strides = [1, 1]} : vector<13x128xf32> to vector<1x32xf32>
    %cst_136 = arith.constant dense<0.000000e+00> : vector<16xf32>
    %445 = vector.multi_reduction <add>, %442, %cst_136 [1] : vector<16x32xf32> to vector<16xf32>
    %446 = vector.shape_cast %445 : vector<16xf32> to vector<16x1xf32>
    %cst_137 = arith.constant 3.200000e+01 : f32
    %447 = vector.broadcast %cst_137 : f32 to vector<16x1xf32>
    %448 = arith.divf %446, %447 : vector<16x1xf32>
    %449 = vector.broadcast %448 : vector<16x1xf32> to vector<16x32xf32>
    %450 = arith.subf %442, %449 : vector<16x32xf32>
    %451 = arith.mulf %450, %450 : vector<16x32xf32>
    %cst_138 = arith.constant dense<0.000000e+00> : vector<16xf32>
    %452 = vector.multi_reduction <add>, %451, %cst_138 [1] : vector<16x32xf32> to vector<16xf32>
    %453 = vector.shape_cast %452 : vector<16xf32> to vector<16x1xf32>
    %cst_139 = arith.constant 3.200000e+01 : f32
    %454 = vector.broadcast %cst_139 : f32 to vector<16x1xf32>
    %455 = arith.divf %453, %454 : vector<16x1xf32>
    %cst_140 = arith.constant 9.99999996E-13 : f32
    %456 = vector.broadcast %cst_140 : f32 to vector<16x1xf32>
    %457 = arith.addf %455, %456 : vector<16x1xf32>
    %458 = math.rsqrt %457 : vector<16x1xf32>
    %459 = vector.broadcast %458 : vector<16x1xf32> to vector<16x32xf32>
    %460 = arith.mulf %450, %459 : vector<16x32xf32>
    %461 = vector.broadcast %443 : vector<1x32xf32> to vector<16x32xf32>
    %462 = arith.mulf %460, %461 : vector<16x32xf32>
    %463 = vector.broadcast %444 : vector<1x32xf32> to vector<16x32xf32>
    %464 = arith.addf %462, %463 : vector<16x32xf32>
    %c0_141 = arith.constant 0 : index
    %c256 = arith.constant 256 : index
    %465 = vector.load %arg5[%c0_141, %c256] : memref<32x320xf32, #tpu.memory_space<vmem>>, vector<32x64xf32>
    %cst_142 = arith.constant dense<0.000000e+00> : vector<16x64xf32>
    %466 = tpu.matmul %464, %465, %cst_142 {dimension_numbers = #tpu.dot_dimension_numbers<[1], [0], [0], [1], [0, 0, 1, 1], [], []>} : vector<16x32xf32>, vector<32x64xf32>, vector<16x64xf32> -> vector<16x64xf32>
    %467 = vector.extract_strided_slice %224 {offsets = [9, 0], sizes = [1, 64], strides = [1, 1]} : vector<13x128xf32> to vector<1x64xf32>
    %468 = vector.broadcast %467 : vector<1x64xf32> to vector<16x64xf32>
    %469 = arith.addf %466, %468 : vector<16x64xf32>
    %470 = arith.mulf %469, %469 : vector<16x64xf32>
    %471 = arith.mulf %469, %470 : vector<16x64xf32>
    %cst_143 = arith.constant 4.471500e-02 : f32
    %472 = vector.broadcast %cst_143 : f32 to vector<16x64xf32>
    %473 = arith.mulf %472, %471 : vector<16x64xf32>
    %474 = arith.addf %469, %473 : vector<16x64xf32>
    %cst_144 = arith.constant 0.797884583 : f32
    %475 = vector.broadcast %cst_144 : f32 to vector<16x64xf32>
    %476 = arith.mulf %475, %474 : vector<16x64xf32>
    %477 = math.tanh %476 : vector<16x64xf32>
    %cst_145 = arith.constant 1.000000e+00 : f32
    %478 = vector.broadcast %cst_145 : f32 to vector<16x64xf32>
    %479 = arith.addf %478, %477 : vector<16x64xf32>
    %cst_146 = arith.constant 5.000000e-01 : f32
    %480 = vector.broadcast %cst_146 : f32 to vector<16x64xf32>
    %481 = arith.mulf %480, %479 : vector<16x64xf32>
    %482 = arith.mulf %469, %481 : vector<16x64xf32>
    %cst_147 = arith.constant dense<0.000000e+00> : vector<16x32xf32>
    %483 = tpu.matmul %482, %223, %cst_147 {dimension_numbers = #tpu.dot_dimension_numbers<[1], [0], [0], [1], [0, 0, 1, 1], [], []>} : vector<16x64xf32>, vector<64x32xf32>, vector<16x32xf32> -> vector<16x32xf32>
    %484 = vector.extract_strided_slice %224 {offsets = [10, 0], sizes = [1, 32], strides = [1, 1]} : vector<13x128xf32> to vector<1x32xf32>
    %485 = vector.broadcast %484 : vector<1x32xf32> to vector<16x32xf32>
    %486 = arith.addf %483, %485 : vector<16x32xf32>
    %487 = arith.addf %486, %464 : vector<16x32xf32>
    %488 = vector.extract_strided_slice %224 {offsets = [11, 0], sizes = [1, 32], strides = [1, 1]} : vector<13x128xf32> to vector<1x32xf32>
    %489 = vector.extract_strided_slice %224 {offsets = [12, 0], sizes = [1, 32], strides = [1, 1]} : vector<13x128xf32> to vector<1x32xf32>
    %cst_148 = arith.constant dense<0.000000e+00> : vector<16xf32>
    %490 = vector.multi_reduction <add>, %487, %cst_148 [1] : vector<16x32xf32> to vector<16xf32>
    %491 = vector.shape_cast %490 : vector<16xf32> to vector<16x1xf32>
    %cst_149 = arith.constant 3.200000e+01 : f32
    %492 = vector.broadcast %cst_149 : f32 to vector<16x1xf32>
    %493 = arith.divf %491, %492 : vector<16x1xf32>
    %494 = vector.broadcast %493 : vector<16x1xf32> to vector<16x32xf32>
    %495 = arith.subf %487, %494 : vector<16x32xf32>
    %496 = arith.mulf %495, %495 : vector<16x32xf32>
    %cst_150 = arith.constant dense<0.000000e+00> : vector<16xf32>
    %497 = vector.multi_reduction <add>, %496, %cst_150 [1] : vector<16x32xf32> to vector<16xf32>
    %498 = vector.shape_cast %497 : vector<16xf32> to vector<16x1xf32>
    %cst_151 = arith.constant 3.200000e+01 : f32
    %499 = vector.broadcast %cst_151 : f32 to vector<16x1xf32>
    %500 = arith.divf %498, %499 : vector<16x1xf32>
    %cst_152 = arith.constant 9.99999996E-13 : f32
    %501 = vector.broadcast %cst_152 : f32 to vector<16x1xf32>
    %502 = arith.addf %500, %501 : vector<16x1xf32>
    %503 = math.rsqrt %502 : vector<16x1xf32>
    %504 = vector.broadcast %503 : vector<16x1xf32> to vector<16x32xf32>
    %505 = arith.mulf %495, %504 : vector<16x32xf32>
    %506 = vector.broadcast %488 : vector<1x32xf32> to vector<16x32xf32>
    %507 = arith.mulf %505, %506 : vector<16x32xf32>
    %508 = vector.broadcast %489 : vector<1x32xf32> to vector<16x32xf32>
    %509 = arith.addf %507, %508 : vector<16x32xf32>
    %c0_153 = arith.constant 0 : index
    %c0_154 = arith.constant 0 : index
    %510 = vector.load %arg8[%c0_153, %c0_154] : memref<16x32xf32, #tpu.memory_space<vmem>>, vector<16x32xf32>
    tpu.vector_store %arg8[%c0_153, %c0_154], %509 {strides = array<i32>} : memref<16x32xf32, #tpu.memory_space<vmem>>, vector<16x32xf32>,
    return
  }
}

</mosaic_0001>

<bundles_post_ra>
// kernel: tdo_decoder_forward.1
= control target key start
LH: loop header
LB: loop body
LE: loop exit
PB: predicated region body
PF: predicated region fallthrough
CT: control target
= control target key end

     0   :  { %vm84_vm0 = vcmask 261120   ;;  %s6418_s0 = inlined_call_operand.vmem [shape: f32[16,32], index: 0, kind: input, shape index: {}]   ;;  %s6419_s1 = inlined_call_operand.vmem [shape: f32[16,32], index: 1, kind: input, shape index: {}]   ;;  %s6420_s2 = inlined_call_operand.vmem [shape: f32[32,192], index: 2, kind: input, shape index: {}]   ;;  %s6421_s3 = inlined_call_operand.vmem [shape: f32[64,32], index: 3, kind: input, shape index: {}]   ;;  %s6422_s4 = inlined_call_operand.vmem [shape: f32[8,128], index: 4, kind: input, shape index: {}]   ;;  %s6423_s5 = inlined_call_operand.vmem [shape: f32[32,320], index: 5, kind: input, shape index: {}]   ;;  %s6424_s6 = inlined_call_operand.vmem [shape: f32[64,32], index: 6, kind: input, shape index: {}]   ;;  %s6425_s7 = inlined_call_operand.vmem [shape: f32[13,128], index: 7, kind: input, shape index: {}]   ;;  %s6426_s8 = inlined_call_operand.hbm [shape: f32[16,32], index: 8, kind: output, shape index: {}]  }
   0x1   :  { %v5755_v0 = vld [vmem:[%s6420_s2] sm:$0xff]  ;;  %v5760_v1 = vld [vmem:[%s6420_s2 + $0x10] sm:$0xff] }
   0x2   :  { %v5765_v2 = vld [vmem:[%s6420_s2 + $0x20] sm:$0xff]  ;;  %v5183_v3 = vpack.c.bf16 %v5760_v1, %v5755_v0  ;;  %v5772_v4 = vld [vmem:[%s6420_s2 + $0x30] sm:$0xff] }
   0x3   :  { %v5777_v5 = vld [vmem:[%s6418_s0] sm:$0xff]  ;;  %v5187_v6 = vpack.c.bf16 %v5772_v4, %v5765_v2 }
   0x4   :  { %4859 = vmatprep.mubr.msk.f32.mxu1 %vm84_vm0, %v5777_v5 }
   0x5   :  { %13 = vsyncpa [#allocation3], 0  ;;  %5184 = vmatprep.subr.bf16.mxu1 %v5183_v3  ;;  %v5786_v7 = vld [vmem:[%s6418_s0 + $0x8] sm:$0xff]  ;;  %v37_v8 = vlaneseq  ;;  %v5798_v11 = vld [vmem:[%s6422_s4] sm:$0xff]  ;;  %vm172_vm1 = vcmask 64512   ;;  %s5691_s0 = smov 120  }
   0x6   :  { %5186 = vmatpush3.bf16.msra.mxu1 %v5183_v3  ;;  %s5692_s4 = smov 96   ;;  %s5693_s19 = smov 88   ;;  %vm5828_vm2 = vmpackc.low %vm172_vm1, %vm172_vm1  ;;  %v5696_v37 = vmov -1e+09   ;;  %vm260_vm7 = vcmask 130048   ;;  %vm1484_vm8 = vcmask 523264  }
   0x7   :  { %5188 = vmatprep.subr.bf16.mxu1 %v5187_v6  ;;  %v5790_v9 = vshrl.u32 %v37_v8, 7  ;;  %s5694_s20 = smov 112   ;;  %s5695_s21 = smov 80   ;;  %v38_v35 = vand.u32 127, %v37_v8 }
   0x8   :  { %s5697_s22 = smov 56   ;;  %s5698_s23 = smov 72  }
   0x9   :  { %v5793_v10 = vsub.s32 0, %v5790_v9  ;;  %vm57_vm3 = vcmp.ge.s32.totalorder %v38_v35, 8  ;;  %vm60_vm4 = vcmp.lt.s32.totalorder %v38_v35, 16  ;;  %vm48_vm6 = vcmp.lt.s32.totalorder %v38_v35, 8  ;;  %s5699_s24 = smov 64   ;;  %s5700_s25 = smov 104  }
   0xa   :  { %5190 = vmatpush3.bf16.msra.mxu1 %v5187_v6  ;;  %vm62_vm5 = vmand %vm57_vm3, %vm60_vm4  ;;  %v5852_v41 = vsel %vm48_vm6, 0.0, %v5696_v37  ;;  %s5701_s26 = smov 32   ;;  %s5702_s27 = smov 48  }
   0xb   :  { %v83_v12 = vrot.slane %v5798_v11, %v5793_v10  ;;  %v5850_v38 = vsel %vm62_vm5, 0.0, %v5696_v37  ;;  %s5703_s28 = smov 40  }
   0xd   :  { %4860 = vmatmul.mubr.msk.f32.vlgmr.msra.gmra.mrb[0].mxu1 %vm84_vm0, %v5786_v7 }
  0xe0   :  { %v4861_v13 = vpop.f32.mrb[0].mxu1 }
  0xe1   :  { %v5802_v14 = vadd.f32 %v4861_v13, %v83_v12  ;;  %v157_v15 = vpop.f32.mrb[1].mxu1 }
  0xe2   :  { %v5804_v16 = vadd.f32 %v157_v15, %v83_v12 }
  0xe4   :  { %370 = vrot.lane.b32.xlu1 %v5804_v16, %s5691_s0  ;;  %4866 = vmatprep.mubr.msk.f32.mxu1 %vm172_vm1, %v5804_v16  ;;  %v5812_v17 = vpack.i.bf16 %v5802_v14, %v5804_v16 }
  0xe6   :  { %5418 = vrot.lane.b32.xlu0 %v5812_v17, %s5692_s4 }
  0xe8   :  { %372 = vrot.lane.b32.xlu1 %v5802_v14, %s5691_s0 }
  0xea   :  { %5423 = vrot.lane.b32.xlu0 %v5812_v17, %s5693_s19 }
  0xec   :  { %744 = vrot.lane.b32.xlu1 %v5804_v16, %s5694_s20 }
  0xee   :  { %5428 = vrot.lane.b32.xlu0 %v5812_v17, %s5695_s21 }
  0xf2   :  { %746 = vrot.lane.b32.xlu0 %v5802_v14, %s5694_s20 }
 0x156   :  { %v371_v28 = vpop.permute.xlu1 %370 }
 0x158   :  { %v5419_v18 = vpop.permute.xlu0 %5418 }
 0x159   :  { %v5421_v19 = vunpack.i.h.bf16 %v5419_v18  ;;  %v5420_v20 = vunpack.i.l.bf16 %v5419_v18 }
 0x15a   :  { %v373_v32 = vpop.permute.xlu1 %372 }
 0x15b   :  { %v5191_v22 = vpack.c.bf16 %v5421_v19, %v5420_v20 }
 0x15c   :  { %v5424_v23 = vpop.permute.xlu0 %5423 }
 0x15d   :  { %v5426_v24 = vunpack.i.h.bf16 %v5424_v23  ;;  %v5425_v25 = vunpack.i.l.bf16 %v5424_v23  ;;  %5193 = vmatprep.subr.msk.bf16.mxu1 %vm5828_vm2, %v5191_v22 }
 0x15e   :  { %5196 = vmatpush3.bf16.xpose.msk.msra.mxu1 %vm5828_vm2, %v5191_v22  ;;  %v745_v33 = vpop.permute.xlu1 %744 }
 0x15f   :  { %v5201_v26 = vpack.c.bf16 %v5426_v24, %v5425_v25 }
 0x160   :  { %v5429_v27 = vpop.permute.xlu0 %5428 }
 0x161   :  { %v5431_v29 = vunpack.i.h.bf16 %v5429_v27  ;;  %v5430_v30 = vunpack.i.l.bf16 %v5429_v27  ;;  %5203 = vmatprep.subr.msk.bf16.mxu1 %vm5828_vm2, %v5201_v26 }
 0x163   :  { %v5211_v31 = vpack.c.bf16 %v5431_v29, %v5430_v30 }
 0x164   :  { %v747_v34 = vpop.permute.xlu0 %746 }
 0x165   :  { %4867 = vmatmul.mubr.msk.f32.vlgmr.msra.gmra.mrb[2].mxu1 %vm172_vm1, %v5802_v14 }
 0x166   :  { %5206 = vmatpush3.bf16.xpose.msk.msra.mxu1 %vm5828_vm2, %v5201_v26  ;;  %4880 = vmatprep.mubr.msk.f32.mxu1 %vm172_vm1, %v371_v28 }
 0x167   :  { %5213 = vmatprep.subr.msk.bf16.mxu1 %vm5828_vm2, %v5211_v31 }
 0x16d   :  { %4881 = vmatmul.mubr.msk.f32.vlgmr.msra.gmra.mrb[4].mxu1 %vm172_vm1, %v373_v32 }
 0x16e   :  { %5216 = vmatpush3.bf16.xpose.msk.msra.mxu1 %vm5828_vm2, %v5211_v31  ;;  %4904 = vmatprep.mubr.msk.f32.mxu1 %vm172_vm1, %v745_v33 }
 0x175   :  { %4905 = vmatmul.mubr.msk.f32.vlgmr.msra.gmra.mrb[6].mxu1 %vm172_vm1, %v747_v34 }
 0x238   :  { %v4868_v36 = vpop.f32.mrb[2].mxu1 }
 0x239   :  { %v257_v39 = vmul.f32 0.35355338, %v4868_v36  ;;  %v247_v40 = vpop.f32.mrb[3].mxu1 }
 0x23a   :  { %v256_v42 = vmul.f32 0.35355338, %v247_v40 }
 0x23b   :  { %v259_v43 = vadd.f32 %v257_v39, %v5850_v38 }
 0x23c   :  { %v258_v44 = vadd.f32 %v256_v42, %v5852_v41 }
 0x23d   :  { %v264_v45 = vsel %vm260_vm7, %v259_v43, -inf }
 0x23e   :  { %265 = vmax.xlane.f32.xlu0 %v264_v45  ;;  %v261_v46 = vsel %vm260_vm7, %v258_v44, -inf }
 0x23f   :  { %262 = vmax.xlane.f32.xlu1 %v261_v46 }
 0x240   :  { %v4882_v47 = vpop.f32.mrb[4].mxu1 }
 0x241   :  { %v462_v48 = vmul.f32 0.35355338, %v4882_v47  ;;  %v452_v49 = vpop.f32.mrb[5].mxu1 }
 0x242   :  { %v461_v50 = vmul.f32 0.35355338, %v452_v49 }
 0x243   :  { %v464_v51 = vadd.f32 %v462_v48, %v5850_v38 }
 0x244   :  { %v463_v52 = vadd.f32 %v461_v50, %v5852_v41 }
 0x245   :  { %v468_v53 = vsel %vm260_vm7, %v464_v51, -inf }
 0x246   :  { %469 = vmax.xlane.f32.xlu1 %v468_v53  ;;  %v465_v54 = vsel %vm260_vm7, %v463_v52, -inf }
 0x247   :  { %466 = vmax.xlane.f32.xlu0 %v465_v54 }
 0x248   :  { %v4906_v55 = vpop.f32.mrb[6].mxu1 }
 0x249   :  { %v826_v56 = vpop.f32.mrb[7].mxu1  ;;  %v836_v27 = vmul.f32 0.35355338, %v4906_v55 }
 0x24a   :  { %v835_v26 = vmul.f32 0.35355338, %v826_v56 }
 0x24b   :  { %v838_v29 = vadd.f32 %v836_v27, %v5850_v38 }
 0x24c   :  { %v837_v28 = vadd.f32 %v835_v26, %v5852_v41 }
 0x24d   :  { %v842_v31 = vsel %vm260_vm7, %v838_v29, -inf }
 0x24e   :  { %v839_v30 = vsel %vm260_vm7, %v837_v28, -inf }
 0x2cb   :  { %v266_v57 = vpop.xlane.xlu0 %265 }
 0x2cc   :  { %v268_v58 = vsub.f32 %v259_v43, %v266_v57  ;;  %v263_v59 = vpop.xlane.xlu1 %262 }
 0x2cd   :  { %v267_v60 = vsub.f32 %v258_v44, %v263_v59 }
 0x2ce   :  { %v271_v61 = vmul.f32 1.442695, %v268_v58 }
 0x2cf   :  { %v269_v62 = vmul.f32 1.442695, %v267_v60 }
 0x2d0   :  { %5542 = vpow2.f32 %v271_v61 }
 0x2d1   :  { %5544 = vpow2.f32 %v269_v62 }
 0x2d3   :  { %v470_v63 = vpop.xlane.xlu1 %469 }
 0x2d4   :  { %v472_v3 = vsub.f32 %v464_v51, %v470_v63  ;;  %v467_v6 = vpop.xlane.xlu0 %466 }
 0x2d5   :  { %v471_v8 = vsub.f32 %v463_v52, %v467_v6 }
 0x2d6   :  { %v475_v12 = vmul.f32 1.442695, %v472_v3 }
 0x2d7   :  { %v473_v13 = vmul.f32 1.442695, %v471_v8 }
 0x2d8   :  { %5546 = vpow2.f32 %v475_v12 }
 0x2d9   :  { %5548 = vpow2.f32 %v473_v13 }
 0x2da   :  { %v5862_v15 = vpop.eup %5542 }
 0x2db   :  { %v5545_v18 = vpop.eup %5544  ;;  %v276_v19 = vsel %vm260_vm7, %v5862_v15, 0.0 }
 0x2dc   :  { %277 = vadd.xlane.f32.xlu1 %v276_v19  ;;  %v273_v20 = vsel %vm260_vm7, %v5545_v18, 0.0 }
 0x2dd   :  { %274 = vadd.xlane.f32.xlu0 %v273_v20 }
 0x2e2   :  { %v5867_v22 = vpop.eup %5546 }
 0x2e3   :  { %v5549_v23 = vpop.eup %5548  ;;  %v480_v24 = vsel %vm260_vm7, %v5867_v22, 0.0 }
 0x2e4   :  { %481 = vadd.xlane.f32.xlu1 %v480_v24  ;;  %v477_v25 = vsel %vm260_vm7, %v5549_v23, 0.0 }
 0x2e5   :  { %478 = vadd.xlane.f32.xlu0 %v477_v25 }
 0x2f5   :  { %5438 = vrot.lane.b32.xlu1 %v5812_v17, %s5697_s22 }
 0x2f9   :  { %5443 = vrot.lane.b32.xlu1 %v5812_v17, %s5698_s23 }
 0x2fb   :  { %5433 = vrot.lane.b32.xlu0 %v5812_v17, %s5699_s24 }
 0x2fd   :  { %1037 = vrot.lane.b32.xlu1 %v5802_v14, %s5700_s25 }
 0x2ff   :  { %1035 = vrot.lane.b32.xlu0 %v5804_v16, %s5700_s25 }
 0x31e   :  { %840 = vmax.xlane.f32.xlu0 %v839_v30 }
 0x321   :  { %843 = vmax.xlane.f32.xlu1 %v842_v31 }
 0x332   :  { %575 = vrot.lane.b32.xlu1 %v5760_v1, %s5701_s26 }
 0x336   :  { %5448 = vrot.lane.b32.xlu1 %v5812_v17, %s5702_s27 }
 0x369   :  { %v278_v16 = vpop.xlane.xlu1 %277 }
 0x36a   :  { %v275_v14 = vpop.xlane.xlu0 %274 }
 0x36b   :  { %5550 = vrcp.f32 %v275_v14 }
 0x36c   :  { %5552 = vrcp.f32 %v278_v16 }
 0x371   :  { %v482_v32 = vpop.xlane.xlu1 %481 }
 0x372   :  { %v479_v33 = vpop.xlane.xlu0 %478 }
 0x373   :  { %5554 = vrcp.f32 %v479_v33 }
 0x374   :  { %5556 = vrcp.f32 %v482_v32 }
 0x375   :  { %v5551_v34 = vpop.eup %5550  ;;  %v5439_v35 = vpop.permute.xlu1 %5438 }
 0x376   :  { %v5434_v36 = vpop.permute.xlu0 %5433  ;;  %v281_v37 = vmul.f32 %v5551_v34, %v5545_v18  ;;  %v5441_v39 = vunpack.i.h.bf16 %v5439_v35  ;;  %v5440_v40 = vunpack.i.l.bf16 %v5439_v35  ;;  %v5553_v45 = vpop.eup %5552 }
 0x377   :  { %v5436_v42 = vunpack.i.h.bf16 %v5434_v36  ;;  %v5435_v1 = vunpack.i.l.bf16 %v5434_v36  ;;  %v282_v52 = vmul.f32 %v5553_v45, %v5862_v15 }
 0x378   :  { %4873 = vmatprep.mubr.msk.f32.mxu0 %vm260_vm7, %v281_v37  ;;  %v5207_v49 = vpack.c.bf16 %v5441_v39, %v5440_v40 }
 0x379   :  { %v5444_v43 = vpop.permute.xlu1 %5443  ;;  %v5197_v44 = vpack.c.bf16 %v5436_v42, %v5435_v1 }
 0x37a   :  { %v5446_v46 = vunpack.i.h.bf16 %v5444_v43  ;;  %v5445_v47 = vunpack.i.l.bf16 %v5444_v43  ;;  %v1036_v48 = vpop.permute.xlu0 %1035 }
 0x37b   :  { %5198 = vmatprep.subr.bf16.mxu0 %v5197_v44  ;;  %4923 = vmatprep.mubr.msk.f32.mxu1 %vm172_vm1, %v1036_v48 }
 0x37c   :  { %v5221_v50 = vpack.c.bf16 %v5446_v46, %v5445_v47  ;;  %5200 = vmatpush3.bf16.msra.mxu0 %v5197_v44 }
 0x37d   :  { %v5555_v51 = vpop.eup %5554  ;;  %5208 = vmatprep.subr.bf16.mxu0 %v5207_v49  ;;  %v1038_v56 = vpop.permute.xlu1 %1037 }
 0x37e   :  { %v5557_v53 = vpop.eup %5556  ;;  %5223 = vmatprep.subr.msk.bf16.mxu1 %vm5828_vm2, %v5221_v50  ;;  %v485_v54 = vmul.f32 %v5555_v51, %v5549_v23 }
 0x37f   :  { %4874 = vmatmul.mubr.msk.f32.vlgmr.msra.gmra.mrb[0].mxu0 %vm260_vm7, %v282_v52  ;;  %5226 = vmatpush3.bf16.xpose.msk.msra.mxu1 %vm5828_vm2, %v5221_v50  ;;  %v486_v55 = vmul.f32 %v5557_v53, %v5867_v22 }
 0x380   :  { %5210 = vmatpush3.bf16.msra.mxu0 %v5207_v49  ;;  %4887 = vmatprep.mubr.msk.f32.mxu0 %vm260_vm7, %v485_v54 }
 0x383   :  { %4888 = vmatmul.mubr.msk.f32.vlgmr.msra.gmra.mrb[2].mxu0 %vm260_vm7, %v486_v55 }
 0x386   :  { %4924 = vmatmul.mubr.msk.f32.vlgmr.msra.gmra.mrb[8].mxu1 %vm172_vm1, %v1038_v56 }
 0x3ab   :  { %v841_v57 = vpop.xlane.xlu0 %840 }
 0x3ac   :  { %v845_v58 = vsub.f32 %v837_v28, %v841_v57 }
 0x3ae   :  { %v844_v59 = vpop.xlane.xlu1 %843  ;;  %v847_v61 = vmul.f32 1.442695, %v845_v58 }
 0x3af   :  { %v846_v60 = vsub.f32 %v838_v29, %v844_v59 }
 0x3b1   :  { %v849_v62 = vmul.f32 1.442695, %v846_v60 }
 0x3b2   :  { %v576_v63 = vpop.permute.xlu1 %575 }
 0x3b3   :  { %5558 = vpow2.f32 %v849_v62  ;;  %4890 = vmatprep.subr.mxu0 %v576_v63 }
 0x3b4   :  { %4891 = vmatpush3.msra.mxu0 %v576_v63  ;;  %5560 = vpow2.f32 %v847_v61  ;;  %v5931_v61 = vsub.s32 1, %v5790_v9 }
 0x3b6   :  { %v5449_v18 = vpop.permute.xlu1 %5448  ;;  %v1329_v62 = vrot.slane %v5798_v11, %v5931_v61 }
 0x3b7   :  { %v5451_v23 = vunpack.i.h.bf16 %v5449_v18  ;;  %v5450_v24 = vunpack.i.l.bf16 %v5449_v18 }
 0x3b9   :  { %v5217_v27 = vpack.c.bf16 %v5451_v23, %v5450_v24 }
 0x3bd   :  { %v5559_v3 = vpop.eup %5558 }
 0x3be   :  { %v854_v6 = vsel %vm260_vm7, %v5559_v3, 0.0  ;;  %v5561_v8 = vpop.eup %5560 }
 0x3bf   :  { %855 = vadd.xlane.f32.xlu0 %v854_v6  ;;  %v851_v12 = vsel %vm260_vm7, %v5561_v8, 0.0 }
 0x3c3   :  { %852 = vadd.xlane.f32.xlu0 %v851_v12 }
 0x3d9   :  { %660 = vrot.lane.b32.xlu0 %v5755_v0, %s5701_s26 }
 0x44c   :  { %v856_v13 = vpop.xlane.xlu0 %855 }
 0x450   :  { %v853_v15 = vpop.xlane.xlu0 %852 }
 0x451   :  { %5562 = vrcp.f32 %v853_v15 }
 0x452   :  { %v4875_v19 = vpop.f32.mrb[0].mxu0  ;;  %5564 = vrcp.f32 %v856_v13 }
 0x453   :  { %v361_v20 = vpop.f32.mrb[1].mxu0 }
 0x454   :  { %v661_v22 = vpop.permute.xlu0 %660 }
 0x455   :  { %4895 = vmatprep.subr.mxu0 %v661_v22 }
 0x456   :  { %v4889_v25 = vpop.f32.mrb[2].mxu0 }
 0x457   :  { %v565_v26 = vpop.f32.mrb[3].mxu0 }
 0x458   :  { %4892 = vmatprep.mubr.msk.f32.mxu0 %vm172_vm1, %v565_v26 }
 0x459   :  { %4893 = vmatmul.mubr.msk.f32.vlgmr.msra.gmra.mrb[4].mxu0 %vm172_vm1, %v4889_v25  ;;  %v4925_v28 = vpop.f32.mrb[8].mxu1 }
 0x45a   :  { %4896 = vmatpush3.msra.mxu0 %v661_v22  ;;  %v1127_v0 = vmul.f32 0.35355338, %v4925_v28  ;;  %4897 = vmatprep.mubr.msk.f32.mxu0 %vm172_vm1, %v361_v20  ;;  %v1117_v29 = vpop.f32.mrb[9].mxu1 }
 0x45b   :  { %5218 = vmatprep.subr.bf16.mxu0 %v5217_v27  ;;  %v1126_v30 = vmul.f32 0.35355338, %v1117_v29  ;;  %v5563_v14 = vpop.eup %5562 }
 0x45c   :  { %v1129_v31 = vadd.f32 %v1127_v0, %v5850_v38  ;;  %v5565_v34 = vpop.eup %5564  ;;  %v859_v35 = vmul.f32 %v5563_v14, %v5561_v8  ;;  %v1374_v0 = vld [vmem:[%s6420_s2 + $0x18] sm:$0xff] }
 0x45d   :  { %v1128_v16 = vadd.f32 %v1126_v30, %v5852_v41  ;;  %v860_v36 = vmul.f32 %v5565_v34, %v5559_v3  ;;  %v1375_v30 = vld [vmem:[%s6420_s2 + $0x28] sm:$0xff] }
 0x45e   :  { %v1133_v32 = vsel %vm260_vm7, %v1129_v31, -inf }
 0x45f   :  { %1134 = vmax.xlane.f32.xlu0 %v1133_v32  ;;  %v1130_v33 = vsel %vm260_vm7, %v1128_v16, -inf }
 0x460   :  { %1131 = vmax.xlane.f32.xlu1 %v1130_v33 }
 0x461   :  { %4898 = vmatmul.mubr.msk.f32.vlgmr.msra.gmra.mrb[4].mxu0 %vm172_vm1, %v4875_v19 }
 0x462   :  { %5220 = vmatpush3.bf16.msra.mxu0 %v5217_v27  ;;  %4911 = vmatprep.mubr.msk.f32.mxu0 %vm260_vm7, %v859_v35 }
 0x465   :  { %4912 = vmatmul.mubr.msk.f32.vlgmr.msra.gmra.mrb[6].mxu0 %vm260_vm7, %v860_v36 }
 0x4ec   :  { %v1135_v37 = vpop.xlane.xlu0 %1134 }
 0x4ed   :  { %v1137_v39 = vsub.f32 %v1129_v31, %v1135_v37  ;;  %v1132_v40 = vpop.xlane.xlu1 %1131  ;;  %v1376_v31 = vld [vmem:[%s6420_s2 + $0x38] sm:$0xff]  ;;  %v5954_v37 = vsub.s32 2, %v5790_v9 }
 0x4ee   :  { %v1136_v42 = vsub.f32 %v1128_v16, %v1132_v40  ;;  %v5235_v14 = vpack.c.bf16 %v1376_v31, %v1375_v30  ;;  %v1482_v30 = vsub.s32 5, %v5790_v9 }
 0x4ef   :  { %v1140_v1 = vmul.f32 1.442695, %v1137_v39  ;;  %v5957_v39 = vsub.s32 3, %v5790_v9  ;;  %v1364_v40 = vrot.slane %v5798_v11, %v5954_v37 }
 0x4f0   :  { %v1138_v43 = vmul.f32 1.442695, %v1136_v42  ;;  %v1483_v31 = vrot.slane %v5798_v11, %v1482_v30 }
 0x4f1   :  { %5566 = vpow2.f32 %v1140_v1 }
 0x4f2   :  { %5568 = vpow2.f32 %v1138_v43  ;;  %v1370_v43 = vrot.slane %v5798_v11, %v5957_v39 }
 0x4fb   :  { %v5567_v44 = vpop.eup %5566 }
 0x4fc   :  { %v5569_v45 = vpop.eup %5568  ;;  %v1145_v46 = vsel %vm260_vm7, %v5567_v44, 0.0 }
 0x4fd   :  { %1146 = vadd.xlane.f32.xlu1 %v1145_v46  ;;  %v1142_v47 = vsel %vm260_vm7, %v5569_v45, 0.0 }
 0x4fe   :  { %1143 = vadd.xlane.f32.xlu0 %v1142_v47 }
 0x50e   :  { %5453 = vrot.lane.b32.xlu1 %v5812_v17, %s5703_s28 }
 0x512   :  { %1240 = vrot.lane.b32.xlu1 %v5772_v4, %s5701_s26 }
 0x514   :  { %949 = vrot.lane.b32.xlu0 %v5765_v2, %s5701_s26 }
 0x538   :  { %v4913_v48 = vpop.f32.mrb[6].mxu0 }
 0x539   :  { %v939_v49 = vpop.f32.mrb[7].mxu0 }
 0x53a   :  { %4916 = vmatprep.mubr.msk.f32.mxu0 %vm172_vm1, %v939_v49 }
 0x58a   :  { %v1147_v50 = vpop.xlane.xlu1 %1146 }
 0x58b   :  { %5570 = vrcp.f32 %v1147_v50  ;;  %v1144_v51 = vpop.xlane.xlu0 %1143  ;;  %v67_v50 = vld [vmem:[%s6421_s3] sm:$0xff] }
 0x58c   :  { %5572 = vrcp.f32 %v1144_v51  ;;  %v68_v51 = vld [vmem:[%s6421_s3 + $0x8] sm:$0xff] }
 0x58e   :  { %v5454_v52 = vpop.permute.xlu1 %5453 }
 0x58f   :  { %v5456_v53 = vunpack.i.h.bf16 %v5454_v52  ;;  %v5455_v54 = vunpack.i.l.bf16 %v5454_v52  ;;  %v950_v55 = vpop.permute.xlu0 %949  ;;  %v5239_v52 = vpack.c.bf16 %v68_v51, %v67_v50 }
 0x590   :  { %4914 = vmatprep.subr.mxu0 %v950_v55 }
 0x591   :  { %v5227_v17 = vpack.c.bf16 %v5456_v53, %v5455_v54  ;;  %4915 = vmatpush3.msra.mxu0 %v950_v55  ;;  %v69_v53 = vld [vmem:[%s6421_s3 + $0x10] sm:$0xff]  ;;  %v70_v54 = vld [vmem:[%s6421_s3 + $0x18] sm:$0xff] }
 0x592   :  { %4917 = vmatmul.mubr.msk.f32.vlgmr.msra.gmra.mrb[4].mxu0 %vm172_vm1, %v4913_v48  ;;  %v1241_v4 = vpop.permute.xlu1 %1240  ;;  %v5243_v55 = vpack.c.bf16 %v70_v54, %v69_v53  ;;  %v6019_v54 = vld [vmem:[%s6423_s5 + $0x30] sm:$0xff] }
 0x593   :  { %5228 = vmatprep.subr.bf16.mxu0 %v5227_v17 }
 0x594   :  { %5230 = vmatpush3.bf16.msra.mxu0 %v5227_v17  ;;  %v71_v17 = vld [vmem:[%s6421_s3 + $0x20] sm:$0xff] }
 0x595   :  { %v5571_v2 = vpop.eup %5570  ;;  %4933 = vmatprep.subr.mxu0 %v1241_v4 }
 0x596   :  { %v5573_v56 = vpop.eup %5572  ;;  %v1151_v58 = vmul.f32 %v5571_v2, %v5567_v44 }
 0x597   :  { %v1150_v57 = vmul.f32 %v5573_v56, %v5569_v45  ;;  %v73_v56 = vld [vmem:[%s6421_s3 + $0x30] sm:$0xff] }
 0x599   :  { %4930 = vmatprep.mubr.msk.f32.mxu0 %vm260_vm7, %v1150_v57  ;;  %v74_v57 = vld [vmem:[%s6421_s3 + $0x38] sm:$0xff] }
 0x59a   :  { %4931 = vmatmul.mubr.msk.f32.vlgmr.msra.gmra.mrb[8].mxu0 %vm260_vm7, %v1151_v58  ;;  %v5251_v58 = vpack.c.bf16 %v74_v57, %v73_v56 }
 0x59b   :  { %4934 = vmatpush3.msra.mxu0 %v1241_v4  ;;  %v72_v4 = vld [vmem:[%s6421_s3 + $0x28] sm:$0xff] }
 0x59c   :  { %5240 = vmatprep.subr.bf16.mxu0 %v5239_v52  ;;  %v5247_v2 = vpack.c.bf16 %v72_v4, %v71_v17 }
 0x66d   :  { %v4932_v59 = vpop.f32.mrb[8].mxu0 }
 0x66e   :  { %v1230_v60 = vpop.f32.mrb[9].mxu0 }
 0x66f   :  { %4935 = vmatprep.mubr.msk.f32.mxu0 %vm172_vm1, %v1230_v60 }
 0x670   :  { %4936 = vmatmul.mubr.msk.f32.vlgmr.msra.gmra.mrb[4].mxu0 %vm172_vm1, %v4932_v59  ;;  %v5990_v59 = vsub.s32 4, %v5790_v9 }
 0x671   :  { %5242 = vmatpush3.bf16.msra.mxu0 %v5239_v52  ;;  %v6012_v52 = vld [vmem:[%s6423_s5 + $0x18] sm:$0xff] }
 0x672   :  { %5244 = vmatprep.subr.bf16.mxu0 %v5243_v55  ;;  %v1380_v60 = vrot.slane %v5798_v11, %v5990_v59 }
 0x675   :  { %5246 = vmatpush3.bf16.msra.mxu0 %v5243_v55  ;;  %v6024_v55 = vld [vmem:[%s6423_s5 + $0x48] sm:$0xff] }
 0x676   :  { %5248 = vmatprep.subr.bf16.mxu0 %v5247_v2  ;;  %v5259_v17 = vpack.c.bf16 %v6024_v55, %v6019_v54 }
 0x679   :  { %5250 = vmatpush3.bf16.msra.mxu0 %v5247_v2 }
 0x67a   :  { %5252 = vmatprep.subr.bf16.mxu0 %v5251_v58 }
 0x67d   :  { %5254 = vmatpush3.bf16.msra.mxu0 %v5251_v58 }
 0x743   :  { %v4937_v63 = vpop.f32.mrb[4].mxu0 }
 0x744   :  { %v1331_v3 = vadd.f32 %v4937_v63, %v1329_v62  ;;  %v1315_v6 = vpop.f32.mrb[5].mxu0 }
 0x745   :  { %v1330_v8 = vadd.f32 %v1329_v62, %v1315_v6 }
 0x746   :  { %v1333_v12 = vadd.f32 %v1331_v3, %v5786_v7 }
 0x747   :  { %v1332_v13 = vadd.f32 %v1330_v8, %v5777_v5  ;;  %v1373_v5 = vld [vmem:[%s6420_s2 + $0x8] sm:$0xff] }
 0x748   :  { %v1337_v15 = vsel %vm84_vm0, %v1333_v12, 0.0  ;;  %v5231_v29 = vpack.c.bf16 %v1374_v0, %v1373_v5 }
 0x749   :  { %1338 = vadd.xlane.f32.xlu1 %v1337_v15  ;;  %v1334_v18 = vsel %vm84_vm0, %v1332_v13, 0.0 }
 0x74a   :  { %1335 = vadd.xlane.f32.xlu0 %v1334_v18  ;;  %5232 = vmatprep.subr.bf16.mxu1 %v5231_v29 }
 0x74b   :  { %5234 = vmatpush3.bf16.msra.mxu1 %v5231_v29 }
 0x74c   :  { %5236 = vmatprep.subr.bf16.mxu1 %v5235_v14 }
 0x74f   :  { %5238 = vmatpush3.bf16.msra.mxu1 %v5235_v14 }
 0x7d6   :  { %v1339_v19 = vpop.xlane.xlu1 %1338 }
 0x7d7   :  { %v1342_v20 = vmul.f32 0.03125, %v1339_v19  ;;  %v1336_v22 = vpop.xlane.xlu0 %1335 }
 0x7d8   :  { %v1341_v23 = vmul.f32 0.03125, %v1336_v22 }
 0x7d9   :  { %v1344_v24 = vsub.f32 %v1333_v12, %v1342_v20 }
 0x7da   :  { %v1343_v25 = vsub.f32 %v1332_v13, %v1341_v23 }
 0x7db   :  { %v1346_v28 = vmul.f32 %v1344_v24, %v1344_v24 }
 0x7dc   :  { %v1345_v26 = vmul.f32 %v1343_v25, %v1343_v25 }
 0x7dd   :  { %v1350_v7 = vsel %vm84_vm0, %v1346_v28, 0.0 }
 0x7de   :  { %v1347_v27 = vsel %vm84_vm0, %v1345_v26, 0.0 }
 0x7df   :  { %1348 = vadd.xlane.f32.xlu0 %v1347_v27 }
 0x7e3   :  { %1351 = vadd.xlane.f32.xlu0 %v1350_v7 }
 0x86c   :  { %v1349_v16 = vpop.xlane.xlu0 %1348 }
 0x86d   :  { %v1353_v32 = vmul.f32 0.03125, %v1349_v16 }
 0x86f   :  { %v1355_v33 = vadd.f32 1e-12, %v1353_v32 }
 0x870   :  { %v1352_v34 = vpop.xlane.xlu0 %1351 }
 0x871   :  { %5574 = vrsqrt.f32 %v1355_v33  ;;  %v1354_v35 = vmul.f32 0.03125, %v1352_v34 }
 0x873   :  { %v1356_v36 = vadd.f32 1e-12, %v1354_v35 }
 0x875   :  { %5576 = vrsqrt.f32 %v1356_v36 }
 0x87b   :  { %v5575_v42 = vpop.eup %5574 }
 0x87c   :  { %v1359_v1 = vmul.f32 %v5575_v42, %v1343_v25 }
 0x87e   :  { %v1365_v44 = vmul.f32 %v1364_v40, %v1359_v1 }
 0x87f   :  { %v5577_v45 = vpop.eup %5576 }
 0x880   :  { %v1360_v46 = vmul.f32 %v5577_v45, %v1344_v24  ;;  %v1371_v47 = vadd.f32 %v1370_v43, %v1365_v44 }
 0x882   :  { %v1366_v48 = vmul.f32 %v1364_v40, %v1360_v46  ;;  %4946 = vmatprep.mubr.msk.f32.mxu1 %vm84_vm0, %v1371_v47 }
 0x884   :  { %v1372_v49 = vadd.f32 %v1370_v43, %v1366_v48 }
 0x886   :  { %4947 = vmatmul.mubr.msk.f32.vlgmr.msra.gmra.mrb[10].mxu1 %vm84_vm0, %v1372_v49 }
 0x959   :  { %v4948_v62 = vpop.f32.mrb[10].mxu1 }
 0x95a   :  { %v1459_v63 = vadd.f32 %v4948_v62, %v1380_v60  ;;  %v1453_v3 = vpop.f32.mrb[11].mxu1  ;;  %v1596_v62 = vsub.s32 6, %v5790_v9 }
 0x95b   :  { %v1454_v6 = vadd.f32 %v1453_v3, %v1380_v60 }
 0x95c   :  { %v1463_v8 = vmul.f32 %v1459_v63, %v1459_v63  ;;  %v1597_v3 = vrot.slane %v5798_v11, %v1596_v62 }
 0x95d   :  { %v1462_v12 = vmul.f32 %v1454_v6, %v1454_v6 }
 0x95e   :  { %v1465_v13 = vmul.f32 %v1463_v8, %v1459_v63 }
 0x95f   :  { %v1464_v15 = vmul.f32 %v1462_v12, %v1454_v6 }
 0x960   :  { %v1467_v18 = vmul.f32 0.044715, %v1465_v13 }
 0x961   :  { %v1466_v19 = vmul.f32 0.044715, %v1464_v15 }
 0x962   :  { %v1469_v20 = vadd.f32 %v1467_v18, %v1459_v63 }
 0x963   :  { %v1468_v22 = vadd.f32 %v1466_v19, %v1454_v6 }
 0x964   :  { %v1471_v23 = vmul.f32 0.7978846, %v1469_v20 }
 0x965   :  { %v1470_v24 = vmul.f32 0.7978846, %v1468_v22 }
 0x966   :  { %5578 = vtanh.f32 %v1471_v23  ;;  %v6047_v23 = vld [vmem:[%s6425_s7] sm:$0xff] }
 0x967   :  { %5580 = vtanh.f32 %v1470_v24 }
 0x970   :  { %v5579_v25 = vpop.eup %5578 }
 0x971   :  { %v5581_v26 = vpop.eup %5580  ;;  %v1475_v27 = vadd.f32 1.0, %v5579_v25 }
 0x972   :  { %v1474_v28 = vadd.f32 1.0, %v5581_v26 }
 0x973   :  { %v1477_v7 = vmul.f32 0.5, %v1475_v27 }
 0x974   :  { %v1476_v5 = vmul.f32 0.5, %v1474_v28 }
 0x975   :  { %v1479_v29 = vmul.f32 %v1477_v7, %v1459_v63  ;;  %v1602_v63 = vsub.s32 7, %v5790_v9  ;;  %v1606_v9 = vld [vmem:[%s6424_s6] sm:$0xff] }
 0x976   :  { %v1478_v0 = vmul.f32 %v1476_v5, %v1454_v6 }
 0x977   :  { %v1603_v15 = vrot.slane %v5798_v11, %v1602_v63  ;;  %v1623_v11 = vrot.slane %v6047_v23, %v5793_v10 }
 0x978   :  { %4965 = vmatprep.mubr.msk.f32.mxu0 %vm1484_vm8, %v1478_v0 }
 0x979   :  { %4966 = vmatmul.mubr.msk.f32.vlgmr.msra.gmra.mrb[10].mxu0 %vm1484_vm8, %v1479_v29 }
 0xa4c   :  { %v4967_v14 = vpop.f32.mrb[10].mxu0 }
 0xa4d   :  { %v1563_v16 = vadd.f32 %v4967_v14, %v1483_v31  ;;  %v1557_v32 = vpop.f32.mrb[11].mxu0 }
 0xa4e   :  { %v1558_v33 = vadd.f32 %v1557_v32, %v1483_v31 }
 0xa4f   :  { %v1567_v34 = vadd.f32 %v1563_v16, %v1372_v49 }
 0xa50   :  { %v1566_v35 = vadd.f32 %v1558_v33, %v1371_v47  ;;  %v6007_v47 = vld [vmem:[%s6423_s5] sm:$0xff] }
 0xa51   :  { %v1571_v36 = vsel %vm84_vm0, %v1567_v34, 0.0  ;;  %v5255_v53 = vpack.c.bf16 %v6012_v52, %v6007_v47 }
 0xa52   :  { %1572 = vadd.xlane.f32.xlu0 %v1571_v36  ;;  %v1568_v40 = vsel %vm84_vm0, %v1566_v35, 0.0 }
 0xa53   :  { %1569 = vadd.xlane.f32.xlu1 %v1568_v40  ;;  %5256 = vmatprep.subr.bf16.mxu1 %v5255_v53 }
 0xa54   :  { %5258 = vmatpush3.bf16.msra.mxu1 %v5255_v53 }
 0xa55   :  { %5260 = vmatprep.subr.bf16.mxu1 %v5259_v17 }
 0xa58   :  { %5262 = vmatpush3.bf16.msra.mxu1 %v5259_v17 }
 0xadf   :  { %v1573_v42 = vpop.xlane.xlu0 %1572 }
 0xae0   :  { %v1575_v1 = vmul.f32 0.03125, %v1573_v42  ;;  %v1570_v43 = vpop.xlane.xlu1 %1569 }
 0xae1   :  { %v1574_v44 = vmul.f32 0.03125, %v1570_v43 }
 0xae2   :  { %v1577_v45 = vsub.f32 %v1567_v34, %v1575_v1 }
 0xae3   :  { %v1576_v46 = vsub.f32 %v1566_v35, %v1574_v44 }
 0xae4   :  { %v1579_v48 = vmul.f32 %v1577_v45, %v1577_v45 }
 0xae5   :  { %v1578_v50 = vmul.f32 %v1576_v46, %v1576_v46 }
 0xae6   :  { %v1583_v51 = vsel %vm84_vm0, %v1579_v48, 0.0 }
 0xae7   :  { %1584 = vadd.xlane.f32.xlu0 %v1583_v51  ;;  %v1580_v49 = vsel %vm84_vm0, %v1578_v50, 0.0 }
 0xae8   :  { %1581 = vadd.xlane.f32.xlu1 %v1580_v49 }
 0xb74   :  { %v1585_v4 = vpop.xlane.xlu0 %1584 }
 0xb75   :  { %v1587_v2 = vmul.f32 0.03125, %v1585_v4  ;;  %v1582_v56 = vpop.xlane.xlu1 %1581 }
 0xb76   :  { %v1586_v57 = vmul.f32 0.03125, %v1582_v56 }
 0xb77   :  { %v1589_v58 = vadd.f32 1e-12, %v1587_v2 }
 0xb78   :  { %v1588_v60 = vadd.f32 1e-12, %v1586_v57 }
 0xb79   :  { %5582 = vrsqrt.f32 %v1589_v58 }
 0xb7a   :  { %5584 = vrsqrt.f32 %v1588_v60 }
 0xb83   :  { %v5583_v6 = vpop.eup %5582 }
 0xb84   :  { %v5585_v8 = vpop.eup %5584  ;;  %v1593_v12 = vmul.f32 %v5583_v6, %v1577_v45 }
 0xb85   :  { %v1592_v13 = vmul.f32 %v5585_v8, %v1576_v46 }
 0xb86   :  { %v1599_v18 = vmul.f32 %v1597_v3, %v1593_v12 }
 0xb87   :  { %v1598_v19 = vmul.f32 %v1597_v3, %v1592_v13 }
 0xb88   :  { %v6038_v22 = vadd.f32 %v1603_v15, %v1599_v18 }
 0xb89   :  { %v6036_v20 = vadd.f32 %v1603_v15, %v1598_v19 }
 0xb8b   :  { %4976 = vmatprep.mubr.msk.f32.mxu1 %vm84_vm0, %v6036_v20 }
 0xb8c   :  { %4977 = vmatmul.mubr.msk.f32.vlgmr.msra.gmra.mrb[12].mxu1 %vm84_vm0, %v6038_v22 }
 0xc5f   :  { %v4978_v24 = vpop.f32.mrb[12].mxu1 }
 0xc60   :  { %v6051_v25 = vadd.f32 %v4978_v24, %v1623_v11  ;;  %v1696_v26 = vpop.f32.mrb[13].mxu1 }
 0xc61   :  { %v6053_v27 = vadd.f32 %v1696_v26, %v1623_v11 }
 0xc63   :  { %4983 = vmatprep.mubr.msk.f32.mxu1 %vm172_vm1, %v6053_v27  ;;  %v6059_v28 = vpack.i.bf16 %v6051_v25, %v6053_v27 }
 0xc65   :  { %5463 = vrot.lane.b32.xlu0 %v6059_v28, %s5693_s19  ;;  %5458 = vrot.lane.b32.xlu1 %v6059_v28, %s5692_s4 }
 0xc69   :  { %5468 = vrot.lane.b32.xlu0 %v6059_v28, %s5695_s21  ;;  %1907 = vrot.lane.b32.xlu1 %v6053_v27, %s5691_s0 }
 0xc6d   :  { %2283 = vrot.lane.b32.xlu0 %v6051_v25, %s5694_s20  ;;  %1909 = vrot.lane.b32.xlu1 %v6051_v25, %s5691_s0 }
 0xc71   :  { %2281 = vrot.lane.b32.xlu1 %v6053_v27, %s5694_s20 }
 0xcd7   :  { %v5464_v7 = vpop.permute.xlu0 %5463  ;;  %v5459_v5 = vpop.permute.xlu1 %5458 }
 0xcd8   :  { %v5466_v0 = vunpack.i.h.bf16 %v5464_v7  ;;  %v5465_v29 = vunpack.i.l.bf16 %v5464_v7  ;;  %v5461_v31 = vunpack.i.h.bf16 %v5459_v5  ;;  %v5460_v14 = vunpack.i.l.bf16 %v5459_v5 }
 0xcda   :  { %v5263_v16 = vpack.c.bf16 %v5461_v31, %v5460_v14  ;;  %v5273_v32 = vpack.c.bf16 %v5466_v0, %v5465_v29 }
 0xcdb   :  { %v5469_v33 = vpop.permute.xlu0 %5468  ;;  %v1908_v36 = vpop.permute.xlu1 %1907 }
 0xcdc   :  { %5265 = vmatprep.subr.msk.bf16.mxu1 %vm5828_vm2, %v5263_v16  ;;  %v5471_v34 = vunpack.i.h.bf16 %v5469_v33  ;;  %v5470_v35 = vunpack.i.l.bf16 %v5469_v33 }
 0xcdd   :  { %5268 = vmatpush3.bf16.xpose.msk.msra.mxu1 %vm5828_vm2, %v5263_v16 }
 0xcde   :  { %5275 = vmatprep.subr.msk.bf16.mxu1 %vm5828_vm2, %v5273_v32  ;;  %v5283_v40 = vpack.c.bf16 %v5471_v34, %v5470_v35 }
 0xcdf   :  { %v1910_v42 = vpop.permute.xlu1 %1909  ;;  %v2284_v43 = vpop.permute.xlu0 %2283 }
 0xce3   :  { %v2282_v1 = vpop.permute.xlu1 %2281 }
 0xce4   :  { %4984 = vmatmul.mubr.msk.f32.vlgmr.msra.gmra.mrb[14].mxu1 %vm172_vm1, %v6051_v25 }
 0xce5   :  { %5278 = vmatpush3.bf16.xpose.msk.msra.mxu1 %vm5828_vm2, %v5273_v32  ;;  %4997 = vmatprep.mubr.msk.f32.mxu1 %vm172_vm1, %v1908_v36 }
 0xce6   :  { %5285 = vmatprep.subr.msk.bf16.mxu1 %vm5828_vm2, %v5283_v40 }
 0xcec   :  { %4998 = vmatmul.mubr.msk.f32.vlgmr.msra.gmra.mrb[16].mxu1 %vm172_vm1, %v1910_v42 }
 0xced   :  { %5288 = vmatpush3.bf16.xpose.msk.msra.mxu1 %vm5828_vm2, %v5283_v40  ;;  %5021 = vmatprep.mubr.msk.f32.mxu1 %vm172_vm1, %v2282_v1 }
 0xcf4   :  { %5022 = vmatmul.mubr.msk.f32.vlgmr.msra.gmra.mrb[18].mxu1 %vm172_vm1, %v2284_v43 }
 0xdb7   :  { %v4985_v44 = vpop.f32.mrb[14].mxu1 }
 0xdb8   :  { %v1795_v45 = vmul.f32 0.35355338, %v4985_v44  ;;  %v1785_v46 = vpop.f32.mrb[15].mxu1 }
 0xdb9   :  { %v1794_v48 = vmul.f32 0.35355338, %v1785_v46 }
 0xdba   :  { %v1797_v50 = vadd.f32 %v1795_v45, %v5850_v38 }
 0xdbb   :  { %v1796_v51 = vadd.f32 %v1794_v48, %v5852_v41 }
 0xdbc   :  { %v1801_v49 = vsel %vm260_vm7, %v1797_v50, -inf }
 0xdbd   :  { %1802 = vmax.xlane.f32.xlu0 %v1801_v49  ;;  %v1798_v53 = vsel %vm260_vm7, %v1796_v51, -inf }
 0xdbe   :  { %1799 = vmax.xlane.f32.xlu1 %v1798_v53 }
 0xdbf   :  { %v4999_v17 = vpop.f32.mrb[16].mxu1 }
 0xdc0   :  { %v1999_v4 = vmul.f32 0.35355338, %v4999_v17  ;;  %v1989_v2 = vpop.f32.mrb[17].mxu1 }
 0xdc1   :  { %v1998_v56 = vmul.f32 0.35355338, %v1989_v2 }
 0xdc2   :  { %v2001_v57 = vadd.f32 %v1999_v4, %v5850_v38 }
 0xdc3   :  { %v2000_v58 = vadd.f32 %v1998_v56, %v5852_v41 }
 0xdc4   :  { %v2005_v60 = vsel %vm260_vm7, %v2001_v57, -inf }
 0xdc5   :  { %2006 = vmax.xlane.f32.xlu1 %v2005_v60  ;;  %v2002_v3 = vsel %vm260_vm7, %v2000_v58, -inf }
 0xdc6   :  { %2003 = vmax.xlane.f32.xlu0 %v2002_v3 }
 0xdc7   :  { %v5023_v6 = vpop.f32.mrb[18].mxu1 }
 0xdc8   :  { %v2363_v8 = vpop.f32.mrb[19].mxu1  ;;  %v2373_v42 = vmul.f32 0.35355338, %v5023_v6 }
 0xdc9   :  { %v2372_v40 = vmul.f32 0.35355338, %v2363_v8 }
 0xdca   :  { %v2375_v43 = vadd.f32 %v2373_v42, %v5850_v38 }
 0xdcb   :  { %v2374_v1 = vadd.f32 %v2372_v40, %v5852_v41 }
 0xdcc   :  { %v2379_v45 = vsel %vm260_vm7, %v2375_v43, -inf }
 0xdcd   :  { %v2376_v44 = vsel %vm260_vm7, %v2374_v1, -inf }
 0xe4a   :  { %v1803_v12 = vpop.xlane.xlu0 %1802 }
 0xe4b   :  { %v1805_v13 = vsub.f32 %v1797_v50, %v1803_v12  ;;  %v1800_v15 = vpop.xlane.xlu1 %1799 }
 0xe4c   :  { %v1804_v18 = vsub.f32 %v1796_v51, %v1800_v15 }
 0xe4d   :  { %v1808_v19 = vmul.f32 1.442695, %v1805_v13 }
 0xe4e   :  { %v1806_v11 = vmul.f32 1.442695, %v1804_v18 }
 0xe4f   :  { %5586 = vpow2.f32 %v1808_v19 }
 0xe50   :  { %5588 = vpow2.f32 %v1806_v11 }
 0xe52   :  { %v2007_v24 = vpop.xlane.xlu1 %2006 }
 0xe53   :  { %v2009_v26 = vsub.f32 %v2001_v57, %v2007_v24  ;;  %v2004_v7 = vpop.xlane.xlu0 %2003 }
 0xe54   :  { %v2008_v5 = vsub.f32 %v2000_v58, %v2004_v7 }
 0xe55   :  { %v2012_v0 = vmul.f32 1.442695, %v2009_v26 }
 0xe56   :  { %v2010_v29 = vmul.f32 1.442695, %v2008_v5 }
 0xe57   :  { %5590 = vpow2.f32 %v2012_v0 }
 0xe58   :  { %5592 = vpow2.f32 %v2010_v29 }
 0xe59   :  { %v5587_v31 = vpop.eup %5586 }
 0xe5a   :  { %v5589_v14 = vpop.eup %5588  ;;  %v1813_v16 = vsel %vm260_vm7, %v5587_v31, 0.0 }
 0xe5b   :  { %1814 = vadd.xlane.f32.xlu1 %v1813_v16  ;;  %v1810_v32 = vsel %vm260_vm7, %v5589_v14, 0.0 }
 0xe5c   :  { %1811 = vadd.xlane.f32.xlu0 %v1810_v32 }
 0xe61   :  { %v5591_v33 = vpop.eup %5590 }
 0xe62   :  { %v5593_v34 = vpop.eup %5592  ;;  %v2017_v35 = vsel %vm260_vm7, %v5591_v33, 0.0 }
 0xe63   :  { %2018 = vadd.xlane.f32.xlu1 %v2017_v35  ;;  %v2014_v36 = vsel %vm260_vm7, %v5593_v34, 0.0 }
 0xe64   :  { %2015 = vadd.xlane.f32.xlu0 %v2014_v36 }
 0xe74   :  { %5478 = vrot.lane.b32.xlu1 %v6059_v28, %s5697_s22 }
 0xe78   :  { %5483 = vrot.lane.b32.xlu1 %v6059_v28, %s5698_s23 }
 0xe7a   :  { %5473 = vrot.lane.b32.xlu0 %v6059_v28, %s5699_s24 }
 0xe7c   :  { %2574 = vrot.lane.b32.xlu1 %v6051_v25, %s5700_s25 }
 0xe7e   :  { %2572 = vrot.lane.b32.xlu0 %v6053_v27, %s5700_s25 }
 0xe9d   :  { %2377 = vmax.xlane.f32.xlu0 %v2376_v44 }
 0xea0   :  { %2380 = vmax.xlane.f32.xlu1 %v2379_v45 }
 0xeb1   :  { %2112 = vrot.lane.b32.xlu1 %v6012_v52, %s5701_s26 }
 0xeb5   :  { %5488 = vrot.lane.b32.xlu1 %v6059_v28, %s5702_s27 }
 0xee8   :  { %v1815_v27 = vpop.xlane.xlu1 %1814 }
 0xee9   :  { %v1812_v25 = vpop.xlane.xlu0 %1811 }
 0xeea   :  { %5594 = vrcp.f32 %v1812_v25 }
 0xeeb   :  { %5596 = vrcp.f32 %v1815_v27 }
 0xef0   :  { %v2019_v46 = vpop.xlane.xlu1 %2018 }
 0xef1   :  { %v2016_v48 = vpop.xlane.xlu0 %2015 }
 0xef2   :  { %5598 = vrcp.f32 %v2016_v48 }
 0xef3   :  { %5600 = vrcp.f32 %v2019_v46 }
 0xef4   :  { %v5595_v50 = vpop.eup %5594  ;;  %v5479_v51 = vpop.permute.xlu1 %5478 }
 0xef5   :  { %v5474_v49 = vpop.permute.xlu0 %5473  ;;  %v1818_v53 = vmul.f32 %v5595_v50, %v5589_v14  ;;  %v5481_v17 = vunpack.i.h.bf16 %v5479_v51  ;;  %v5480_v4 = vunpack.i.l.bf16 %v5479_v51  ;;  %v5597_v58 = vpop.eup %5596 }
 0xef6   :  { %v5476_v2 = vunpack.i.h.bf16 %v5474_v49  ;;  %v5475_v56 = vunpack.i.l.bf16 %v5474_v49  ;;  %v1819_v15 = vmul.f32 %v5597_v58, %v5587_v31 }
 0xef7   :  { %4990 = vmatprep.mubr.msk.f32.mxu0 %vm260_vm7, %v1818_v53  ;;  %v5279_v8 = vpack.c.bf16 %v5481_v17, %v5480_v4 }
 0xef8   :  { %v5269_v52 = vpack.c.bf16 %v5476_v2, %v5475_v56  ;;  %v5484_v57 = vpop.permute.xlu1 %5483 }
 0xef9   :  { %v5486_v60 = vunpack.i.h.bf16 %v5484_v57  ;;  %v5485_v3 = vunpack.i.l.bf16 %v5484_v57  ;;  %v2573_v6 = vpop.permute.xlu0 %2572 }
 0xefa   :  { %5270 = vmatprep.subr.bf16.mxu0 %v5269_v52  ;;  %5040 = vmatprep.mubr.msk.f32.mxu1 %vm172_vm1, %v2573_v6 }
 0xefb   :  { %v5293_v12 = vpack.c.bf16 %v5486_v60, %v5485_v3  ;;  %5272 = vmatpush3.bf16.msra.mxu0 %v5269_v52 }
 0xefc   :  { %v5599_v13 = vpop.eup %5598  ;;  %5280 = vmatprep.subr.bf16.mxu0 %v5279_v8  ;;  %v2575_v24 = vpop.permute.xlu1 %2574 }
 0xefd   :  { %v5601_v18 = vpop.eup %5600  ;;  %5295 = vmatprep.subr.msk.bf16.mxu1 %vm5828_vm2, %v5293_v12  ;;  %v2022_v19 = vmul.f32 %v5599_v13, %v5593_v34 }
 0xefe   :  { %4991 = vmatmul.mubr.msk.f32.vlgmr.msra.gmra.mrb[12].mxu0 %vm260_vm7, %v1819_v15  ;;  %5298 = vmatpush3.bf16.xpose.msk.msra.mxu1 %vm5828_vm2, %v5293_v12  ;;  %v2023_v11 = vmul.f32 %v5601_v18, %v5591_v33 }
 0xeff   :  { %5282 = vmatpush3.bf16.msra.mxu0 %v5279_v8  ;;  %5004 = vmatprep.mubr.msk.f32.mxu0 %vm260_vm7, %v2022_v19 }
 0xf02   :  { %5005 = vmatmul.mubr.msk.f32.vlgmr.msra.gmra.mrb[14].mxu0 %vm260_vm7, %v2023_v11 }
 0xf05   :  { %5041 = vmatmul.mubr.msk.f32.vlgmr.msra.gmra.mrb[20].mxu1 %vm172_vm1, %v2575_v24 }
 0xf2a   :  { %v2378_v26 = vpop.xlane.xlu0 %2377 }
 0xf2b   :  { %v2382_v7 = vsub.f32 %v2374_v1, %v2378_v26 }
 0xf2d   :  { %v2381_v5 = vpop.xlane.xlu1 %2380  ;;  %v2384_v29 = vmul.f32 1.442695, %v2382_v7 }
 0xf2e   :  { %v2383_v0 = vsub.f32 %v2375_v43, %v2381_v5 }
 0xf30   :  { %v2386_v31 = vmul.f32 1.442695, %v2383_v0 }
 0xf31   :  { %v2113_v14 = vpop.permute.xlu1 %2112 }
 0xf32   :  { %5602 = vpow2.f32 %v2386_v31  ;;  %5007 = vmatprep.subr.mxu0 %v2113_v14 }
 0xf33   :  { %5008 = vmatpush3.msra.mxu0 %v2113_v14  ;;  %5604 = vpow2.f32 %v2384_v29 }
 0xf35   :  { %v5489_v40 = vpop.permute.xlu1 %5488 }
 0xf36   :  { %v5491_v44 = vunpack.i.h.bf16 %v5489_v40  ;;  %v5490_v45 = vunpack.i.l.bf16 %v5489_v40 }
 0xf38   :  { %v5289_v46 = vpack.c.bf16 %v5491_v44, %v5490_v45 }
 0xf3c   :  { %v5603_v16 = vpop.eup %5602 }
 0xf3d   :  { %v2391_v32 = vsel %vm260_vm7, %v5603_v16, 0.0  ;;  %v5605_v33 = vpop.eup %5604 }
 0xf3e   :  { %2392 = vadd.xlane.f32.xlu0 %v2391_v32  ;;  %v2388_v34 = vsel %vm260_vm7, %v5605_v33, 0.0 }
 0xf42   :  { %2389 = vadd.xlane.f32.xlu0 %v2388_v34 }
 0xf58   :  { %2197 = vrot.lane.b32.xlu0 %v6007_v47, %s5701_s26 }
 0xfcb   :  { %v2393_v35 = vpop.xlane.xlu0 %2392 }
 0xfcf   :  { %v2390_v36 = vpop.xlane.xlu0 %2389 }
 0xfd0   :  { %5606 = vrcp.f32 %v2390_v36 }
 0xfd1   :  { %v4992_v42 = vpop.f32.mrb[12].mxu0  ;;  %5608 = vrcp.f32 %v2393_v35  ;;  %v2866_v35 = vrot.slane %v6047_v23, %v5931_v61 }
 0xfd2   :  { %v1898_v1 = vpop.f32.mrb[13].mxu0 }
 0xfd3   :  { %v2198_v43 = vpop.permute.xlu0 %2197 }
 0xfd4   :  { %5012 = vmatprep.subr.mxu0 %v2198_v43 }
 0xfd5   :  { %v5006_v25 = vpop.f32.mrb[14].mxu0 }
 0xfd6   :  { %v2102_v27 = vpop.f32.mrb[15].mxu0 }
 0xfd7   :  { %5009 = vmatprep.mubr.msk.f32.mxu0 %vm172_vm1, %v2102_v27  ;;  %v6170_v27 = vld [vmem:[%s6423_s5 + $0x8] sm:$0xff] }
 0xfd8   :  { %5010 = vmatmul.mubr.msk.f32.vlgmr.msra.gmra.mrb[16].mxu0 %vm172_vm1, %v5006_v25  ;;  %v5042_v48 = vpop.f32.mrb[20].mxu1 }
 0xfd9   :  { %5013 = vmatpush3.msra.mxu0 %v2198_v43  ;;  %v2664_v47 = vmul.f32 0.35355338, %v5042_v48  ;;  %5014 = vmatprep.mubr.msk.f32.mxu0 %vm172_vm1, %v1898_v1  ;;  %v2654_v50 = vpop.f32.mrb[21].mxu1 }
 0xfda   :  { %5290 = vmatprep.subr.bf16.mxu0 %v5289_v46  ;;  %v2663_v51 = vmul.f32 0.35355338, %v2654_v50  ;;  %v5607_v53 = vpop.eup %5606 }
 0xfdb   :  { %v2666_v49 = vadd.f32 %v2664_v47, %v5850_v38  ;;  %v5609_v56 = vpop.eup %5608  ;;  %v2396_v52 = vmul.f32 %v5607_v53, %v5605_v33 }
 0xfdc   :  { %v2665_v17 = vadd.f32 %v2663_v51, %v5852_v41  ;;  %v2397_v57 = vmul.f32 %v5609_v56, %v5603_v16 }
 0xfdd   :  { %v2670_v4 = vsel %vm260_vm7, %v2666_v49, -inf }
 0xfde   :  { %2671 = vmax.xlane.f32.xlu0 %v2670_v4  ;;  %v2667_v2 = vsel %vm260_vm7, %v2665_v17, -inf }
 0xfdf   :  { %2668 = vmax.xlane.f32.xlu1 %v2667_v2 }
 0xfe0   :  { %5015 = vmatmul.mubr.msk.f32.vlgmr.msra.gmra.mrb[16].mxu0 %vm172_vm1, %v4992_v42 }
 0xfe1   :  { %5292 = vmatpush3.bf16.msra.mxu0 %v5289_v46  ;;  %5028 = vmatprep.mubr.msk.f32.mxu0 %vm260_vm7, %v2396_v52  ;;  %v6175_v46 = vld [vmem:[%s6423_s5 + $0x20] sm:$0xff]  ;;  %v6185_v52 = vld [vmem:[%s6423_s5 + $0x38] sm:$0xff] }
 0xfe4   :  { %5029 = vmatmul.mubr.msk.f32.vlgmr.msra.gmra.mrb[18].mxu0 %vm260_vm7, %v2397_v57  ;;  %v6190_v57 = vld [vmem:[%s6423_s5 + $0x50] sm:$0xff] }
0x106b   :  { %v2672_v58 = vpop.xlane.xlu0 %2671 }
0x106c   :  { %v2674_v60 = vsub.f32 %v2666_v49, %v2672_v58  ;;  %v2669_v3 = vpop.xlane.xlu1 %2668 }
0x106d   :  { %v2673_v6 = vsub.f32 %v2665_v17, %v2669_v3 }
0x106e   :  { %v2677_v8 = vmul.f32 1.442695, %v2674_v60 }
0x106f   :  { %v2675_v12 = vmul.f32 1.442695, %v2673_v6  ;;  %v5502_v6 = vpack.i.bf16 %v6190_v57, %v6185_v52 }
0x1070   :  { %5610 = vpow2.f32 %v2677_v8  ;;  %v32_v8 = vld [vmem:[%s6419_s1] sm:$0xff] }
0x1071   :  { %5612 = vpow2.f32 %v2675_v12  ;;  %v5303_v12 = vpack.c.bf16 %v6175_v46, %v6170_v27 }
0x1073   :  { %5304 = vmatprep.subr.bf16.mxu1 %v5303_v12 }
0x1074   :  { %5306 = vmatpush3.bf16.msra.mxu1 %v5303_v12 }
0x107a   :  { %v5611_v13 = vpop.eup %5610 }
0x107b   :  { %v5613_v15 = vpop.eup %5612  ;;  %v2682_v18 = vsel %vm260_vm7, %v5611_v13, 0.0 }
0x107c   :  { %2683 = vadd.xlane.f32.xlu1 %v2682_v18  ;;  %v2679_v19 = vsel %vm260_vm7, %v5613_v15, 0.0 }
0x107d   :  { %2680 = vadd.xlane.f32.xlu0 %v2679_v19 }
0x108d   :  { %5493 = vrot.lane.b32.xlu1 %v6059_v28, %s5703_s28 }
0x1091   :  { %2777 = vrot.lane.b32.xlu1 %v6024_v55, %s5701_s26 }
0x1093   :  { %2486 = vrot.lane.b32.xlu0 %v6019_v54, %s5701_s26 }
0x10b7   :  { %v5030_v11 = vpop.f32.mrb[18].mxu0 }
0x10b8   :  { %v2476_v24 = vpop.f32.mrb[19].mxu0 }
0x10b9   :  { %5033 = vmatprep.mubr.msk.f32.mxu0 %vm172_vm1, %v2476_v24 }
0x1109   :  { %v2684_v26 = vpop.xlane.xlu1 %2683 }
0x110a   :  { %5614 = vrcp.f32 %v2684_v26  ;;  %v2681_v7 = vpop.xlane.xlu0 %2680 }
0x110b   :  { %5616 = vrcp.f32 %v2681_v7 }
0x110d   :  { %v5494_v5 = vpop.permute.xlu1 %5493 }
0x110e   :  { %v5496_v0 = vunpack.i.h.bf16 %v5494_v5  ;;  %v5495_v29 = vunpack.i.l.bf16 %v5494_v5  ;;  %v2487_v31 = vpop.permute.xlu0 %2486 }
0x110f   :  { %5031 = vmatprep.subr.mxu0 %v2487_v31 }
0x1110   :  { %v5299_v28 = vpack.c.bf16 %v5496_v0, %v5495_v29  ;;  %5032 = vmatpush3.msra.mxu0 %v2487_v31  ;;  %v33_v31 = vld [vmem:[%s6419_s1 + $0x8] sm:$0xff] }
0x1111   :  { %5034 = vmatmul.mubr.msk.f32.vlgmr.msra.gmra.mrb[16].mxu0 %vm172_vm1, %v5030_v11  ;;  %v2778_v55 = vpop.permute.xlu1 %2777 }
0x1112   :  { %5300 = vmatprep.subr.bf16.mxu0 %v5299_v28 }
0x1113   :  { %5302 = vmatpush3.bf16.msra.mxu0 %v5299_v28 }
0x1114   :  { %v5615_v54 = vpop.eup %5614  ;;  %5050 = vmatprep.subr.mxu0 %v2778_v55 }
0x1115   :  { %v5617_v14 = vpop.eup %5616  ;;  %v2688_v32 = vmul.f32 %v5615_v54, %v5611_v13  ;;  %v5307_v13 = vpack.c.bf16 %v6190_v57, %v6185_v52  ;;  %v2900_v54 = vrot.slane %v6047_v23, %v5954_v37 }
0x1116   :  { %v2687_v16 = vmul.f32 %v5617_v14, %v5613_v15 }
0x1117   :  { %5308 = vmatprep.subr.bf16.mxu1 %v5307_v13 }
0x1118   :  { %5047 = vmatprep.mubr.msk.f32.mxu0 %vm260_vm7, %v2687_v16  ;;  %5310 = vmatpush3.bf16.msra.mxu1 %v5307_v13 }
0x1119   :  { %5048 = vmatmul.mubr.msk.f32.vlgmr.msra.gmra.mrb[20].mxu0 %vm260_vm7, %v2688_v32 }
0x111a   :  { %5051 = vmatpush3.msra.mxu0 %v2778_v55 }
0x11ec   :  { %v5049_v33 = vpop.f32.mrb[20].mxu0 }
0x11ed   :  { %v2767_v34 = vpop.f32.mrb[21].mxu0 }
0x11ee   :  { %5052 = vmatprep.mubr.msk.f32.mxu0 %vm172_vm1, %v2767_v34 }
0x11ef   :  { %5053 = vmatmul.mubr.msk.f32.vlgmr.msra.gmra.mrb[16].mxu0 %vm172_vm1, %v5049_v33  ;;  %v2906_v33 = vrot.slane %v6047_v23, %v5957_v39 }
0x11f0   :  { %5074 = vmatprep.mubr.msk.f32.mxu0 %vm84_vm0, %v32_v8 }
0x12c2   :  { %v5054_v36 = vpop.f32.mrb[16].mxu0 }
0x12c3   :  { %v2868_v40 = vadd.f32 %v5054_v36, %v2866_v35  ;;  %v2852_v42 = vpop.f32.mrb[17].mxu0 }
0x12c4   :  { %v2867_v1 = vadd.f32 %v2866_v35, %v2852_v42 }
0x12c5   :  { %v2870_v43 = vadd.f32 %v2868_v40, %v6038_v22  ;;  %v5497_v22 = vpack.i.bf16 %v6175_v46, %v6170_v27  ;;  %v3098_v40 = vrot.slane %v6047_v23, %v1482_v30  ;;  %v2916_v30 = vrot.slane %v6047_v23, %v5990_v59 }
0x12c6   :  { %v2869_v44 = vadd.f32 %v2867_v1, %v6036_v20 }
0x12c7   :  { %v2874_v45 = vsel %vm84_vm0, %v2870_v43, 0.0 }
0x12c8   :  { %2875 = vadd.xlane.f32.xlu1 %v2874_v45  ;;  %v2871_v25 = vsel %vm84_vm0, %v2869_v44, 0.0 }
0x12c9   :  { %2872 = vadd.xlane.f32.xlu0 %v2871_v25 }
0x12d9   :  { %5498 = vrot.lane.b32.xlu1 %v5497_v22, %s5692_s4 }
0x1355   :  { %v2876_v20 = vpop.xlane.xlu1 %2875 }
0x1356   :  { %v2878_v48 = vmul.f32 0.03125, %v2876_v20  ;;  %v2873_v47 = vpop.xlane.xlu0 %2872 }
0x1357   :  { %v2877_v50 = vmul.f32 0.03125, %v2873_v47 }
0x1358   :  { %v2880_v51 = vsub.f32 %v2870_v43, %v2878_v48 }
0x1359   :  { %v2879_v49 = vsub.f32 %v2869_v44, %v2877_v50  ;;  %v5499_v56 = vpop.permute.xlu1 %5498 }
0x135a   :  { %v2882_v53 = vmul.f32 %v2880_v51, %v2880_v51  ;;  %v5501_v58 = vunpack.i.h.bf16 %v5499_v56  ;;  %v5500_v60 = vunpack.i.l.bf16 %v5499_v56 }
0x135b   :  { %v2881_v4 = vmul.f32 %v2879_v49, %v2879_v49 }
0x135c   :  { %v2886_v17 = vsel %vm84_vm0, %v2882_v53, 0.0  ;;  %v5311_v3 = vpack.c.bf16 %v5501_v58, %v5500_v60 }
0x135d   :  { %2887 = vadd.xlane.f32.xlu0 %v2886_v17  ;;  %v2883_v2 = vsel %vm84_vm0, %v2881_v4, 0.0 }
0x135e   :  { %5312 = vmatprep.subr.bf16.mxu0 %v5311_v3 }
0x135f   :  { %5314 = vmatpush3.bf16.msra.mxu0 %v5311_v3 }
0x1361   :  { %2884 = vadd.xlane.f32.xlu0 %v2883_v2 }
0x1377   :  { %5503 = vrot.lane.b32.xlu0 %v5502_v6, %s5692_s4 }
0x13ea   :  { %v2888_v15 = vpop.xlane.xlu0 %2887 }
0x13eb   :  { %v2890_v18 = vmul.f32 0.03125, %v2888_v15 }
0x13ed   :  { %v2892_v19 = vadd.f32 1e-12, %v2890_v18 }
0x13ee   :  { %v2885_v11 = vpop.xlane.xlu0 %2884 }
0x13ef   :  { %5618 = vrsqrt.f32 %v2892_v19  ;;  %v2889_v24 = vmul.f32 0.03125, %v2885_v11 }
0x13f1   :  { %v2891_v26 = vadd.f32 1e-12, %v2889_v24 }
0x13f2   :  { %v5504_v7 = vpop.permute.xlu0 %5503 }
0x13f3   :  { %5620 = vrsqrt.f32 %v2891_v26  ;;  %v5506_v5 = vunpack.i.h.bf16 %v5504_v7  ;;  %v5505_v0 = vunpack.i.l.bf16 %v5504_v7 }
0x13f5   :  { %v5315_v29 = vpack.c.bf16 %v5506_v5, %v5505_v0 }
0x13f7   :  { %5316 = vmatprep.subr.bf16.mxu0 %v5315_v29 }
0x13f8   :  { %5318 = vmatpush3.bf16.msra.mxu0 %v5315_v29 }
0x13f9   :  { %v5619_v28 = vpop.eup %5618 }
0x13fa   :  { %v2896_v55 = vmul.f32 %v5619_v28, %v2880_v51 }
0x13fb   :  { %5075 = vmatmul.mubr.msk.f32.vlgmr.msra.gmra.mrb[22].mxu0 %vm84_vm0, %v33_v31 }
0x13fc   :  { %v2902_v32 = vmul.f32 %v2900_v54, %v2896_v55 }
0x13fd   :  { %v5621_v14 = vpop.eup %5620 }
0x13fe   :  { %v2895_v16 = vmul.f32 %v5621_v14, %v2879_v49  ;;  %v6213_v36 = vadd.f32 %v2906_v33, %v2902_v32 }
0x1400   :  { %v2901_v34 = vmul.f32 %v2900_v54, %v2895_v16 }
0x1402   :  { %v6211_v35 = vadd.f32 %v2906_v33, %v2901_v34 }
0x1404   :  { %5063 = vmatprep.mubr.msk.f32.mxu1 %vm84_vm0, %v6211_v35 }
0x1405   :  { %5064 = vmatmul.mubr.msk.f32.vlgmr.msra.gmra.mrb[22].mxu1 %vm84_vm0, %v6213_v36 }
0x14ce   :  { %v5076_v42 = vpop.f32.mrb[22].mxu0 }
0x14cf   :  { %v3100_v1 = vadd.f32 %v5076_v42, %v3098_v40  ;;  %v3086_v43 = vpop.f32.mrb[23].mxu0 }
0x14d0   :  { %v3099_v44 = vadd.f32 %v3098_v40, %v3086_v43  ;;  %v6222_v45 = vpack.i.bf16 %v5076_v42, %v3086_v43 }
0x14d2   :  { %v6224_v25 = vpack.i.bf16 %v3100_v1, %v3099_v44  ;;  %v5319_v22 = vpack.c.bf16 %v3100_v1, %v3099_v44 }
0x14d4   :  { %5508 = vrot.lane.b32.xlu1 %v6224_v25, %s5691_s0  ;;  %5321 = vmatprep.subr.msk.bf16.mxu1 %vm5828_vm2, %v5319_v22 }
0x14d5   :  { %5324 = vmatpush3.bf16.xpose.msk.msra.mxu1 %vm5828_vm2, %v5319_v22 }
0x14d8   :  { %v5065_v20 = vpop.f32.mrb[22].mxu1 }
0x14d9   :  { %v6234_v48 = vadd.f32 %v5065_v20, %v2916_v30  ;;  %v2989_v47 = vpop.f32.mrb[23].mxu1 }
0x14da   :  { %v6236_v50 = vadd.f32 %v2989_v47, %v2916_v30 }
0x14db   :  { %3305 = vrot.lane.b32.xlu0 %v6234_v48, %s5691_s0 }
0x14dc   :  { %5081 = vmatprep.mubr.msk.f32.mxu1 %vm172_vm1, %v6236_v50  ;;  %3303 = vrot.lane.b32.xlu1 %v6236_v50, %s5691_s0 }
0x14dd   :  { %5082 = vmatmul.mubr.msk.f32.vlgmr.msra.gmra.mrb[24].mxu1 %vm172_vm1, %v6234_v48 }
0x14df   :  { %3675 = vrot.lane.b32.xlu0 %v6236_v50, %s5694_s20 }
0x14e0   :  { %5513 = vrot.lane.b32.xlu1 %v6224_v25, %s5694_s20 }
0x14e4   :  { %3677 = vrot.lane.b32.xlu1 %v6234_v48, %s5694_s20 }
0x1546   :  { %v5509_v23 = vpop.permute.xlu1 %5508 }
0x1547   :  { %v5511_v51 = vunpack.i.h.bf16 %v5509_v23  ;;  %v5510_v49 = vunpack.i.l.bf16 %v5509_v23 }
0x1549   :  { %v5329_v53 = vpack.c.bf16 %v5511_v51, %v5510_v49 }
0x154b   :  { %5331 = vmatprep.subr.msk.bf16.mxu1 %vm5828_vm2, %v5329_v53 }
0x154c   :  { %5334 = vmatpush3.bf16.xpose.msk.msra.mxu1 %vm5828_vm2, %v5329_v53 }
0x154d   :  { %v3306_v17 = vpop.permute.xlu0 %3305 }
0x154e   :  { %v3304_v4 = vpop.permute.xlu1 %3303 }
0x154f   :  { %5095 = vmatprep.mubr.msk.f32.mxu1 %vm172_vm1, %v3304_v4 }
0x1551   :  { %v3676_v56 = vpop.permute.xlu0 %3675 }
0x1552   :  { %v5514_v2 = vpop.permute.xlu1 %5513 }
0x1553   :  { %v5516_v58 = vunpack.i.h.bf16 %v5514_v2  ;;  %v5515_v60 = vunpack.i.l.bf16 %v5514_v2  ;;  %5096 = vmatmul.mubr.msk.f32.vlgmr.msra.gmra.mrb[26].mxu1 %vm172_vm1, %v3306_v17 }
0x1554   :  { %5119 = vmatprep.mubr.msk.f32.mxu1 %vm172_vm1, %v3676_v56 }
0x1555   :  { %v5339_v3 = vpack.c.bf16 %v5516_v58, %v5515_v60 }
0x1556   :  { %v3678_v6 = vpop.permute.xlu1 %3677 }
0x1557   :  { %5341 = vmatprep.subr.msk.bf16.mxu1 %vm5828_vm2, %v5339_v3 }
0x1558   :  { %5344 = vmatpush3.bf16.xpose.msk.msra.mxu1 %vm5828_vm2, %v5339_v3 }
0x155f   :  { %5120 = vmatmul.mubr.msk.f32.vlgmr.msra.gmra.mrb[28].mxu1 %vm172_vm1, %v3678_v6 }
0x15b0   :  { %v5083_v8 = vpop.f32.mrb[24].mxu1 }
0x15b1   :  { %v3189_v12 = vmul.f32 0.35355338, %v5083_v8  ;;  %v3179_v13 = vpop.f32.mrb[25].mxu1 }
0x15b2   :  { %v3188_v15 = vmul.f32 0.35355338, %v3179_v13 }
0x15b3   :  { %v3191_v18 = vadd.f32 %v3189_v12, %v5850_v38 }
0x15b4   :  { %v3190_v19 = vadd.f32 %v3188_v15, %v5852_v41 }
0x15b5   :  { %v3195_v11 = vsel %vm260_vm7, %v3191_v18, -inf }
0x15b6   :  { %3196 = vmax.xlane.f32.xlu1 %v3195_v11  ;;  %v3192_v24 = vsel %vm260_vm7, %v3190_v19, -inf }
0x15b7   :  { %3193 = vmax.xlane.f32.xlu0 %v3192_v24 }
0x1626   :  { %v5097_v26 = vpop.f32.mrb[26].mxu1 }
0x1627   :  { %v3385_v7 = vpop.f32.mrb[27].mxu1  ;;  %v3395_v5 = vmul.f32 0.35355338, %v5097_v26 }
0x1628   :  { %v3394_v0 = vmul.f32 0.35355338, %v3385_v7 }
0x1629   :  { %v3397_v28 = vadd.f32 %v3395_v5, %v5850_v38 }
0x162a   :  { %v3396_v29 = vadd.f32 %v3394_v0, %v5852_v41 }
0x162b   :  { %v3401_v55 = vsel %vm260_vm7, %v3397_v28, -inf }
0x162c   :  { %v3398_v31 = vsel %vm260_vm7, %v3396_v29, -inf }
0x162d   :  { %3399 = vmax.xlane.f32.xlu0 %v3398_v31 }
0x1631   :  { %3402 = vmax.xlane.f32.xlu0 %v3401_v55 }
0x1632   :  { %v5121_v54 = vpop.f32.mrb[28].mxu1 }
0x1633   :  { %v3757_v14 = vpop.f32.mrb[29].mxu1  ;;  %v3767_v3 = vmul.f32 0.35355338, %v5121_v54 }
0x1634   :  { %v3766_v6 = vmul.f32 0.35355338, %v3757_v14 }
0x1635   :  { %v3769_v8 = vadd.f32 %v3767_v3, %v5850_v38 }
0x1643   :  { %v3197_v16 = vpop.xlane.xlu1 %3196 }
0x1644   :  { %v3199_v32 = vsub.f32 %v3191_v18, %v3197_v16  ;;  %v3194_v33 = vpop.xlane.xlu0 %3193 }
0x1645   :  { %v3198_v34 = vsub.f32 %v3190_v19, %v3194_v33 }
0x1646   :  { %v3202_v40 = vmul.f32 1.442695, %v3199_v32 }
0x1647   :  { %v3200_v42 = vmul.f32 1.442695, %v3198_v34 }
0x1648   :  { %5622 = vpow2.f32 %v3202_v40 }
0x1649   :  { %5624 = vpow2.f32 %v3200_v42 }
0x1652   :  { %v5623_v1 = vpop.eup %5622 }
0x1653   :  { %v5625_v43 = vpop.eup %5624  ;;  %v3207_v44 = vsel %vm260_vm7, %v5623_v1, 0.0 }
0x1654   :  { %3208 = vadd.xlane.f32.xlu0 %v3207_v44  ;;  %v3204_v22 = vsel %vm260_vm7, %v5625_v43, 0.0 }
0x1655   :  { %3205 = vadd.xlane.f32.xlu1 %v3204_v22 }
0x16ba   :  { %v3400_v30 = vpop.xlane.xlu0 %3399 }
0x16bb   :  { %v3404_v20 = vsub.f32 %v3396_v29, %v3400_v30 }
0x16bd   :  { %v3406_v47 = vmul.f32 1.442695, %v3404_v20 }
0x16be   :  { %v3403_v23 = vpop.xlane.xlu0 %3402 }
0x16bf   :  { %5626 = vpow2.f32 %v3406_v47  ;;  %v3405_v51 = vsub.f32 %v3397_v28, %v3403_v23 }
0x16c1   :  { %v3408_v49 = vmul.f32 1.442695, %v3405_v51 }
0x16c3   :  { %5628 = vpow2.f32 %v3408_v49 }
0x16c9   :  { %v5627_v53 = vpop.eup %5626 }
0x16ca   :  { %v3410_v17 = vsel %vm260_vm7, %v5627_v53, 0.0 }
0x16cb   :  { %3411 = vadd.xlane.f32.xlu1 %v3410_v17 }
0x16cd   :  { %v5629_v4 = vpop.eup %5628 }
0x16ce   :  { %v3413_v2 = vsel %vm260_vm7, %v5629_v4, 0.0 }
0x16cf   :  { %3414 = vadd.xlane.f32.xlu0 %v3413_v2 }
0x16dc   :  { %5518 = vrot.lane.b32.xlu1 %v6222_v45, %s5692_s4 }
0x16e0   :  { %5528 = vrot.lane.b32.xlu1 %v6224_v25, %s5700_s25  ;;  %v3768_v25 = vadd.f32 %v3766_v6, %v5852_v41 }
0x16e1   :  { %v3209_v13 = vpop.xlane.xlu0 %3208 }
0x16e2   :  { %v3206_v56 = vpop.xlane.xlu1 %3205  ;;  %v3770_v12 = vsel %vm260_vm7, %v3768_v25, -inf }
0x16e3   :  { %5630 = vrcp.f32 %v3206_v56 }
0x16e4   :  { %3965 = vrot.lane.b32.xlu1 %v6236_v50, %s5700_s25  ;;  %v3773_v50 = vsel %vm260_vm7, %v3769_v8, -inf  ;;  %5632 = vrcp.f32 %v3209_v13 }
0x16e5   :  { %5523 = vrot.lane.b32.xlu0 %v6222_v45, %s5693_s19 }
0x16e9   :  { %3967 = vrot.lane.b32.xlu0 %v6234_v48, %s5700_s25 }
0x16ed   :  { %v5631_v58 = vpop.eup %5630 }
0x16ee   :  { %v3212_v60 = vmul.f32 %v5631_v58, %v5625_v43  ;;  %v5633_v26 = vpop.eup %5632 }
0x16ef   :  { %v3213_v54 = vmul.f32 %v5633_v26, %v5623_v1 }
0x16f0   :  { %5088 = vmatprep.mubr.msk.f32.mxu0 %vm260_vm7, %v3212_v60 }
0x1708   :  { %3771 = vmax.xlane.f32.xlu1 %v3770_v12  ;;  %3774 = vmax.xlane.f32.xlu0 %v3773_v50 }
0x1758   :  { %v3412_v15 = vpop.xlane.xlu1 %3411 }
0x1759   :  { %5634 = vrcp.f32 %v3412_v15 }
0x175c   :  { %v5519_v48 = vpop.permute.xlu1 %5518  ;;  %v3415_v18 = vpop.xlane.xlu0 %3414 }
0x175d   :  { %v5521_v19 = vunpack.i.h.bf16 %v5519_v48  ;;  %v5520_v11 = vunpack.i.l.bf16 %v5519_v48  ;;  %5636 = vrcp.f32 %v3415_v18 }
0x175f   :  { %v5325_v24 = vpack.c.bf16 %v5521_v19, %v5520_v11 }
0x1760   :  { %v5529_v7 = vpop.permute.xlu1 %5528  ;;  %v5524_v5 = vpop.permute.xlu0 %5523 }
0x1761   :  { %v5531_v0 = vunpack.i.h.bf16 %v5529_v7  ;;  %v5530_v29 = vunpack.i.l.bf16 %v5529_v7  ;;  %v5526_v31 = vunpack.i.h.bf16 %v5524_v5  ;;  %v5525_v28 = vunpack.i.l.bf16 %v5524_v5  ;;  %5326 = vmatprep.subr.bf16.mxu0 %v5325_v24 }
0x1762   :  { %5328 = vmatpush3.bf16.msra.mxu0 %v5325_v24 }
0x1763   :  { %v5635_v55 = vpop.eup %5634  ;;  %v5349_v14 = vpack.c.bf16 %v5531_v0, %v5530_v29  ;;  %v5335_v16 = vpack.c.bf16 %v5526_v31, %v5525_v28 }
0x1764   :  { %v3966_v32 = vpop.permute.xlu1 %3965  ;;  %v3418_v33 = vmul.f32 %v5635_v55, %v5627_v53  ;;  %v3968_v42 = vpop.permute.xlu0 %3967 }
0x1765   :  { %5089 = vmatmul.mubr.msk.f32.vlgmr.msra.gmra.mrb[24].mxu0 %vm260_vm7, %v3213_v54  ;;  %5336 = vmatprep.subr.bf16.mxu0 %v5335_v16 }
0x1766   :  { %5351 = vmatprep.subr.msk.bf16.mxu1 %vm5828_vm2, %v5349_v14  ;;  %5138 = vmatprep.mubr.msk.f32.mxu1 %vm172_vm1, %v3966_v32 }
0x1767   :  { %v5637_v34 = vpop.eup %5636  ;;  %5338 = vmatpush3.bf16.msra.mxu0 %v5335_v16  ;;  %5102 = vmatprep.mubr.msk.f32.mxu0 %vm260_vm7, %v3418_v33 }
0x1768   :  { %v3419_v40 = vmul.f32 %v5637_v34, %v5629_v4  ;;  %5354 = vmatpush3.bf16.xpose.msk.msra.mxu1 %vm5828_vm2, %v5349_v14 }
0x176a   :  { %5103 = vmatmul.mubr.msk.f32.vlgmr.msra.gmra.mrb[26].mxu0 %vm260_vm7, %v3419_v40 }
0x176f   :  { %5139 = vmatmul.mubr.msk.f32.vlgmr.msra.gmra.mrb[30].mxu1 %vm172_vm1, %v3968_v42 }
0x1795   :  { %v3772_v1 = vpop.xlane.xlu1 %3771  ;;  %v3775_v43 = vpop.xlane.xlu0 %3774 }
0x1796   :  { %v3776_v44 = vsub.f32 %v3768_v25, %v3772_v1  ;;  %v3777_v22 = vsub.f32 %v3769_v8, %v3775_v43 }
0x1798   :  { %v3778_v30 = vmul.f32 1.442695, %v3776_v44  ;;  %v3780_v20 = vmul.f32 1.442695, %v3777_v22 }
0x179a   :  { %5638 = vpow2.f32 %v3778_v30 }
0x179b   :  { %5640 = vpow2.f32 %v3780_v20 }
0x17a4   :  { %v5639_v47 = vpop.eup %5638 }
0x17a5   :  { %v5641_v23 = vpop.eup %5640  ;;  %v3782_v51 = vsel %vm260_vm7, %v5639_v47, 0.0 }
0x17a6   :  { %3783 = vadd.xlane.f32.xlu0 %v3782_v51  ;;  %v3785_v21 = vsel %vm260_vm7, %v5641_v23, 0.0 }
0x17a7   :  { %3786 = vadd.xlane.f32.xlu1 %v3785_v21 }
0x17b8   :  { %3591 = vrot.lane.b32.xlu1 %v6170_v27, %s5701_s26 }
0x17bc   :  { %5533 = vrot.lane.b32.xlu1 %v6222_v45, %s5695_s21  ;;  %3507 = vrot.lane.b32.xlu0 %v6175_v46, %s5701_s26 }
0x1833   :  { %v3784_v49 = vpop.xlane.xlu0 %3783 }
0x1834   :  { %v3787_v53 = vpop.xlane.xlu1 %3786  ;;  %5642 = vrcp.f32 %v3784_v49 }
0x1835   :  { %5644 = vrcp.f32 %v3787_v53 }
0x1837   :  { %v3508_v17 = vpop.permute.xlu0 %3507 }
0x1838   :  { %v3592_v4 = vpop.permute.xlu1 %3591  ;;  %v5090_v2 = vpop.f32.mrb[24].mxu0  ;;  %5105 = vmatprep.subr.mxu0 %v3508_v17 }
0x1839   :  { %v3294_v56 = vpop.f32.mrb[25].mxu0  ;;  %5106 = vmatpush3.msra.mxu0 %v3508_v17 }
0x183a   :  { %5110 = vmatprep.subr.mxu0 %v3592_v4 }
0x183c   :  { %v5534_v58 = vpop.permute.xlu1 %5533 }
0x183d   :  { %v5536_v60 = vunpack.i.h.bf16 %v5534_v58  ;;  %v5535_v27 = vunpack.i.l.bf16 %v5534_v58  ;;  %v5104_v3 = vpop.f32.mrb[26].mxu0 }
0x183e   :  { %v3498_v6 = vpop.f32.mrb[27].mxu0  ;;  %v5643_v13 = vpop.eup %5642 }
0x183f   :  { %v5345_v8 = vpack.c.bf16 %v5536_v60, %v5535_v27  ;;  %5107 = vmatprep.mubr.msk.f32.mxu0 %vm172_vm1, %v3498_v6  ;;  %v5645_v18 = vpop.eup %5644  ;;  %v3790_v24 = vmul.f32 %v5643_v13, %v5639_v47  ;;  %v5666_v47 = vld [vmem:[%s6425_s7] sm:$0xff] }
0x1840   :  { %5108 = vmatmul.mubr.msk.f32.vlgmr.msra.gmra.mrb[28].mxu0 %vm172_vm1, %v5104_v3  ;;  %v3791_v26 = vmul.f32 %v5645_v18, %v5641_v23  ;;  %v4258_v23 = vrot.slane %v5666_v47, %v1596_v62  ;;  %v4303_v13 = vld [vmem:[%s6423_s5 + $0x40] sm:$0xff] }
0x1841   :  { %5111 = vmatpush3.msra.mxu0 %v3592_v4  ;;  %5112 = vmatprep.mubr.msk.f32.mxu0 %vm172_vm1, %v3294_v56 }
0x1842   :  { %v5140_v46 = vpop.f32.mrb[30].mxu1  ;;  %5346 = vmatprep.subr.bf16.mxu0 %v5345_v8 }
0x1843   :  { %v4057_v25 = vmul.f32 0.35355338, %v5140_v46  ;;  %v4047_v12 = vpop.f32.mrb[31].mxu1 }
0x1844   :  { %v4056_v50 = vmul.f32 0.35355338, %v4047_v12  ;;  %v4302_v12 = vld [vmem:[%s6423_s5 + $0x28] sm:$0xff] }
0x1845   :  { %v4059_v15 = vadd.f32 %v4057_v25, %v5850_v38 }
0x1846   :  { %v4058_v48 = vadd.f32 %v4056_v50, %v5852_v41 }
0x1847   :  { %v4063_v19 = vsel %vm260_vm7, %v4059_v15, -inf }
0x1848   :  { %4064 = vmax.xlane.f32.xlu1 %v4063_v19  ;;  %v4060_v11 = vsel %vm260_vm7, %v4058_v48, -inf  ;;  %5113 = vmatmul.mubr.msk.f32.vlgmr.msra.gmra.mrb[28].mxu0 %vm172_vm1, %v5090_v2 }
0x1849   :  { %4061 = vmax.xlane.f32.xlu0 %v4060_v11  ;;  %5348 = vmatpush3.bf16.msra.mxu0 %v5345_v8 }
0x184a   :  { %5126 = vmatprep.mubr.msk.f32.mxu0 %vm260_vm7, %v3790_v24 }
0x184c   :  { %5127 = vmatmul.mubr.msk.f32.vlgmr.msra.gmra.mrb[30].mxu0 %vm260_vm7, %v3791_v26 }
0x1859   :  { %3879 = vrot.lane.b32.xlu1 %v6185_v52, %s5701_s26 }
0x185d   :  { %4169 = vrot.lane.b32.xlu1 %v6190_v57, %s5701_s26 }
0x18d5   :  { %v4065_v38 = vpop.xlane.xlu1 %4064 }
0x18d6   :  { %v4067_v41 = vsub.f32 %v4059_v15, %v4065_v38  ;;  %v4062_v7 = vpop.xlane.xlu0 %4061  ;;  %v4304_v15 = vld [vmem:[%s6423_s5 + $0x58] sm:$0xff] }
0x18d7   :  { %v4066_v5 = vsub.f32 %v4058_v48, %v4062_v7  ;;  %v5363_v48 = vpack.c.bf16 %v4304_v15, %v4303_v13  ;;  %v4292_v7 = vrot.slane %v5666_v47, %v1602_v63  ;;  %v1607_v63 = vld [vmem:[%s6424_s6 + $0x8] sm:$0xff] }
0x18d8   :  { %v4070_v0 = vmul.f32 1.442695, %v4067_v41  ;;  %v6358_v41 = vld [vmem:[%s6425_s7 + $0x8] sm:$0x1f] }
0x18d9   :  { %v4068_v29 = vmul.f32 1.442695, %v4066_v5  ;;  %v3880_v31 = vpop.permute.xlu1 %3879 }
0x18da   :  { %5646 = vpow2.f32 %v4070_v0  ;;  %5129 = vmatprep.subr.mxu0 %v3880_v31 }
0x18db   :  { %5130 = vmatpush3.msra.mxu0 %v3880_v31  ;;  %5648 = vpow2.f32 %v4068_v29 }
0x18dd   :  { %v4170_v1 = vpop.permute.xlu1 %4169 }
0x18e4   :  { %v5647_v28 = vpop.eup %5646 }
0x18e5   :  { %v4075_v55 = vsel %vm260_vm7, %v5647_v28, 0.0  ;;  %v5649_v54 = vpop.eup %5648 }
0x18e6   :  { %4076 = vadd.xlane.f32.xlu0 %v4075_v55  ;;  %v4072_v52 = vsel %vm260_vm7, %v5649_v54, 0.0 }
0x18ea   :  { %4073 = vadd.xlane.f32.xlu0 %v4072_v52 }
0x1900   :  { %5538 = vrot.lane.b32.xlu0 %v6222_v45, %s5698_s23 }
0x191f   :  { %v5128_v57 = vpop.f32.mrb[30].mxu0 }
0x1920   :  { %v3870_v14 = vpop.f32.mrb[31].mxu0 }
0x1921   :  { %5131 = vmatprep.mubr.msk.f32.mxu0 %vm172_vm1, %v3870_v14  ;;  %v5367_v14 = vpack.c.bf16 %v1607_v63, %v1606_v9 }
0x1922   :  { %5132 = vmatmul.mubr.msk.f32.vlgmr.msra.gmra.mrb[28].mxu0 %vm172_vm1, %v5128_v57 }
0x1973   :  { %v4077_v16 = vpop.xlane.xlu0 %4076 }
0x1974   :  { %5650 = vrcp.f32 %v4077_v16  ;;  %v1609_v16 = vld [vmem:[%s6424_s6 + $0x18] sm:$0xff] }
0x1977   :  { %v4074_v32 = vpop.xlane.xlu0 %4073 }
0x1978   :  { %5652 = vrcp.f32 %v4074_v32 }
0x197b   :  { %v5539_v33 = vpop.permute.xlu0 %5538 }
0x197c   :  { %v5541_v34 = vunpack.i.h.bf16 %v5539_v33  ;;  %v5540_v40 = vunpack.i.l.bf16 %v5539_v33  ;;  %v1610_v33 = vld [vmem:[%s6424_s6 + $0x20] sm:$0xff] }
0x197e   :  { %v5355_v42 = vpack.c.bf16 %v5541_v34, %v5540_v40  ;;  %v5651_v43 = vpop.eup %5650  ;;  %v1611_v34 = vld [vmem:[%s6424_s6 + $0x28] sm:$0xff] }
0x197f   :  { %v4081_v22 = vmul.f32 %v5651_v43, %v5647_v28  ;;  %v4298_v28 = vrot.slane %v6358_v41, %v5793_v10  ;;  %v1608_v10 = vld [vmem:[%s6424_s6 + $0x10] sm:$0xff]  ;;  %v5375_v40 = vpack.c.bf16 %v1611_v34, %v1610_v33 }
0x1980   :  { %5356 = vmatprep.subr.bf16.mxu0 %v5355_v42  ;;  %v5371_v32 = vpack.c.bf16 %v1609_v16, %v1608_v10 }
0x1981   :  { %5358 = vmatpush3.bf16.msra.mxu0 %v5355_v42  ;;  %v1612_v42 = vld [vmem:[%s6424_s6 + $0x30] sm:$0xff] }
0x1982   :  { %v5653_v44 = vpop.eup %5652  ;;  %5148 = vmatprep.subr.mxu0 %v4170_v1 }
0x1983   :  { %v4080_v45 = vmul.f32 %v5653_v44, %v5649_v54  ;;  %v4308_v44 = vrot.slane %v6358_v41, %v5931_v61 }
0x1985   :  { %5145 = vmatprep.mubr.msk.f32.mxu0 %vm260_vm7, %v4080_v45 }
0x1986   :  { %5146 = vmatmul.mubr.msk.f32.vlgmr.msra.gmra.mrb[32].mxu0 %vm260_vm7, %v4081_v22 }
0x1987   :  { %5149 = vmatpush3.msra.mxu0 %v4170_v1  ;;  %v1613_v1 = vld [vmem:[%s6424_s6 + $0x38] sm:$0xff]  ;;  %s5704_s6 = smov [#allocation2]  }
0x1988   :  { %5368 = vmatprep.subr.bf16.mxu0 %v5367_v14  ;;  %v5379_v43 = vpack.c.bf16 %v1613_v1, %v1612_v42  ;;  %s4540_s29 = sshll.u32 %s5704_s6, 4  ;;  %s4541_s29 = int_to_ptr.vmem [resolvable:$true] %s4540_s29 }
0x1989   :  { %s5667_s1 = scalar_lea.vmem %s4541_s29, 256  ;;  %p5672_p1 = scmp.lt.s32.totalorder %s4541_s29, %s4541_s29 }
0x198a   :  { %p5668_p0 = scmp.ne.s32.totalorder %s4541_s29, %s5667_s1  ;;  %p5673_p2 = scmp.lt.s32.totalorder %s5667_s1, %s5667_s1 }
0x198c   :  { %p5674_p3 = por %p5673_p2, %p5672_p1 }
0x198e   :  { %p5675_p4 = pnand %p5674_p3, %p5668_p0 }
0x1a59   :  { %v5147_v30 = vpop.f32.mrb[32].mxu0 }
0x1a5a   :  { %v4160_v20 = vpop.f32.mrb[33].mxu0 }
0x1a5b   :  { %5150 = vmatprep.mubr.msk.f32.mxu0 %vm172_vm1, %v4160_v20 }
0x1a5c   :  { %5151 = vmatmul.mubr.msk.f32.vlgmr.msra.gmra.mrb[28].mxu0 %vm172_vm1, %v5147_v30 }
0x1a5d   :  { %5370 = vmatpush3.bf16.msra.mxu0 %v5367_v14  ;;  %v4530_v14 = vrot.slane %v6358_v41, %v5990_v59 }
0x1a5e   :  { %5372 = vmatprep.subr.bf16.mxu0 %v5371_v32 }
0x1a61   :  { %5374 = vmatpush3.bf16.msra.mxu0 %v5371_v32 }
0x1a62   :  { %5376 = vmatprep.subr.bf16.mxu0 %v5375_v40 }
0x1a65   :  { %5378 = vmatpush3.bf16.msra.mxu0 %v5375_v40 }
0x1a66   :  { %5380 = vmatprep.subr.bf16.mxu0 %v5379_v43 }
0x1a69   :  { %5382 = vmatpush3.bf16.msra.mxu0 %v5379_v43 }
0x1b2f   :  { %v5152_v51 = vpop.f32.mrb[28].mxu0 }
0x1b30   :  { %v4260_v21 = vadd.f32 %v5152_v51, %v4258_v23  ;;  %v4244_v49 = vpop.f32.mrb[29].mxu0 }
0x1b31   :  { %v4259_v53 = vadd.f32 %v4258_v23, %v4244_v49 }
0x1b32   :  { %v4262_v17 = vadd.f32 %v4260_v21, %v6213_v36 }
0x1b33   :  { %v4261_v4 = vadd.f32 %v4259_v53, %v6211_v35  ;;  %v4301_v35 = vld [vmem:[%s6423_s5 + $0x10] sm:$0xff] }
0x1b34   :  { %v4266_v2 = vsel %vm84_vm0, %v4262_v17, 0.0  ;;  %v5359_v50 = vpack.c.bf16 %v4302_v12, %v4301_v35 }
0x1b35   :  { %4267 = vadd.xlane.f32.xlu0 %v4266_v2  ;;  %v4263_v56 = vsel %vm84_vm0, %v4261_v4, 0.0 }
0x1b36   :  { %4264 = vadd.xlane.f32.xlu1 %v4263_v56  ;;  %5360 = vmatprep.subr.bf16.mxu1 %v5359_v50 }
0x1b37   :  { %5362 = vmatpush3.bf16.msra.mxu1 %v5359_v50 }
0x1b38   :  { %5364 = vmatprep.subr.bf16.mxu1 %v5363_v48 }
0x1b3b   :  { %5366 = vmatpush3.bf16.msra.mxu1 %v5363_v48 }
0x1bc2   :  { %v4268_v58 = vpop.xlane.xlu0 %4267 }
0x1bc3   :  { %v4270_v60 = vmul.f32 0.03125, %v4268_v58  ;;  %v4265_v27 = vpop.xlane.xlu1 %4264 }
0x1bc4   :  { %v4269_v3 = vmul.f32 0.03125, %v4265_v27 }
0x1bc5   :  { %v4272_v6 = vsub.f32 %v4262_v17, %v4270_v60 }
0x1bc6   :  { %v4271_v62 = vsub.f32 %v4261_v4, %v4269_v3 }
0x1bc7   :  { %v4274_v8 = vmul.f32 %v4272_v6, %v4272_v6 }
0x1bc8   :  { %v4273_v46 = vmul.f32 %v4271_v62, %v4271_v62 }
0x1bc9   :  { %v4278_v25 = vsel %vm84_vm0, %v4274_v8, 0.0 }
0x1bca   :  { %4279 = vadd.xlane.f32.xlu1 %v4278_v25  ;;  %v4275_v36 = vsel %vm84_vm0, %v4273_v46, 0.0  ;;  %v4411_v46 = vrot.slane %v6358_v41, %v5954_v37 }
0x1bcb   :  { %4276 = vadd.xlane.f32.xlu0 %v4275_v36 }
0x1c57   :  { %v4280_v18 = vpop.xlane.xlu1 %4279 }
0x1c58   :  { %v4282_v19 = vmul.f32 0.03125, %v4280_v18  ;;  %v4277_v11 = vpop.xlane.xlu0 %4276 }
0x1c59   :  { %v4281_v24 = vmul.f32 0.03125, %v4277_v11 }
0x1c5a   :  { %v4284_v26 = vadd.f32 1e-12, %v4282_v19 }
0x1c5b   :  { %v4283_v38 = vadd.f32 1e-12, %v4281_v24 }
0x1c5c   :  { %5654 = vrsqrt.f32 %v4284_v26 }
0x1c5d   :  { %5656 = vrsqrt.f32 %v4283_v38 }
0x1c66   :  { %v5655_v5 = vpop.eup %5654 }
0x1c67   :  { %v5657_v0 = vpop.eup %5656  ;;  %v4288_v29 = vmul.f32 %v5655_v5, %v4272_v6 }
0x1c68   :  { %v4287_v31 = vmul.f32 %v5657_v0, %v4271_v62 }
0x1c69   :  { %v4294_v55 = vmul.f32 %v4292_v7, %v4288_v29 }
0x1c6a   :  { %v4293_v54 = vmul.f32 %v4292_v7, %v4287_v31 }
0x1c6b   :  { %v4300_v57 = vadd.f32 %v4298_v28, %v4294_v55 }
0x1c6c   :  { %v4299_v52 = vadd.f32 %v4298_v28, %v4293_v54 }
0x1c6e   :  { %5161 = vmatprep.mubr.msk.f32.mxu1 %vm84_vm0, %v4299_v52 }
0x1c6f   :  { %5162 = vmatmul.mubr.msk.f32.vlgmr.msra.gmra.mrb[32].mxu1 %vm84_vm0, %v4300_v57 }
0x1d42   :  { %v5163_v45 = vpop.f32.mrb[32].mxu1 }
0x1d43   :  { %v4387_v22 = vadd.f32 %v5163_v45, %v4308_v44  ;;  %v4381_v30 = vpop.f32.mrb[33].mxu1 }
0x1d44   :  { %v4382_v20 = vadd.f32 %v4381_v30, %v4308_v44 }
0x1d45   :  { %v4391_v47 = vmul.f32 %v4387_v22, %v4387_v22 }
0x1d46   :  { %v4390_v23 = vmul.f32 %v4382_v20, %v4382_v20 }
0x1d47   :  { %v4393_v51 = vmul.f32 %v4391_v47, %v4387_v22 }
0x1d48   :  { %v4392_v21 = vmul.f32 %v4390_v23, %v4382_v20 }
0x1d49   :  { %v4395_v49 = vmul.f32 0.044715, %v4393_v51 }
0x1d4a   :  { %v4394_v53 = vmul.f32 0.044715, %v4392_v21 }
0x1d4b   :  { %v4397_v17 = vadd.f32 %v4395_v49, %v4387_v22 }
0x1d4c   :  { %v4396_v4 = vadd.f32 %v4394_v53, %v4382_v20 }
0x1d4d   :  { %v4399_v2 = vmul.f32 0.7978846, %v4397_v17 }
0x1d4e   :  { %v4398_v56 = vmul.f32 0.7978846, %v4396_v4 }
0x1d4f   :  { %5658 = vtanh.f32 %v4399_v2 }
0x1d50   :  { %5660 = vtanh.f32 %v4398_v56 }
0x1d59   :  { %v5659_v58 = vpop.eup %5658 }
0x1d5a   :  { %v5661_v60 = vpop.eup %5660  ;;  %v4403_v27 = vadd.f32 1.0, %v5659_v58 }
0x1d5b   :  { %v4402_v61 = vadd.f32 1.0, %v5661_v60 }
0x1d5c   :  { %v4405_v3 = vmul.f32 0.5, %v4403_v27 }
0x1d5d   :  { %v4404_v6 = vmul.f32 0.5, %v4402_v61 }
0x1d5e   :  { %v4407_v8 = vmul.f32 %v4405_v3, %v4387_v22 }
0x1d5f   :  { %v4406_v62 = vmul.f32 %v4404_v6, %v4382_v20 }
0x1d61   :  { %5180 = vmatprep.mubr.msk.f32.mxu0 %vm1484_vm8, %v4406_v62 }
0x1d62   :  { %5181 = vmatmul.mubr.msk.f32.vlgmr.msra.gmra.mrb[34].mxu0 %vm1484_vm8, %v4407_v8 }
0x1e35   :  { %v5182_v25 = vpop.f32.mrb[34].mxu0 }
0x1e36   :  { %v4490_v36 = vadd.f32 %v5182_v25, %v4411_v46  ;;  %v4484_v35 = vpop.f32.mrb[35].mxu0 }
0x1e37   :  { %v4485_v12 = vadd.f32 %v4484_v35, %v4411_v46 }
0x1e38   :  { %v4494_v50 = vadd.f32 %v4490_v36, %v4300_v57  ;;  %v4524_v57 = vrot.slane %v6358_v41, %v5957_v39 }
0x1e39   :  { %v4493_v13 = vadd.f32 %v4485_v12, %v4299_v52 }
0x1e3a   :  { %v4498_v15 = vsel %vm84_vm0, %v4494_v50, 0.0 }
0x1e3b   :  { %4499 = vadd.xlane.f32.xlu1 %v4498_v15  ;;  %v4495_v48 = vsel %vm84_vm0, %v4493_v13, 0.0 }
0x1e3c   :  { %4496 = vadd.xlane.f32.xlu0 %v4495_v48 }
0x1ec8   :  { %v4500_v18 = vpop.xlane.xlu1 %4499 }
0x1ec9   :  { %v4502_v19 = vmul.f32 0.03125, %v4500_v18  ;;  %v4497_v11 = vpop.xlane.xlu0 %4496 }
0x1eca   :  { %v4501_v24 = vmul.f32 0.03125, %v4497_v11 }
0x1ecb   :  { %v4504_v26 = vsub.f32 %v4494_v50, %v4502_v19 }
0x1ecc   :  { %v4503_v38 = vsub.f32 %v4493_v13, %v4501_v24 }
0x1ecd   :  { %v4506_v7 = vmul.f32 %v4504_v26, %v4504_v26 }
0x1ece   :  { %v4505_v37 = vmul.f32 %v4503_v38, %v4503_v38 }
0x1ecf   :  { %v4510_v5 = vsel %vm84_vm0, %v4506_v7, 0.0 }
0x1ed0   :  { %4511 = vadd.xlane.f32.xlu1 %v4510_v5  ;;  %v4507_v0 = vsel %vm84_vm0, %v4505_v37, 0.0 }
0x1ed1   :  { %4508 = vadd.xlane.f32.xlu0 %v4507_v0 }
0x1f5d   :  { %v4512_v29 = vpop.xlane.xlu1 %4511 }
0x1f5e   :  { %v4514_v31 = vmul.f32 0.03125, %v4512_v29  ;;  %v4509_v28 = vpop.xlane.xlu0 %4508 }
0x1f5f   :  { %v4513_v55 = vmul.f32 0.03125, %v4509_v28 }
0x1f60   :  { %v4516_v54 = vadd.f32 1e-12, %v4514_v31 }
0x1f61   :  { %v4515_v52 = vadd.f32 1e-12, %v4513_v55 }
0x1f62   :  { %5662 = vrsqrt.f32 %v4516_v54 }
0x1f63   :  { %5664 = vrsqrt.f32 %v4515_v52 }
0x1f6c   :  { %v5663_v9 = vpop.eup %5662 }
0x1f6d   :  { %v5665_v63 = vpop.eup %5664  ;;  %v4520_v10 = vmul.f32 %v5663_v9, %v4504_v26 }
0x1f6e   :  { %v4519_v16 = vmul.f32 %v5665_v63, %v4503_v38 }
0x1f6f   :  { %v4526_v32 = vmul.f32 %v4524_v57, %v4520_v10 }
0x1f70   :  { %v4525_v33 = vmul.f32 %v4524_v57, %v4519_v16 }
0x1f71   :  { %v4532_v34 = vadd.f32 %v4530_v14, %v4526_v32 }
0x1f72   :  { %v4531_v40 = vadd.f32 %v4530_v14, %v4525_v33 }
0x1f73   :  { %4534 = vst.msk [vmem:[#allocation2 + $0x8] sm:$0xff] %vm84_vm0, %v4532_v34 }
0x1f74   :  { %4533 = vst.msk [vmem:[#allocation2] sm:$0xff] %vm84_vm0, %v4531_v40 }
0x1f75   :  { %5678 = shalt.err (!%p5675_p4)
}
0x1f76   :  { %s5679_s19 = scalar_lea.hbm %s6426_s8, 256 }
0x1f77   :  { %p5680_p5 = scmp.ne.s32.totalorder %s6426_s8, %s5679_s19  ;;  %p5683_p6 = scmp.lt.u32.totalorder %s5679_s19, %s6426_s8 }
0x1f79   :  { %p5685_p7 = pnand %p5683_p6, %p5680_p5 }
0x1f7b   :  { %5688 = shalt.err (!%p5685_p7)
}
0x1f7c   :  { %s5705_s26 = smov 128   ;;  %s5706_s30 = smov 8  }
0x1f7d   :  { %4546 = dma.vmem_to_hbm [thread:$0]  %s4541_s29, 256, %s6426_s8, [#allocation3], %s5705_s26, %s5705_s26, %s5706_s30  }
0x1f7e   :  { %5689 = dma.done.wait [#allocation3], 256  }
0x1f7f   :  { %5690 = vsyncadd [#allocation3], 4294967040 }
0x1f80   :  { %4550 = vsyncpa [#allocation3], 1 }

</bundles_post_ra>
